<compile_context>
chip_gen: v7x
topology: tpu7x:2x2x1
jax: 0.10.0
libtpu: 0.0.40
codegen_flags: <defaults>
</compile_context>

<pallas_src>
import functools

import jax
import jax.numpy as jnp
from jax.experimental import pallas as pl
from jax.experimental.pallas import tpu as pltpu


def _decoder_r_kernel(n_gene_signatures, n_variant_signatures,
                      latent_ref,  # (TB, L)        latent rows for this tile
                      wh_ref,      # (L, Vs*Gs)     hidden_layer weight^T (lane-dense)
                      bh_ref,      # (1, Vs*Gs)
                      wg_ref,      # (Gs, TG)       inflate_genes weight^T, gene tile
                      bg_ref,      # (1, TG)
                      wv_ref,      # (Vs, V)        inflate_variants weight^T
                      bv_ref,      # (1, V)
                      r_ref):      # out: (TB, TG, V)  == reconstruction_r block
    Gs = n_gene_signatures
    Vs = n_variant_signatures
    TB = r_ref.shape[0]

    # Hoisted loads: each operand is read from VMEM exactly once per grid step.
    latent = latent_ref[...]
    wh = wh_ref[...]
    bh = bh_ref[...]
    wg = wg_ref[...]
    bg = bg_ref[...]
    wv = wv_ref[...]
    bv = bv_ref[...]

    # Stage 1: hidden = relu(latent @ Wh_flat + bh)   -- one MXU matmul, M=TB.
    hidden = jnp.dot(latent.astype(wh.dtype), wh,
                     preferred_element_type=jnp.float32) + bh
    hidden = jnp.maximum(hidden, 0.0)                              # (TB, Vs*Gs)

    # Stage 2: per-signature gene inflation on the MXU (M=TB, N=TG).
    ig = []
    for s in range(Vs):
        h_s = hidden[:, s * Gs:(s + 1) * Gs]                       # (TB, Gs)
        ig_s = jnp.dot(h_s.astype(wg.dtype), wg,
                       preferred_element_type=jnp.float32) + bg    # (TB, TG)
        ig.append(jnp.maximum(ig_s, 0.0))

    # Stage 3: variant inflation on the MXU, emitting (gene, variant) blocks
    # with variants on lanes so the output block is already in PyTorch layout
    # (B, G, V).  Per batch row: (TG, Vs) @ (Vs, V)  -> MXU height comes from
    # the gene tile.  Only 2-D ops are used (row slices, sublane concat, 2-D
    # transpose, 2-D dot) for robust Mosaic lowering.
    for b in range(TB):
        igb = jnp.concatenate([ig[s][b:b + 1, :] for s in range(Vs)],
                              axis=0)                              # (Vs, TG)
        rb = jnp.dot(jnp.transpose(igb).astype(wv.dtype), wv,
                     preferred_element_type=jnp.float32) + bv      # (TG, V)
        r_ref[b] = jnp.exp(rb)


def _pick_tile(dim, target, quantum):
    """Largest divisor of `dim` that is <= target and a multiple of `quantum`;
    falls back to the full (untiled) dimension."""
    t = min(target, dim)
    t -= t % quantum
    while t >= quantum:
        if dim % t == 0:
            return t
        t -= quantum
    return dim


def init_decoder_params(key, n_genes, n_variants, n_gene_signatures,
                        n_variant_signatures, latent_dim):
    """Deterministic init matching the PyTorch Linear shapes (out, in)."""
    def linear(k, fan_out, fan_in):
        kw, kb = jax.random.split(k)
        bound = 1.0 / jnp.sqrt(fan_in)
        w = jax.random.uniform(kw, (fan_out, fan_in), jnp.float32, -bound, bound)
        b = jax.random.uniform(kb, (fan_out,), jnp.float32, -bound, bound)
        return w, b

    k1, k2, k3, k4 = jax.random.split(key, 4)
    w_h, b_h = linear(k1, n_gene_signatures * n_variant_signatures, latent_dim)
    w_g, b_g = linear(k2, n_genes, n_gene_signatures)
    w_v, b_v = linear(k3, n_variants, n_variant_signatures)
    w_p, b_p = linear(k4, 1, latent_dim)
    return dict(w_h=w_h, b_h=b_h, w_g=w_g, b_g=b_g,
                w_v=w_v, b_v=b_v, w_p=w_p, b_p=b_p)


def decoder_forward(latent, params, n_genes, n_variants,
                    n_gene_signatures, n_variant_signatures, *,
                    batch_tile=8, gene_tile=256,
                    matmul_dtype=jnp.float32):
    B, L = latent.shape
    Gs, Vs, G, V = n_gene_signatures, n_variant_signatures, n_genes, n_variants

    # Tile sizes: TB is the batch tile (sublane-dim of 2-D blocks -> multiple
    # of 8), TG is the gene tile (sublanes of the out block + lanes of the
    # gene-weight block -> multiple of 128).  For very large n_variants,
    # shrink gene_tile so TB*TG*V*4B (double buffered) stays well under the
    # scoped VMEM limit (16 MiB v5e default, 64 MiB physical on v7x).
    TB = _pick_tile(B, batch_tile, 8)
    TG = _pick_tile(G, gene_tile, 128)

    # Glue: lane-dense weight layouts (no in-kernel reshapes needed).
    wh = params["w_h"].T.astype(matmul_dtype)       # (L, Vs*Gs)
    bh = params["b_h"].reshape(1, Vs * Gs)          # (1, Vs*Gs)
    wg = params["w_g"].T.astype(matmul_dtype)       # (Gs, G)
    bg = params["b_g"].reshape(1, G)                # (1, G)
    wv = params["w_v"].T.astype(matmul_dtype)       # (Vs, V)
    bv = params["b_v"].reshape(1, V)                # (1, V)

    kernel = functools.partial(_decoder_r_kernel, Gs, Vs)

    reconstruction_r = pl.pallas_call(
        kernel,
        out_shape=jax.ShapeDtypeStruct((B, G, V), jnp.float32),
        grid=(B // TB, G // TG),
        in_specs=[
            pl.BlockSpec((TB, L), lambda bi, gi: (bi, 0)),        # latent tile
            pl.BlockSpec((L, Vs * Gs), lambda bi, gi: (0, 0)),    # wh (constant)
            pl.BlockSpec((1, Vs * Gs), lambda bi, gi: (0, 0)),    # bh
            pl.BlockSpec((Gs, TG), lambda bi, gi: (0, gi)),       # wg gene tile
            pl.BlockSpec((1, TG), lambda bi, gi: (0, gi)),        # bg gene tile
            pl.BlockSpec((Vs, V), lambda bi, gi: (0, 0)),         # wv (constant)
            pl.BlockSpec((1, V), lambda bi, gi: (0, 0)),          # bv
        ],
        out_specs=pl.BlockSpec((TB, TG, V), lambda bi, gi: (bi, gi, 0)),
        compiler_params=pltpu.CompilerParams(
            dimension_semantics=("parallel", "parallel")),
    )(latent, wh, bh, wg, bg, wv, bv)

    # reconstruction_p: trivial (B, L) @ (L, 1) -- plain XLA matmul per review.
    reconstruction_p = (latent @ params["w_p"].T + params["b_p"])[:, 0]   # (B,)
    return reconstruction_r, reconstruction_p


def decoder_reference(latent, params, n_gene_signatures, n_variant_signatures):
    """Pure-JAX mirror of the PyTorch forward (for verification)."""
    Gs, Vs = n_gene_signatures, n_variant_signatures
    hidden = jax.nn.relu(latent @ params["w_h"].T + params["b_h"])
    hidden = hidden.reshape(hidden.shape[:-1] + (Vs, Gs))
    inflated = jax.nn.relu(hidden @ params["w_g"].T + params["b_g"])  # (B, Vs, G)
    inflated = jnp.swapaxes(inflated, -1, -2)                         # (B, G, Vs)
    r = jnp.exp(inflated @ params["w_v"].T + params["b_v"])           # (B, G, V)
    p = (latent @ params["w_p"].T + params["b_p"])[..., 0]            # (B,)
    return r, p


if __name__ == "__main__":
    # Small, TPU-friendly shapes consistent with the module.
    B = 16
    latent_dim = 32
    n_gene_signatures = 8
    n_variant_signatures = 8
    n_genes = 512          # tiled: 2 gene tiles of 256
    n_variants = 128       # lane-dense variants in the output

    key = jax.random.PRNGKey(0)
    k_lat, k_par = jax.random.split(key)
    latent = jax.random.normal(k_lat, (B, latent_dim), dtype=jnp.float32)
    params = init_decoder_params(k_par, n_genes, n_variants,
                                 n_gene_signatures, n_variant_signatures,
                                 latent_dim)

    r, p = decoder_forward(latent, params, n_genes, n_variants,
                           n_gene_signatures, n_variant_signatures,
                           batch_tile=8, gene_tile=256)
    jax.block_until_ready((r, p))

    r_ref, p_ref = decoder_reference(latent, params,
                                     n_gene_signatures, n_variant_signatures)

    assert r.shape == (B, n_genes, n_variants), r.shape
    assert p.shape == (B,), p.shape
    assert jnp.allclose(r, r_ref, rtol=1e-3, atol=1e-3), "reconstruction_r mismatch"
    assert jnp.allclose(p, p_ref, rtol=1e-3, atol=1e-3), "reconstruction_p mismatch"

    # TODO(synk): sample_from_latent/generate use NegativeBinomial/Normal
    # sampling (not part of forward); not implemented as kernels.
    print("KERNEL_OK")
</pallas_src>

<mosaic_0001>
module attributes {stable_mosaic.version = 11 : i64} {
  func.func @_decoder_r_kernel(%arg0: i32, %arg1: i32, %arg2: memref<8x32xf32, #tpu.memory_space<vmem>>, %arg3: memref<32x64xf32, #tpu.memory_space<vmem>>, %arg4: memref<1x64xf32, #tpu.memory_space<vmem>>, %arg5: memref<8x256xf32, #tpu.memory_space<vmem>>, %arg6: memref<1x256xf32, #tpu.memory_space<vmem>>, %arg7: memref<8x128xf32, #tpu.memory_space<vmem>>, %arg8: memref<1x128xf32, #tpu.memory_space<vmem>>, %arg9: memref<8x256x128xf32, #tpu.memory_space<vmem>>) attributes {dimension_semantics = [#tpu.dimension_semantics<parallel>, #tpu.dimension_semantics<parallel>], iteration_bounds = array<i64: 2, 2>, scalar_prefetch = 0 : i64, scratch_operands = 0 : i64, tpu.core_type = #tpu.core_type<tc>, window_params = [{transform_indices = @transform_0, window_bounds = array<i64: 8, 32>}, {pipeline_mode = #tpu.pipeline_mode<synchronous>, transform_indices = @transform_1, window_bounds = array<i64: 32, 64>}, {pipeline_mode = #tpu.pipeline_mode<synchronous>, transform_indices = @transform_2, window_bounds = array<i64: 1, 64>}, {transform_indices = @transform_3, window_bounds = array<i64: 8, 256>}, {transform_indices = @transform_4, window_bounds = array<i64: 1, 256>}, {pipeline_mode = #tpu.pipeline_mode<synchronous>, transform_indices = @transform_5, window_bounds = array<i64: 8, 128>}, {pipeline_mode = #tpu.pipeline_mode<synchronous>, transform_indices = @transform_6, window_bounds = array<i64: 1, 128>}, {transform_indices = @transform_7, window_bounds = array<i64: 8, 256, 128>}]} {
    %c0 = arith.constant 0 : index
    %c0_0 = arith.constant 0 : index
    %0 = vector.load %arg2[%c0, %c0_0] : memref<8x32xf32, #tpu.memory_space<vmem>>, vector<8x32xf32>
    %c0_1 = arith.constant 0 : index
    %c0_2 = arith.constant 0 : index
    %1 = vector.load %arg3[%c0_1, %c0_2] : memref<32x64xf32, #tpu.memory_space<vmem>>, vector<32x64xf32>
    %c0_3 = arith.constant 0 : index
    %c0_4 = arith.constant 0 : index
    %2 = vector.load %arg4[%c0_3, %c0_4] : memref<1x64xf32, #tpu.memory_space<vmem>>, vector<1x64xf32>
    %c0_5 = arith.constant 0 : index
    %c0_6 = arith.constant 0 : index
    %3 = vector.load %arg5[%c0_5, %c0_6] : memref<8x256xf32, #tpu.memory_space<vmem>>, vector<8x256xf32>
    %c0_7 = arith.constant 0 : index
    %c0_8 = arith.constant 0 : index
    %4 = vector.load %arg6[%c0_7, %c0_8] : memref<1x256xf32, #tpu.memory_space<vmem>>, vector<1x256xf32>
    %c0_9 = arith.constant 0 : index
    %c0_10 = arith.constant 0 : index
    %5 = vector.load %arg7[%c0_9, %c0_10] : memref<8x128xf32, #tpu.memory_space<vmem>>, vector<8x128xf32>
    %c0_11 = arith.constant 0 : index
    %c0_12 = arith.constant 0 : index
    %6 = vector.load %arg8[%c0_11, %c0_12] : memref<1x128xf32, #tpu.memory_space<vmem>>, vector<1x128xf32>
    %cst = arith.constant dense<0.000000e+00> : vector<8x64xf32>
    %7 = tpu.matmul %0, %1, %cst {dimension_numbers = #tpu.dot_dimension_numbers<[1], [0], [0], [1], [0, 0, 1, 1], [], []>} : vector<8x32xf32>, vector<32x64xf32>, vector<8x64xf32> -> vector<8x64xf32>
    %8 = vector.broadcast %2 : vector<1x64xf32> to vector<8x64xf32>
    %9 = arith.addf %7, %8 : vector<8x64xf32>
    %cst_13 = arith.constant 0.000000e+00 : f32
    %10 = vector.broadcast %cst_13 : f32 to vector<8x64xf32>
    %11 = arith.maximumf %9, %10 : vector<8x64xf32>
    %12 = vector.extract_strided_slice %11 {offsets = [0, 0], sizes = [8, 8], strides = [1, 1]} : vector<8x64xf32> to vector<8x8xf32>
    %cst_14 = arith.constant dense<0.000000e+00> : vector<8x256xf32>
    %13 = tpu.matmul %12, %3, %cst_14 {dimension_numbers = #tpu.dot_dimension_numbers<[1], [0], [0], [1], [0, 0, 1, 1], [], []>} : vector<8x8xf32>, vector<8x256xf32>, vector<8x256xf32> -> vector<8x256xf32>
    %14 = vector.broadcast %4 : vector<1x256xf32> to vector<8x256xf32>
    %15 = arith.addf %13, %14 : vector<8x256xf32>
    %cst_15 = arith.constant 0.000000e+00 : f32
    %16 = vector.broadcast %cst_15 : f32 to vector<8x256xf32>
    %17 = arith.maximumf %15, %16 : vector<8x256xf32>
    %18 = vector.extract_strided_slice %11 {offsets = [0, 8], sizes = [8, 8], strides = [1, 1]} : vector<8x64xf32> to vector<8x8xf32>
    %cst_16 = arith.constant dense<0.000000e+00> : vector<8x256xf32>
    %19 = tpu.matmul %18, %3, %cst_16 {dimension_numbers = #tpu.dot_dimension_numbers<[1], [0], [0], [1], [0, 0, 1, 1], [], []>} : vector<8x8xf32>, vector<8x256xf32>, vector<8x256xf32> -> vector<8x256xf32>
    %20 = vector.broadcast %4 : vector<1x256xf32> to vector<8x256xf32>
    %21 = arith.addf %19, %20 : vector<8x256xf32>
    %cst_17 = arith.constant 0.000000e+00 : f32
    %22 = vector.broadcast %cst_17 : f32 to vector<8x256xf32>
    %23 = arith.maximumf %21, %22 : vector<8x256xf32>
    %24 = vector.extract_strided_slice %11 {offsets = [0, 16], sizes = [8, 8], strides = [1, 1]} : vector<8x64xf32> to vector<8x8xf32>
    %cst_18 = arith.constant dense<0.000000e+00> : vector<8x256xf32>
    %25 = tpu.matmul %24, %3, %cst_18 {dimension_numbers = #tpu.dot_dimension_numbers<[1], [0], [0], [1], [0, 0, 1, 1], [], []>} : vector<8x8xf32>, vector<8x256xf32>, vector<8x256xf32> -> vector<8x256xf32>
    %26 = vector.broadcast %4 : vector<1x256xf32> to vector<8x256xf32>
    %27 = arith.addf %25, %26 : vector<8x256xf32>
    %cst_19 = arith.constant 0.000000e+00 : f32
    %28 = vector.broadcast %cst_19 : f32 to vector<8x256xf32>
    %29 = arith.maximumf %27, %28 : vector<8x256xf32>
    %30 = vector.extract_strided_slice %11 {offsets = [0, 24], sizes = [8, 8], strides = [1, 1]} : vector<8x64xf32> to vector<8x8xf32>
    %cst_20 = arith.constant dense<0.000000e+00> : vector<8x256xf32>
    %31 = tpu.matmul %30, %3, %cst_20 {dimension_numbers = #tpu.dot_dimension_numbers<[1], [0], [0], [1], [0, 0, 1, 1], [], []>} : vector<8x8xf32>, vector<8x256xf32>, vector<8x256xf32> -> vector<8x256xf32>
    %32 = vector.broadcast %4 : vector<1x256xf32> to vector<8x256xf32>
    %33 = arith.addf %31, %32 : vector<8x256xf32>
    %cst_21 = arith.constant 0.000000e+00 : f32
    %34 = vector.broadcast %cst_21 : f32 to vector<8x256xf32>
    %35 = arith.maximumf %33, %34 : vector<8x256xf32>
    %36 = vector.extract_strided_slice %11 {offsets = [0, 32], sizes = [8, 8], strides = [1, 1]} : vector<8x64xf32> to vector<8x8xf32>
    %cst_22 = arith.constant dense<0.000000e+00> : vector<8x256xf32>
    %37 = tpu.matmul %36, %3, %cst_22 {dimension_numbers = #tpu.dot_dimension_numbers<[1], [0], [0], [1], [0, 0, 1, 1], [], []>} : vector<8x8xf32>, vector<8x256xf32>, vector<8x256xf32> -> vector<8x256xf32>
    %38 = vector.broadcast %4 : vector<1x256xf32> to vector<8x256xf32>
    %39 = arith.addf %37, %38 : vector<8x256xf32>
    %cst_23 = arith.constant 0.000000e+00 : f32
    %40 = vector.broadcast %cst_23 : f32 to vector<8x256xf32>
    %41 = arith.maximumf %39, %40 : vector<8x256xf32>
    %42 = vector.extract_strided_slice %11 {offsets = [0, 40], sizes = [8, 8], strides = [1, 1]} : vector<8x64xf32> to vector<8x8xf32>
    %cst_24 = arith.constant dense<0.000000e+00> : vector<8x256xf32>
    %43 = tpu.matmul %42, %3, %cst_24 {dimension_numbers = #tpu.dot_dimension_numbers<[1], [0], [0], [1], [0, 0, 1, 1], [], []>} : vector<8x8xf32>, vector<8x256xf32>, vector<8x256xf32> -> vector<8x256xf32>
    %44 = vector.broadcast %4 : vector<1x256xf32> to vector<8x256xf32>
    %45 = arith.addf %43, %44 : vector<8x256xf32>
    %cst_25 = arith.constant 0.000000e+00 : f32
    %46 = vector.broadcast %cst_25 : f32 to vector<8x256xf32>
    %47 = arith.maximumf %45, %46 : vector<8x256xf32>
    %48 = vector.extract_strided_slice %11 {offsets = [0, 48], sizes = [8, 8], strides = [1, 1]} : vector<8x64xf32> to vector<8x8xf32>
    %cst_26 = arith.constant dense<0.000000e+00> : vector<8x256xf32>
    %49 = tpu.matmul %48, %3, %cst_26 {dimension_numbers = #tpu.dot_dimension_numbers<[1], [0], [0], [1], [0, 0, 1, 1], [], []>} : vector<8x8xf32>, vector<8x256xf32>, vector<8x256xf32> -> vector<8x256xf32>
    %50 = vector.broadcast %4 : vector<1x256xf32> to vector<8x256xf32>
    %51 = arith.addf %49, %50 : vector<8x256xf32>
    %cst_27 = arith.constant 0.000000e+00 : f32
    %52 = vector.broadcast %cst_27 : f32 to vector<8x256xf32>
    %53 = arith.maximumf %51, %52 : vector<8x256xf32>
    %54 = vector.extract_strided_slice %11 {offsets = [0, 56], sizes = [8, 8], strides = [1, 1]} : vector<8x64xf32> to vector<8x8xf32>
    %cst_28 = arith.constant dense<0.000000e+00> : vector<8x256xf32>
    %55 = tpu.matmul %54, %3, %cst_28 {dimension_numbers = #tpu.dot_dimension_numbers<[1], [0], [0], [1], [0, 0, 1, 1], [], []>} : vector<8x8xf32>, vector<8x256xf32>, vector<8x256xf32> -> vector<8x256xf32>
    %56 = vector.broadcast %4 : vector<1x256xf32> to vector<8x256xf32>
    %57 = arith.addf %55, %56 : vector<8x256xf32>
    %cst_29 = arith.constant 0.000000e+00 : f32
    %58 = vector.broadcast %cst_29 : f32 to vector<8x256xf32>
    %59 = arith.maximumf %57, %58 : vector<8x256xf32>
    %60 = vector.extract_strided_slice %17 {offsets = [0, 0], sizes = [1, 256], strides = [1, 1]} : vector<8x256xf32> to vector<1x256xf32>
    %61 = vector.extract_strided_slice %23 {offsets = [0, 0], sizes = [1, 256], strides = [1, 1]} : vector<8x256xf32> to vector<1x256xf32>
    %62 = vector.extract_strided_slice %29 {offsets = [0, 0], sizes = [1, 256], strides = [1, 1]} : vector<8x256xf32> to vector<1x256xf32>
    %63 = vector.extract_strided_slice %35 {offsets = [0, 0], sizes = [1, 256], strides = [1, 1]} : vector<8x256xf32> to vector<1x256xf32>
    %64 = vector.extract_strided_slice %41 {offsets = [0, 0], sizes = [1, 256], strides = [1, 1]} : vector<8x256xf32> to vector<1x256xf32>
    %65 = vector.extract_strided_slice %47 {offsets = [0, 0], sizes = [1, 256], strides = [1, 1]} : vector<8x256xf32> to vector<1x256xf32>
    %66 = vector.extract_strided_slice %53 {offsets = [0, 0], sizes = [1, 256], strides = [1, 1]} : vector<8x256xf32> to vector<1x256xf32>
    %67 = vector.extract_strided_slice %59 {offsets = [0, 0], sizes = [1, 256], strides = [1, 1]} : vector<8x256xf32> to vector<1x256xf32>
    %68 = tpu.concatenate %60, %61, %62, %63, %64, %65, %66, %67 in 0 : vector<1x256xf32>, vector<1x256xf32>, vector<1x256xf32>, vector<1x256xf32>, vector<1x256xf32>, vector<1x256xf32>, vector<1x256xf32>, vector<1x256xf32> -> vector<8x256xf32>
    %69 = tpu.transpose %68, [1, 0] : vector<8x256xf32> -> vector<256x8xf32>
    %cst_30 = arith.constant dense<0.000000e+00> : vector<256x128xf32>
    %70 = tpu.matmul %69, %5, %cst_30 {dimension_numbers = #tpu.dot_dimension_numbers<[1], [0], [0], [1], [0, 0, 1, 1], [], []>} : vector<256x8xf32>, vector<8x128xf32>, vector<256x128xf32> -> vector<256x128xf32>
    %71 = vector.broadcast %6 : vector<1x128xf32> to vector<256x128xf32>
    %72 = arith.addf %70, %71 : vector<256x128xf32>
    %73 = math.exp %72 : vector<256x128xf32>
    %c0_31 = arith.constant 0 : index
    %c0_32 = arith.constant 0 : index
    %c0_33 = arith.constant 0 : index
    %74 = vector.load %arg9[%c0_31, %c0_32, %c0_33] : memref<8x256x128xf32, #tpu.memory_space<vmem>>, vector<1x256x128xf32>
    %75 = vector.shape_cast %74 : vector<1x256x128xf32> to vector<256x128xf32>
    %76 = vector.shape_cast %73 : vector<256x128xf32> to vector<1x256x128xf32>
    tpu.vector_store %arg9[%c0_31, %c0_32, %c0_33], %76 {strides = array<i32>} : memref<8x256x128xf32, #tpu.memory_space<vmem>>, vector<1x256x128xf32>,
    %77 = vector.extract_strided_slice %17 {offsets = [1, 0], sizes = [1, 256], strides = [1, 1]} : vector<8x256xf32> to vector<1x256xf32>
    %78 = vector.extract_strided_slice %23 {offsets = [1, 0], sizes = [1, 256], strides = [1, 1]} : vector<8x256xf32> to vector<1x256xf32>
    %79 = vector.extract_strided_slice %29 {offsets = [1, 0], sizes = [1, 256], strides = [1, 1]} : vector<8x256xf32> to vector<1x256xf32>
    %80 = vector.extract_strided_slice %35 {offsets = [1, 0], sizes = [1, 256], strides = [1, 1]} : vector<8x256xf32> to vector<1x256xf32>
    %81 = vector.extract_strided_slice %41 {offsets = [1, 0], sizes = [1, 256], strides = [1, 1]} : vector<8x256xf32> to vector<1x256xf32>
    %82 = vector.extract_strided_slice %47 {offsets = [1, 0], sizes = [1, 256], strides = [1, 1]} : vector<8x256xf32> to vector<1x256xf32>
    %83 = vector.extract_strided_slice %53 {offsets = [1, 0], sizes = [1, 256], strides = [1, 1]} : vector<8x256xf32> to vector<1x256xf32>
    %84 = vector.extract_strided_slice %59 {offsets = [1, 0], sizes = [1, 256], strides = [1, 1]} : vector<8x256xf32> to vector<1x256xf32>
    %85 = tpu.concatenate %77, %78, %79, %80, %81, %82, %83, %84 in 0 : vector<1x256xf32>, vector<1x256xf32>, vector<1x256xf32>, vector<1x256xf32>, vector<1x256xf32>, vector<1x256xf32>, vector<1x256xf32>, vector<1x256xf32> -> vector<8x256xf32>
    %86 = tpu.transpose %85, [1, 0] : vector<8x256xf32> -> vector<256x8xf32>
    %cst_34 = arith.constant dense<0.000000e+00> : vector<256x128xf32>
    %87 = tpu.matmul %86, %5, %cst_34 {dimension_numbers = #tpu.dot_dimension_numbers<[1], [0], [0], [1], [0, 0, 1, 1], [], []>} : vector<256x8xf32>, vector<8x128xf32>, vector<256x128xf32> -> vector<256x128xf32>
    %88 = vector.broadcast %6 : vector<1x128xf32> to vector<256x128xf32>
    %89 = arith.addf %87, %88 : vector<256x128xf32>
    %90 = math.exp %89 : vector<256x128xf32>
    %c1 = arith.constant 1 : index
    %c0_35 = arith.constant 0 : index
    %c0_36 = arith.constant 0 : index
    %91 = vector.load %arg9[%c1, %c0_35, %c0_36] : memref<8x256x128xf32, #tpu.memory_space<vmem>>, vector<1x256x128xf32>
    %92 = vector.shape_cast %91 : vector<1x256x128xf32> to vector<256x128xf32>
    %93 = vector.shape_cast %90 : vector<256x128xf32> to vector<1x256x128xf32>
    tpu.vector_store %arg9[%c1, %c0_35, %c0_36], %93 {strides = array<i32>} : memref<8x256x128xf32, #tpu.memory_space<vmem>>, vector<1x256x128xf32>,
    %94 = vector.extract_strided_slice %17 {offsets = [2, 0], sizes = [1, 256], strides = [1, 1]} : vector<8x256xf32> to vector<1x256xf32>
    %95 = vector.extract_strided_slice %23 {offsets = [2, 0], sizes = [1, 256], strides = [1, 1]} : vector<8x256xf32> to vector<1x256xf32>
    %96 = vector.extract_strided_slice %29 {offsets = [2, 0], sizes = [1, 256], strides = [1, 1]} : vector<8x256xf32> to vector<1x256xf32>
    %97 = vector.extract_strided_slice %35 {offsets = [2, 0], sizes = [1, 256], strides = [1, 1]} : vector<8x256xf32> to vector<1x256xf32>
    %98 = vector.extract_strided_slice %41 {offsets = [2, 0], sizes = [1, 256], strides = [1, 1]} : vector<8x256xf32> to vector<1x256xf32>
    %99 = vector.extract_strided_slice %47 {offsets = [2, 0], sizes = [1, 256], strides = [1, 1]} : vector<8x256xf32> to vector<1x256xf32>
    %100 = vector.extract_strided_slice %53 {offsets = [2, 0], sizes = [1, 256], strides = [1, 1]} : vector<8x256xf32> to vector<1x256xf32>
    %101 = vector.extract_strided_slice %59 {offsets = [2, 0], sizes = [1, 256], strides = [1, 1]} : vector<8x256xf32> to vector<1x256xf32>
    %102 = tpu.concatenate %94, %95, %96, %97, %98, %99, %100, %101 in 0 : vector<1x256xf32>, vector<1x256xf32>, vector<1x256xf32>, vector<1x256xf32>, vector<1x256xf32>, vector<1x256xf32>, vector<1x256xf32>, vector<1x256xf32> -> vector<8x256xf32>
    %103 = tpu.transpose %102, [1, 0] : vector<8x256xf32> -> vector<256x8xf32>
    %cst_37 = arith.constant dense<0.000000e+00> : vector<256x128xf32>
    %104 = tpu.matmul %103, %5, %cst_37 {dimension_numbers = #tpu.dot_dimension_numbers<[1], [0], [0], [1], [0, 0, 1, 1], [], []>} : vector<256x8xf32>, vector<8x128xf32>, vector<256x128xf32> -> vector<256x128xf32>
    %105 = vector.broadcast %6 : vector<1x128xf32> to vector<256x128xf32>
    %106 = arith.addf %104, %105 : vector<256x128xf32>
    %107 = math.exp %106 : vector<256x128xf32>
    %c2 = arith.constant 2 : index
    %c0_38 = arith.constant 0 : index
    %c0_39 = arith.constant 0 : index
    %108 = vector.load %arg9[%c2, %c0_38, %c0_39] : memref<8x256x128xf32, #tpu.memory_space<vmem>>, vector<1x256x128xf32>
    %109 = vector.shape_cast %108 : vector<1x256x128xf32> to vector<256x128xf32>
    %110 = vector.shape_cast %107 : vector<256x128xf32> to vector<1x256x128xf32>
    tpu.vector_store %arg9[%c2, %c0_38, %c0_39], %110 {strides = array<i32>} : memref<8x256x128xf32, #tpu.memory_space<vmem>>, vector<1x256x128xf32>,
    %111 = vector.extract_strided_slice %17 {offsets = [3, 0], sizes = [1, 256], strides = [1, 1]} : vector<8x256xf32> to vector<1x256xf32>
    %112 = vector.extract_strided_slice %23 {offsets = [3, 0], sizes = [1, 256], strides = [1, 1]} : vector<8x256xf32> to vector<1x256xf32>
    %113 = vector.extract_strided_slice %29 {offsets = [3, 0], sizes = [1, 256], strides = [1, 1]} : vector<8x256xf32> to vector<1x256xf32>
    %114 = vector.extract_strided_slice %35 {offsets = [3, 0], sizes = [1, 256], strides = [1, 1]} : vector<8x256xf32> to vector<1x256xf32>
    %115 = vector.extract_strided_slice %41 {offsets = [3, 0], sizes = [1, 256], strides = [1, 1]} : vector<8x256xf32> to vector<1x256xf32>
    %116 = vector.extract_strided_slice %47 {offsets = [3, 0], sizes = [1, 256], strides = [1, 1]} : vector<8x256xf32> to vector<1x256xf32>
    %117 = vector.extract_strided_slice %53 {offsets = [3, 0], sizes = [1, 256], strides = [1, 1]} : vector<8x256xf32> to vector<1x256xf32>
    %118 = vector.extract_strided_slice %59 {offsets = [3, 0], sizes = [1, 256], strides = [1, 1]} : vector<8x256xf32> to vector<1x256xf32>
    %119 = tpu.concatenate %111, %112, %113, %114, %115, %116, %117, %118 in 0 : vector<1x256xf32>, vector<1x256xf32>, vector<1x256xf32>, vector<1x256xf32>, vector<1x256xf32>, vector<1x256xf32>, vector<1x256xf32>, vector<1x256xf32> -> vector<8x256xf32>
    %120 = tpu.transpose %119, [1, 0] : vector<8x256xf32> -> vector<256x8xf32>
    %cst_40 = arith.constant dense<0.000000e+00> : vector<256x128xf32>
    %121 = tpu.matmul %120, %5, %cst_40 {dimension_numbers = #tpu.dot_dimension_numbers<[1], [0], [0], [1], [0, 0, 1, 1], [], []>} : vector<256x8xf32>, vector<8x128xf32>, vector<256x128xf32> -> vector<256x128xf32>
    %122 = vector.broadcast %6 : vector<1x128xf32> to vector<256x128xf32>
    %123 = arith.addf %121, %122 : vector<256x128xf32>
    %124 = math.exp %123 : vector<256x128xf32>
    %c3 = arith.constant 3 : index
    %c0_41 = arith.constant 0 : index
    %c0_42 = arith.constant 0 : index
    %125 = vector.load %arg9[%c3, %c0_41, %c0_42] : memref<8x256x128xf32, #tpu.memory_space<vmem>>, vector<1x256x128xf32>
    %126 = vector.shape_cast %125 : vector<1x256x128xf32> to vector<256x128xf32>
    %127 = vector.shape_cast %124 : vector<256x128xf32> to vector<1x256x128xf32>
    tpu.vector_store %arg9[%c3, %c0_41, %c0_42], %127 {strides = array<i32>} : memref<8x256x128xf32, #tpu.memory_space<vmem>>, vector<1x256x128xf32>,
    %128 = vector.extract_strided_slice %17 {offsets = [4, 0], sizes = [1, 256], strides = [1, 1]} : vector<8x256xf32> to vector<1x256xf32>
    %129 = vector.extract_strided_slice %23 {offsets = [4, 0], sizes = [1, 256], strides = [1, 1]} : vector<8x256xf32> to vector<1x256xf32>
    %130 = vector.extract_strided_slice %29 {offsets = [4, 0], sizes = [1, 256], strides = [1, 1]} : vector<8x256xf32> to vector<1x256xf32>
    %131 = vector.extract_strided_slice %35 {offsets = [4, 0], sizes = [1, 256], strides = [1, 1]} : vector<8x256xf32> to vector<1x256xf32>
    %132 = vector.extract_strided_slice %41 {offsets = [4, 0], sizes = [1, 256], strides = [1, 1]} : vector<8x256xf32> to vector<1x256xf32>
    %133 = vector.extract_strided_slice %47 {offsets = [4, 0], sizes = [1, 256], strides = [1, 1]} : vector<8x256xf32> to vector<1x256xf32>
    %134 = vector.extract_strided_slice %53 {offsets = [4, 0], sizes = [1, 256], strides = [1, 1]} : vector<8x256xf32> to vector<1x256xf32>
    %135 = vector.extract_strided_slice %59 {offsets = [4, 0], sizes = [1, 256], strides = [1, 1]} : vector<8x256xf32> to vector<1x256xf32>
    %136 = tpu.concatenate %128, %129, %130, %131, %132, %133, %134, %135 in 0 : vector<1x256xf32>, vector<1x256xf32>, vector<1x256xf32>, vector<1x256xf32>, vector<1x256xf32>, vector<1x256xf32>, vector<1x256xf32>, vector<1x256xf32> -> vector<8x256xf32>
    %137 = tpu.transpose %136, [1, 0] : vector<8x256xf32> -> vector<256x8xf32>
    %cst_43 = arith.constant dense<0.000000e+00> : vector<256x128xf32>
    %138 = tpu.matmul %137, %5, %cst_43 {dimension_numbers = #tpu.dot_dimension_numbers<[1], [0], [0], [1], [0, 0, 1, 1], [], []>} : vector<256x8xf32>, vector<8x128xf32>, vector<256x128xf32> -> vector<256x128xf32>
    %139 = vector.broadcast %6 : vector<1x128xf32> to vector<256x128xf32>
    %140 = arith.addf %138, %139 : vector<256x128xf32>
    %141 = math.exp %140 : vector<256x128xf32>
    %c4 = arith.constant 4 : index
    %c0_44 = arith.constant 0 : index
    %c0_45 = arith.constant 0 : index
    %142 = vector.load %arg9[%c4, %c0_44, %c0_45] : memref<8x256x128xf32, #tpu.memory_space<vmem>>, vector<1x256x128xf32>
    %143 = vector.shape_cast %142 : vector<1x256x128xf32> to vector<256x128xf32>
    %144 = vector.shape_cast %141 : vector<256x128xf32> to vector<1x256x128xf32>
    tpu.vector_store %arg9[%c4, %c0_44, %c0_45], %144 {strides = array<i32>} : memref<8x256x128xf32, #tpu.memory_space<vmem>>, vector<1x256x128xf32>,
    %145 = vector.extract_strided_slice %17 {offsets = [5, 0], sizes = [1, 256], strides = [1, 1]} : vector<8x256xf32> to vector<1x256xf32>
    %146 = vector.extract_strided_slice %23 {offsets = [5, 0], sizes = [1, 256], strides = [1, 1]} : vector<8x256xf32> to vector<1x256xf32>
    %147 = vector.extract_strided_slice %29 {offsets = [5, 0], sizes = [1, 256], strides = [1, 1]} : vector<8x256xf32> to vector<1x256xf32>
    %148 = vector.extract_strided_slice %35 {offsets = [5, 0], sizes = [1, 256], strides = [1, 1]} : vector<8x256xf32> to vector<1x256xf32>
    %149 = vector.extract_strided_slice %41 {offsets = [5, 0], sizes = [1, 256], strides = [1, 1]} : vector<8x256xf32> to vector<1x256xf32>
    %150 = vector.extract_strided_slice %47 {offsets = [5, 0], sizes = [1, 256], strides = [1, 1]} : vector<8x256xf32> to vector<1x256xf32>
    %151 = vector.extract_strided_slice %53 {offsets = [5, 0], sizes = [1, 256], strides = [1, 1]} : vector<8x256xf32> to vector<1x256xf32>
    %152 = vector.extract_strided_slice %59 {offsets = [5, 0], sizes = [1, 256], strides = [1, 1]} : vector<8x256xf32> to vector<1x256xf32>
    %153 = tpu.concatenate %145, %146, %147, %148, %149, %150, %151, %152 in 0 : vector<1x256xf32>, vector<1x256xf32>, vector<1x256xf32>, vector<1x256xf32>, vector<1x256xf32>, vector<1x256xf32>, vector<1x256xf32>, vector<1x256xf32> -> vector<8x256xf32>
    %154 = tpu.transpose %153, [1, 0] : vector<8x256xf32> -> vector<256x8xf32>
    %cst_46 = arith.constant dense<0.000000e+00> : vector<256x128xf32>
    %155 = tpu.matmul %154, %5, %cst_46 {dimension_numbers = #tpu.dot_dimension_numbers<[1], [0], [0], [1], [0, 0, 1, 1], [], []>} : vector<256x8xf32>, vector<8x128xf32>, vector<256x128xf32> -> vector<256x128xf32>
    %156 = vector.broadcast %6 : vector<1x128xf32> to vector<256x128xf32>
    %157 = arith.addf %155, %156 : vector<256x128xf32>
    %158 = math.exp %157 : vector<256x128xf32>
    %c5 = arith.constant 5 : index
    %c0_47 = arith.constant 0 : index
    %c0_48 = arith.constant 0 : index
    %159 = vector.load %arg9[%c5, %c0_47, %c0_48] : memref<8x256x128xf32, #tpu.memory_space<vmem>>, vector<1x256x128xf32>
    %160 = vector.shape_cast %159 : vector<1x256x128xf32> to vector<256x128xf32>
    %161 = vector.shape_cast %158 : vector<256x128xf32> to vector<1x256x128xf32>
    tpu.vector_store %arg9[%c5, %c0_47, %c0_48], %161 {strides = array<i32>} : memref<8x256x128xf32, #tpu.memory_space<vmem>>, vector<1x256x128xf32>,
    %162 = vector.extract_strided_slice %17 {offsets = [6, 0], sizes = [1, 256], strides = [1, 1]} : vector<8x256xf32> to vector<1x256xf32>
    %163 = vector.extract_strided_slice %23 {offsets = [6, 0], sizes = [1, 256], strides = [1, 1]} : vector<8x256xf32> to vector<1x256xf32>
    %164 = vector.extract_strided_slice %29 {offsets = [6, 0], sizes = [1, 256], strides = [1, 1]} : vector<8x256xf32> to vector<1x256xf32>
    %165 = vector.extract_strided_slice %35 {offsets = [6, 0], sizes = [1, 256], strides = [1, 1]} : vector<8x256xf32> to vector<1x256xf32>
    %166 = vector.extract_strided_slice %41 {offsets = [6, 0], sizes = [1, 256], strides = [1, 1]} : vector<8x256xf32> to vector<1x256xf32>
    %167 = vector.extract_strided_slice %47 {offsets = [6, 0], sizes = [1, 256], strides = [1, 1]} : vector<8x256xf32> to vector<1x256xf32>
    %168 = vector.extract_strided_slice %53 {offsets = [6, 0], sizes = [1, 256], strides = [1, 1]} : vector<8x256xf32> to vector<1x256xf32>
    %169 = vector.extract_strided_slice %59 {offsets = [6, 0], sizes = [1, 256], strides = [1, 1]} : vector<8x256xf32> to vector<1x256xf32>
    %170 = tpu.concatenate %162, %163, %164, %165, %166, %167, %168, %169 in 0 : vector<1x256xf32>, vector<1x256xf32>, vector<1x256xf32>, vector<1x256xf32>, vector<1x256xf32>, vector<1x256xf32>, vector<1x256xf32>, vector<1x256xf32> -> vector<8x256xf32>
    %171 = tpu.transpose %170, [1, 0] : vector<8x256xf32> -> vector<256x8xf32>
    %cst_49 = arith.constant dense<0.000000e+00> : vector<256x128xf32>
    %172 = tpu.matmul %171, %5, %cst_49 {dimension_numbers = #tpu.dot_dimension_numbers<[1], [0], [0], [1], [0, 0, 1, 1], [], []>} : vector<256x8xf32>, vector<8x128xf32>, vector<256x128xf32> -> vector<256x128xf32>
    %173 = vector.broadcast %6 : vector<1x128xf32> to vector<256x128xf32>
    %174 = arith.addf %172, %173 : vector<256x128xf32>
    %175 = math.exp %174 : vector<256x128xf32>
    %c6 = arith.constant 6 : index
    %c0_50 = arith.constant 0 : index
    %c0_51 = arith.constant 0 : index
    %176 = vector.load %arg9[%c6, %c0_50, %c0_51] : memref<8x256x128xf32, #tpu.memory_space<vmem>>, vector<1x256x128xf32>
    %177 = vector.shape_cast %176 : vector<1x256x128xf32> to vector<256x128xf32>
    %178 = vector.shape_cast %175 : vector<256x128xf32> to vector<1x256x128xf32>
    tpu.vector_store %arg9[%c6, %c0_50, %c0_51], %178 {strides = array<i32>} : memref<8x256x128xf32, #tpu.memory_space<vmem>>, vector<1x256x128xf32>,
    %179 = vector.extract_strided_slice %17 {offsets = [7, 0], sizes = [1, 256], strides = [1, 1]} : vector<8x256xf32> to vector<1x256xf32>
    %180 = vector.extract_strided_slice %23 {offsets = [7, 0], sizes = [1, 256], strides = [1, 1]} : vector<8x256xf32> to vector<1x256xf32>
    %181 = vector.extract_strided_slice %29 {offsets = [7, 0], sizes = [1, 256], strides = [1, 1]} : vector<8x256xf32> to vector<1x256xf32>
    %182 = vector.extract_strided_slice %35 {offsets = [7, 0], sizes = [1, 256], strides = [1, 1]} : vector<8x256xf32> to vector<1x256xf32>
    %183 = vector.extract_strided_slice %41 {offsets = [7, 0], sizes = [1, 256], strides = [1, 1]} : vector<8x256xf32> to vector<1x256xf32>
    %184 = vector.extract_strided_slice %47 {offsets = [7, 0], sizes = [1, 256], strides = [1, 1]} : vector<8x256xf32> to vector<1x256xf32>
    %185 = vector.extract_strided_slice %53 {offsets = [7, 0], sizes = [1, 256], strides = [1, 1]} : vector<8x256xf32> to vector<1x256xf32>
    %186 = vector.extract_strided_slice %59 {offsets = [7, 0], sizes = [1, 256], strides = [1, 1]} : vector<8x256xf32> to vector<1x256xf32>
    %187 = tpu.concatenate %179, %180, %181, %182, %183, %184, %185, %186 in 0 : vector<1x256xf32>, vector<1x256xf32>, vector<1x256xf32>, vector<1x256xf32>, vector<1x256xf32>, vector<1x256xf32>, vector<1x256xf32>, vector<1x256xf32> -> vector<8x256xf32>
    %188 = tpu.transpose %187, [1, 0] : vector<8x256xf32> -> vector<256x8xf32>
    %cst_52 = arith.constant dense<0.000000e+00> : vector<256x128xf32>
    %189 = tpu.matmul %188, %5, %cst_52 {dimension_numbers = #tpu.dot_dimension_numbers<[1], [0], [0], [1], [0, 0, 1, 1], [], []>} : vector<256x8xf32>, vector<8x128xf32>, vector<256x128xf32> -> vector<256x128xf32>
    %190 = vector.broadcast %6 : vector<1x128xf32> to vector<256x128xf32>
    %191 = arith.addf %189, %190 : vector<256x128xf32>
    %192 = math.exp %191 : vector<256x128xf32>
    %c7 = arith.constant 7 : index
    %c0_53 = arith.constant 0 : index
    %c0_54 = arith.constant 0 : index
    %193 = vector.load %arg9[%c7, %c0_53, %c0_54] : memref<8x256x128xf32, #tpu.memory_space<vmem>>, vector<1x256x128xf32>
    %194 = vector.shape_cast %193 : vector<1x256x128xf32> to vector<256x128xf32>
    %195 = vector.shape_cast %192 : vector<256x128xf32> to vector<1x256x128xf32>
    tpu.vector_store %arg9[%c7, %c0_53, %c0_54], %195 {strides = array<i32>} : memref<8x256x128xf32, #tpu.memory_space<vmem>>, vector<1x256x128xf32>,
    return
  }
  func.func @transform_0(%arg0: i32, %arg1: i32) -> (i32, i32) {
    %c0_i32 = arith.constant 0 : i32
    %c0_i32_0 = arith.constant 0 : i32
    return %arg0, %c0_i32 : i32, i32
  }
  func.func @transform_1(%arg0: i32, %arg1: i32) -> (i32, i32) {
    %c0_i32 = arith.constant 0 : i32
    %c0_i32_0 = arith.constant 0 : i32
    %c0_i32_1 = arith.constant 0 : i32
    return %c0_i32, %c0_i32_0 : i32, i32
  }
  func.func @transform_2(%arg0: i32, %arg1: i32) -> (i32, i32) {
    %c0_i32 = arith.constant 0 : i32
    %c0_i32_0 = arith.constant 0 : i32
    %c0_i32_1 = arith.constant 0 : i32
    return %c0_i32, %c0_i32_0 : i32, i32
  }
  func.func @transform_3(%arg0: i32, %arg1: i32) -> (i32, i32) {
    %c0_i32 = arith.constant 0 : i32
    %c0_i32_0 = arith.constant 0 : i32
    return %c0_i32, %arg1 : i32, i32
  }
  func.func @transform_4(%arg0: i32, %arg1: i32) -> (i32, i32) {
    %c0_i32 = arith.constant 0 : i32
    %c0_i32_0 = arith.constant 0 : i32
    return %c0_i32, %arg1 : i32, i32
  }
  func.func @transform_5(%arg0: i32, %arg1: i32) -> (i32, i32) {
    %c0_i32 = arith.constant 0 : i32
    %c0_i32_0 = arith.constant 0 : i32
    %c0_i32_1 = arith.constant 0 : i32
    return %c0_i32, %c0_i32_0 : i32, i32
  }
  func.func @transform_6(%arg0: i32, %arg1: i32) -> (i32, i32) {
    %c0_i32 = arith.constant 0 : i32
    %c0_i32_0 = arith.constant 0 : i32
    %c0_i32_1 = arith.constant 0 : i32
    return %c0_i32, %c0_i32_0 : i32, i32
  }
  func.func @transform_7(%arg0: i32, %arg1: i32) -> (i32, i32, i32) {
    %c0_i32 = arith.constant 0 : i32
    %c0_i32_0 = arith.constant 0 : i32
    return %arg0, %arg1, %c0_i32 : i32, i32, i32
  }
}

</mosaic_0001>

<bundles_post_ra>
// kernel: tpu_custom_call.1
= control target key start
LH: loop header
LB: loop body
LE: loop exit
PB: predicated region body
PF: predicated region fallthrough
CT: control target
= control target key end

     0   :  { %s9813_s0 = inlined_call_operand.hbm [shape: f32[16,32], index: 0, kind: input, shape index: {}]   ;;  %s9814_s1 = inlined_call_operand.hbm [shape: f32[32,64], index: 1, kind: input, shape index: {}]   ;;  %s9815_s2 = inlined_call_operand.hbm [shape: f32[1,64], index: 2, kind: input, shape index: {}]   ;;  %s9816_s3 = inlined_call_operand.hbm [shape: f32[8,512], index: 3, kind: input, shape index: {}]   ;;  %s9817_s4 = inlined_call_operand.hbm [shape: f32[1,512], index: 4, kind: input, shape index: {}]   ;;  %s9818_s5 = inlined_call_operand.hbm [shape: f32[8,128], index: 5, kind: input, shape index: {}]   ;;  %s9819_s6 = inlined_call_operand.hbm [shape: f32[1,128], index: 6, kind: input, shape index: {}]   ;;  %s9820_s7 = inlined_call_operand.hbm [shape: f32[16,512,128], index: 7, kind: output, shape index: {}]  }
   0x1   :  { %9845 = sst [smem:[#allocation56_spill]] %s9813_s0 }
   0x2   :  { %9846 = sst [smem:[#allocation57_spill]] %s9814_s1 }
   0x3   :  { %9847 = sst [smem:[#allocation58_spill]] %s9815_s2 }
   0x4   :  { %9848 = sst [smem:[#allocation59_spill]] %s9816_s3 }
   0x5   :  { %9849 = sst [smem:[#allocation60_spill]] %s9817_s4 }
   0x6   :  { %9850 = sst [smem:[#allocation61_spill]] %s9818_s5 }
   0x7   :  { %9851 = sst [smem:[#allocation62_spill]] %s9819_s6 }
   0x8   :  { %9852 = sst [smem:[#allocation63_spill]] %s9820_s7 }
   0x9   :  { %12 = vsyncpa [#allocation3], 0 }
   0xa   :  { %14 = vsyncpa [#allocation3 + $0x1], 0 }
   0xb   :  { %15 = vsyncpa [#allocation6], 0 }
   0xc   :  { %16 = vsyncpa [#allocation9], 0 }
   0xd   :  { %18 = vsyncpa [#allocation9 + $0x1], 0 }
   0xe   :  { %19 = vsyncpa [#allocation12], 0 }
   0xf   :  { %20 = vsyncpa [#allocation4], 0 }
  0x10   :  { %22 = vsyncpa [#allocation4 + $0x1], 0  ;;  %s7920_s24 = smov 0   ;;  %s7922_s25 = smov 0  }
  0x11   :  { %s7924_s26 = smov 0   ;;  %s7926_s27 = smov 0  }
  0x12   :  { %s7928_s28 = smov 0   ;;  %s7930_s29 = smov 0  }
  0x13   :  { %s7932_s30 = smov 0   ;;  %s7934_s8 = smov 0  }
  0x14   :  { %s7936_s9 = smov 0   ;;  %s7938_s10 = smov 0  }
  0x15   :  { %s7940_s11 = smov 0   ;;  %s7942_s12 = smov 0  }
  0x16   :  { %s7944_s13 = smov 0   ;;  %s7946_s14 = smov 0  }
  0x17 LB: > { %9853 = sst [smem:[#allocation22_spill]] %s7800_s24  ;;  %s7991_s15 = sadd.s32 4294967295, %s7852_s14   ;;  %s7852_s14 = sphi %s7946_s14, %s28_s14   ;;  %s7848_s13 = sphi %s7944_s13, %s9964_s13   ;;  %s7844_s12 = sphi %s7942_s12, %s9975_s12   ;;  %s7840_s11 = sphi %s7940_s11, %s9962_s11   ;;  %s7836_s10 = sphi %s7938_s10, %s9974_s10   ;;  %s7832_s9 = sphi %s7936_s9, %s9973_s9   ;;  %s7828_s8 = sphi %s7934_s8, %s9972_s8   ;;  %s7824_s30 = sphi %s7932_s30, %s9971_s30   ;;  %s7820_s29 = sphi %s7930_s29, %s9970_s29   ;;  %s7816_s28 = sphi %s7928_s28, %s9969_s28   ;;  %s7812_s27 = sphi %s7926_s27, %s9968_s27   ;;  %s7808_s26 = sphi %s7924_s26, %s9967_s26   ;;  %s7804_s25 = sphi %s7922_s25, %s9966_s25   ;;  %s7800_s24 = sphi %s7920_s24, %s9956_s24  }
  0x18   : > { %9854 = sst [smem:[#allocation23_spill]] %s7804_s25  ;;  %p5592_p0 = scmp.ge.s32.totalorder %s7852_s14, 1 }
  0x19   : > { %9855 = sst [smem:[#allocation24_spill]] %s7820_s29  ;;  %p9822_p1 = scmp.eq.s32.totalorder %s7991_s15, 0 }
  0x1a   : > { %9856 = sst [smem:[#allocation25_spill]] %s7832_s9  ;;  %p235_p3 = scmp.lt.s32.totalorder %s7852_s14, 5 }
  0x1b   : > { %9857 = sst [smem:[#allocation26_spill]] %s7836_s10  ;;  %s7854_s17 = smov [#allocation5]  }
  0x1c   : > { %9858 = sst [smem:[#allocation27_spill]] %s7840_s11  ;;  %p7997_p4 = pnand %p5592_p0, %p235_p3 }
  0x1d   : > { %9859 = sst [smem:[#allocation28_spill]] %s7844_s12  ;;  %s247_s18 = sshll.u32 %s7854_s17, 4  ;;  %s248_s18 = int_to_ptr.vmem [resolvable:$true] %s247_s18 }
  0x1e   : > { %9860 = sst [smem:[#allocation29_spill]] %s7848_s13  ;;  %p6832_p5 = pneg %p7997_p4 }
  0x1f   : > { %s9861_s16 = scalar_select %p7997_p4, 1, 0 }
  0x20   : > { %p8005_p6 = pnand %p6832_p5, %p9822_p1  ;;  %s7855_s20 = smov [#allocation11]  }
  0x21   : > { %9862 = sst [smem:[#allocation30_spill]] %s9861_s16  ;;  %s272_s21 = sshll.u32 %s7855_s20, 4  ;;  %s8009_s21 = int_to_ptr.vmem [resolvable:$true] %s272_s21 }
  0x22   : > { %s9863_s19 = scalar_select %p8005_p6, 1, 0 }
  0x23   : > { %s9864_s1 = sld [smem:[#allocation57_spill]]  ;;  %p8019_p8 = pneg %p8005_p6 }
  0x29   : > { %s7520_s7 = scalar_lea.hbm %s9864_s1, 512 }
  0x2a   : > { %p7521_p7 = scmp.ne.s32.totalorder %s9864_s1, %s7520_s7  ;;  %p7527_p11 = scmp.lt.u32.totalorder %s7520_s7, %s9864_s1 }
  0x2c   : > { %p7523_p9 = pnand %p8019_p8, %p7521_p7 }
  0x2e   : > { %p7524_p10 = pneg %p7523_p9 }
  0x30   : > { %p7529_p12 = pnand %p7527_p11, %p7524_p10 }
  0x32   : > { %7532 = shalt.err (!%p7529_p12)
}
  0x33   : > { %s7533_s22 = scalar_lea.vmem %s248_s18, 512  ;;  %p7541_p5 = scmp.lt.s32.totalorder %s248_s18, %s248_s18 }
  0x34   : > { %p7534_p13 = scmp.ne.s32.totalorder %s248_s18, %s7533_s22  ;;  %p7542_p2 = scmp.lt.s32.totalorder %s7533_s22, %s7533_s22 }
  0x36   : > { %p7536_p0 = pnand %p7534_p13, %p8019_p8  ;;  %p7543_p1 = por %p7542_p2, %p7541_p5 }
  0x38   : > { %p7537_p3 = pneg %p7536_p0 }
  0x3a   : > { %p7544_p4 = pnand %p7543_p1, %p7537_p3 }
  0x3c   : > { %7547 = shalt.err (!%p7544_p4)
}
  0x3d   : > { %s7856_s10 = smov 128   ;;  %s7857_s11 = smov 8  }
  0x3e   : > { %6835 = dma.hbm_to_vmem [thread:$0]  (!%p8005_p6), %s9864_s1, 512, %s248_s18, [#allocation6], %s7856_s10, %s7856_s10, %s7857_s11  }
  0x3f   : > { %s9866_s5 = sld [smem:[#allocation61_spill]] }
  0x45   : > { %s7548_s4 = scalar_lea.hbm %s9866_s5, 128 }
  0x46   : > { %p7549_p7 = scmp.ne.s32.totalorder %s9866_s5, %s7548_s4  ;;  %p7555_p4 = scmp.lt.u32.totalorder %s7548_s4, %s9866_s5 }
  0x48   : > { %p7551_p1 = pnand %p7549_p7, %p8019_p8 }
  0x4a   : > { %p7552_p2 = pneg %p7551_p1 }
  0x4c   : > { %p7557_p9 = pnand %p7555_p4, %p7552_p2 }
  0x4e   : > { %7560 = shalt.err (!%p7557_p9)
}
  0x4f   : > { %s7561_s18 = scalar_lea.vmem %s8009_s21, 128  ;;  %p7569_p13 = scmp.lt.s32.totalorder %s8009_s21, %s8009_s21 }
  0x50   : > { %p7562_p10 = scmp.ne.s32.totalorder %s8009_s21, %s7561_s18  ;;  %p7570_p0 = scmp.lt.s32.totalorder %s7561_s18, %s7561_s18 }
  0x52   : > { %p7564_p11 = pnand %p7562_p10, %p8019_p8  ;;  %p7571_p3 = por %p7570_p0, %p7569_p13 }
  0x54   : > { %p7565_p12 = pneg %p7564_p11 }
  0x56   : > { %p7572_p5 = pnand %p7571_p3, %p7565_p12 }
  0x58   : > { %7575 = shalt.err (!%p7572_p5)
}
  0x59   : > { %6841 = dma.hbm_to_vmem [thread:$0]  (!%p8005_p6), %s9866_s5, 128, %s8009_s21, [#allocation12]  }
  0x5a   : > { %s37_s24 = sadd.s32 1, %s7844_s12  ;;  %p9831_p1 = scmp.eq.s32.totalorder %s7852_s14, 0 }
  0x5b   : > { %p8059_p7 = scmp.ge.s32.totalorder %s37_s24, 2  ;;  %s115_s10 = sadd.s32 1, %s7820_s29 }
  0x5c   : > { %p122_p2 = scmp.ne.s32.totalorder %s7820_s29, %s7816_s28  ;;  %p128_p9 = scmp.ne.s32.totalorder %s7816_s28, %s7812_s27 }
  0x5d   : > { %s9867_s25 = scalar_select %p8059_p7, 1, 0 }
  0x5e   : > { %s9977_s24 = smov (%p8059_p7, %s37_s24), 0  ;;  %p8073_p4 = por %p122_p2, %p9831_p1 }
  0x5f   : > { %9868 = sst [smem:[#allocation31_spill]] %s9977_s24  ;;  %s8081_s21 = ssub.s32 %s7844_s12, %s9977_s24 }
  0x60   : > { %p9830_p10 = scmp.lt.s32.totalorder %s7852_s14, 4  ;;  %p113_p11 = scmp.eq.s32.totalorder %s8081_s21, 0 }
  0x61   : > { %p9870_p12 = scmp.eq.s32.totalorder %s7991_s15, 0  ;;  %s312_s7 = sand.u32 1, %s7852_s14  }
  0x62   : > { %s314_s23 = sand.u32 1, %s7820_s29   ;;  %s6113_s18 = sshll.u32 %s7844_s12, 8 }
  0x63   : > { %p8087_p13 = por %p128_p9, %p9870_p12  ;;  %s5600_s22 = sshll.u32 %s314_s23, 4 }
  0x64   : > { %s8094_s20 = scalar_select %p113_p11, %s7820_s29, %s115_s10  }
  0x65   : > { %s9871_s16 = scalar_select %p8087_p13, 1, 0 }
  0x66   : > { %9872 = sst [smem:[#allocation32_spill]] %s8094_s20  ;;  %s9873_s3 = sld [smem:[#allocation59_spill]] }
  0x67   : > { %s316_s1 = scalar_lea.vmem [#allocation8], %s5600_s22  ;;  %p8108_p0 = pnand %p9830_p10, %p8073_p4 }
  0x68   : > { %s324_s5 = sshll.u32 %s316_s1, 4  ;;  %s8112_s24 = sshll.u32 %s314_s23, 1  ;;  %s8102_s5 = int_to_ptr.vmem [resolvable:$true] %s324_s5 }
  0x69   : > { %s9874_s10 = scalar_select %p8108_p0, 1, 0 }
  0x6a   : > { %s8116_s4 = scalar_lea.sflag [#allocation9], %s312_s7  ;;  %p9836_p5 = pneg %p8108_p0 }
  0x6c   : > { %s8100_s27 = scalar_lea.hbm %s9873_s3, %s6113_s18  ;;  %s7858_s18 = smov [#allocation7]  }
  0x6d   : > { %s8114_s0 = sshll.u32 %s7858_s18, 4  ;;  %s7576_s22 = scalar_lea.hbm %s8100_s27, 256  ;;  %s262_s0 = int_to_ptr.vmem [resolvable:$true] %s8114_s0 }
  0x6e   : > { %p7577_p3 = scmp.ne.s32.totalorder %s8100_s27, %s7576_s22  ;;  %s7581_s20 = scalar_lea.hbm %s9873_s3, 512 }
  0x6f   : > { %p7582_p9 = scmp.lt.u32.totalorder %s8100_s27, %s9873_s3  ;;  %p7583_p11 = scmp.lt.u32.totalorder %s7581_s20, %s7576_s22 }
  0x70   : > { %p7579_p2 = pnand %p9836_p5, %p7577_p3  ;;  %p7585_p10 = scmp.lt.u32.totalorder %s7576_s22, %s8100_s27 }
  0x71   : > { %p7584_p12 = por %p7583_p11, %p7582_p9 }
  0x72   : > { %p7580_p4 = pneg %p7579_p2 }
  0x73   : > { %p7586_p1 = por %p7585_p10, %p7584_p12 }
  0x75   : > { %p7587_p13 = pnand %p7586_p1, %p7580_p4 }
  0x77   : > { %7590 = shalt.err (!%p7587_p13)
}
  0x78   : > { %s7591_s7 = scalar_lea.vmem %s8102_s5, 256  ;;  %s7859_s18 = smov [#allocation8]  }
  0x79   : > { %p7592_p3 = scmp.ne.s32.totalorder %s8102_s5, %s7591_s7  ;;  %s7596_s1 = sshll.u32 %s7859_s18, 4  ;;  %s7597_s1 = int_to_ptr.vmem [resolvable:$false] %s7596_s1 }
  0x7a   : > { %s7598_s29 = scalar_lea.vmem %s7597_s1, 512  ;;  %p7599_p6 = scmp.lt.s32.totalorder %s8102_s5, %s7597_s1 }
  0x7b   : > { %p7594_p2 = pnand %p7592_p3, %p9836_p5  ;;  %p7600_p9 = scmp.lt.s32.totalorder %s7598_s29, %s7591_s7 }
  0x7d   : > { %p7595_p7 = pneg %p7594_p2  ;;  %p7601_p11 = por %p7600_p9, %p7599_p6 }
  0x7f   : > { %p7602_p10 = pnand %p7601_p11, %p7595_p7 }
  0x81   : > { %7605 = shalt.err (!%p7602_p10)
}
  0x82   : > { %6851 = dma.hbm_to_vmem [thread:$0]  (!%p8108_p0), %s8100_s27, 256, %s8102_s5, %s8116_s4  }
  0x83   : > { %s9875_s2 = sld [smem:[#allocation58_spill]] }
  0x89   : > { %s7606_s11 = scalar_lea.hbm %s9875_s2, 16 }
  0x8a   : > { %p7607_p1 = scmp.ne.s32.totalorder %s9875_s2, %s7606_s11  ;;  %p7613_p13 = scmp.lt.u32.totalorder %s7606_s11, %s9875_s2 }
  0x8c   : > { %p7609_p6 = pnand %p7607_p1, %p8019_p8 }
  0x8e   : > { %p7610_p7 = pneg %p7609_p6 }
  0x90   : > { %p7615_p4 = pnand %p7613_p13, %p7610_p7 }
  0x92   : > { %7618 = shalt.err (!%p7615_p4)
}
  0x93   : > { %s7619_s29 = scalar_lea.vmem %s262_s0, 16  ;;  %s7626_s5 = scalar_lea.vmem %s262_s0, 32 }
  0x94   : > { %p7620_p12 = scmp.ne.s32.totalorder %s262_s0, %s7619_s29  ;;  %p7627_p9 = scmp.lt.s32.totalorder %s262_s0, %s262_s0 }
  0x95   : > { %p7628_p11 = scmp.lt.s32.totalorder %s7626_s5, %s7619_s29 }
  0x96   : > { %p7622_p3 = pnand %p7620_p12, %p8019_p8 }
  0x97   : > { %p7629_p10 = por %p7628_p11, %p7627_p9 }
  0x98   : > { %p7623_p2 = pneg %p7622_p3 }
  0x9a   : > { %p7630_p5 = pnand %p7629_p10, %p7623_p2 }
  0x9c   : > { %7633 = shalt.err (!%p7630_p5)
}
  0x9d   : > { %p9876_p1 = scmp.ne.s32.totalorder %s9863_s19, 0  ;;  %s7860_s22 = smov [#allocation13]  }
  0x9e   : > { %s283_s11 = sshll.u32 %s7860_s22, 4  ;;  %s9877_s6 = sld [smem:[#allocation62_spill]]  ;;  %s284_s11 = int_to_ptr.vmem [resolvable:$true] %s283_s11 }
  0x9f   : > { %6838 = dma.hbm_to_vmem [thread:$0]  (!%p9876_p1), %s9875_s2, 16, %s262_s0, [#allocation6]  }
  0xa4   : > { %s7634_s7 = scalar_lea.hbm %s9877_s6, 16 }
  0xa5   : > { %p7635_p6 = scmp.ne.s32.totalorder %s9877_s6, %s7634_s7  ;;  %p7641_p13 = scmp.lt.u32.totalorder %s7634_s7, %s9877_s6 }
  0xa7   : > { %p7637_p5 = pnand %p7635_p6, %p8019_p8 }
  0xa9   : > { %p7638_p7 = pneg %p7637_p5 }
  0xab   : > { %p7643_p4 = pnand %p7641_p13, %p7638_p7 }
  0xad   : > { %7646 = shalt.err (!%p7643_p4)
}
  0xae   : > { %s7647_s0 = scalar_lea.vmem %s284_s11, 16  ;;  %s7654_s27 = scalar_lea.vmem %s284_s11, 32 }
  0xaf   : > { %p7648_p12 = scmp.ne.s32.totalorder %s284_s11, %s7647_s0  ;;  %p7655_p9 = scmp.lt.s32.totalorder %s284_s11, %s284_s11 }
  0xb0   : > { %p7656_p11 = scmp.lt.s32.totalorder %s7654_s27, %s7647_s0 }
  0xb1   : > { %p7650_p3 = pnand %p7648_p12, %p8019_p8 }
  0xb2   : > { %p7657_p10 = por %p7656_p11, %p7655_p9 }
  0xb3   : > { %p7651_p2 = pneg %p7650_p3 }
  0xb5   : > { %p7658_p0 = pnand %p7657_p10, %p7651_p2 }
  0xb7   : > { %7661 = shalt.err (!%p7658_p0)
}
  0xb8   : > { %s9878_s17 = sld [smem:[#allocation23_spill]]  ;;  %s9879_s22 = sld [smem:[#allocation22_spill]] }
  0xb9   : > { %6844 = dma.hbm_to_vmem [thread:$0]  (!%p9876_p1), %s9877_s6, 16, %s284_s11, [#allocation12]  }
  0xba   : > { %s5591_s19 = sadd.s32 4294967294, %s7852_s14   ;;  %s40_s23 = sadd.s32 1, %s7848_s13 }
  0xbb   : > { %p9880_p8 = scmp.ne.s32.totalorder %s9867_s25, 0  ;;  %s47_s18 = sadd.s32 1, %s7832_s9 }
  0xbc   : > { %p54_p0 = scmp.ne.s32.totalorder %s7832_s9, %s7828_s8  ;;  %p60_p5 = scmp.ne.s32.totalorder %s7828_s8, %s7824_s30 }
  0xbd   : > { %s9979_s23 = smov (!%p9880_p8, %s40_s23), %s7848_s13  ;;  %p9881_p7 = scmp.eq.s32.totalorder %s7852_s14, 0 }
  0xbe   : > { %p42_p6 = scmp.ge.s32.totalorder %s9979_s23, 2  ;;  %s211_s1 = sadd.s32 1, %s7808_s26 }
  0xbf   : > { %p8193_p13 = por %p9881_p7, %p54_p0  ;;  %p9884_p1 = scmp.eq.s32.totalorder %s7991_s15, 0 }
  0xc0   : > { %s9981_s23 = smov (%p42_p6, %s9979_s23), 0  ;;  %p221_p12 = scmp.ne.s32.totalorder %s7808_s26, %s9878_s17 }
  0xc1   : > { %9883 = sst [smem:[#allocation33_spill]] %s9981_s23  ;;  %p8202_p4 = por %p9884_p1, %p60_p5 }
  0xc2   : > { %s44_s11 = ssub.s32 %s7848_s13, %s9981_s23  ;;  %p227_p3 = scmp.ne.s32.totalorder %s9878_s17, %s9879_s22 }
  0xc3   : > { %s9885_s25 = scalar_select %p8202_p4, 1, 0 }
  0xc4   : > { %p45_p2 = scmp.eq.s32.totalorder %s44_s11, 0  ;;  %s208_s30 = sor.u32 %s8081_s21, %s44_s11 }
  0xc5   : > { %p209_p9 = scmp.eq.s32.totalorder %s208_s30, 0  ;;  %p9886_p11 = scmp.eq.s32.totalorder %s7991_s15, 3 }
  0xc6   : > { %s8220_s5 = scalar_select %p45_p2, %s7832_s9, %s47_s18  }
  0xc7   : > { %p8215_p10 = por %p9886_p11, %p221_p12  ;;  %p228_p8 = scmp.eq.s32.totalorder %s5591_s19, 3 }
  0xc8   : > { %9888 = sst [smem:[#allocation34_spill]] %s8220_s5  ;;  %s294_s27 = sand.u32 1, %s7832_s9  }
  0xc9   : > { %s9887_s29 = scalar_select %p8215_p10, 1, 0 }
  0xca   : > { %s8223_s0 = scalar_select %p209_p9, %s7808_s26, %s211_s1  }
  0xcb   : > { %s5598_s3 = sshll.u32 %s294_s27, 3  ;;  %p8226_p0 = por %p228_p8, %p227_p3 }
  0xcc   : > { %s5599_s17 = sshll.u32 %s7848_s13, 7  ;;  %s298_s21 = scalar_lea.vmem [#allocation2], %s5598_s3 }
  0xcd   : > { %s9889_s20 = scalar_select %p8226_p0, 1, 0 }
  0xce   : > { %s305_s22 = sshll.u32 %s298_s21, 4  ;;  %s9890_s2 = sld [smem:[#allocation56_spill]]  ;;  %s8236_s22 = int_to_ptr.vmem [resolvable:$true] %s305_s22 }
  0xcf   : > { %p9891_p6 = scmp.lt.s32.totalorder %s7852_s14, 4  ;;  %s6114_s18 = sshll.u32 %s7844_s12, 5 }
  0xd0   : > { %s335_s1 = scalar_lea.vmem [#allocation10], %s8112_s24  ;;  %s9893_s11 = sld [smem:[#allocation60_spill]] }
  0xd1   : > { %p8242_p5 = pnand %p9891_p6, %p8193_p13  ;;  %s8248_s3 = sshll.u32 %s335_s1, 4  ;;  %s344_s3 = int_to_ptr.vmem [resolvable:$true] %s8248_s3 }
  0xd2   : > { %s295_s13 = scalar_lea.sflag [#allocation3], %s294_s27 }
  0xd3   : > { %p7664_p1 = pneg %p8242_p5 }
  0xd4   : > { %s8234_s6 = scalar_lea.hbm %s9890_s2, %s5599_s17  ;;  %s7667_s24 = scalar_lea.hbm %s9890_s2, 256 }
  0xd5   : > { %s7662_s5 = scalar_lea.hbm %s8234_s6, 128  ;;  %p7668_p3 = scmp.lt.u32.totalorder %s8234_s6, %s9890_s2 }
  0xd6   : > { %s9894_s23 = smov %s9893_s11  ;;  %s8253_s30 = scalar_lea.hbm %s9893_s11, %s6114_s18 }
  0xd7   : > { %p7663_p7 = scmp.ne.s32.totalorder %s8234_s6, %s7662_s5  ;;  %p7669_p2 = scmp.lt.u32.totalorder %s7667_s24, %s7662_s5 }
  0xd8   : > { %p7671_p11 = scmp.lt.u32.totalorder %s7662_s5, %s8234_s6 }
  0xd9   : > { %p7665_p13 = pnand %p7664_p1, %p7663_p7  ;;  %p7670_p9 = por %p7669_p2, %p7668_p3 }
  0xdb   : > { %p7666_p12 = pneg %p7665_p13  ;;  %p7672_p8 = por %p7671_p11, %p7670_p9 }
  0xdd   : > { %p7673_p6 = pnand %p7672_p8, %p7666_p12 }
  0xdf   : > { %7676 = shalt.err (!%p7673_p6)
}
  0xe0   : > { %s7677_s27 = scalar_lea.vmem %s8236_s22, 128  ;;  %s7861_s9 = smov [#allocation2]  }
  0xe1   : > { %p7678_p7 = scmp.ne.s32.totalorder %s8236_s22, %s7677_s27  ;;  %s7682_s18 = sshll.u32 %s7861_s9, 4  ;;  %s7683_s18 = int_to_ptr.vmem [resolvable:$false] %s7682_s18 }
  0xe2   : > { %s7684_s12 = scalar_lea.vmem %s7683_s18, 256  ;;  %p7685_p10 = scmp.lt.s32.totalorder %s8236_s22, %s7683_s18 }
  0xe3   : > { %p7680_p13 = pnand %p7678_p7, %p7664_p1  ;;  %p7686_p3 = scmp.lt.s32.totalorder %s7684_s12, %s7677_s27 }
  0xe5   : > { %p7681_p0 = pneg %p7680_p13  ;;  %p7687_p2 = por %p7686_p3, %p7685_p10 }
  0xe7   : > { %p7688_p9 = pnand %p7687_p2, %p7681_p0 }
  0xe9   : > { %7691 = shalt.err (!%p7688_p9)
}
  0xea   : > { %6848 = dma.hbm_to_vmem [thread:$0]  (!%p8242_p5), %s8234_s6, 128, %s8236_s22, %s295_s13  }
  0xeb   : > { %s7692_s5 = scalar_lea.hbm %s8253_s30, 32  ;;  %p9895_p12 = scmp.ne.s32.totalorder %s9874_s10, 0 }
  0xec   : > { %p7693_p1 = scmp.ne.s32.totalorder %s8253_s30, %s7692_s5  ;;  %s7697_s19 = scalar_lea.hbm %s9894_s23, 64 }
  0xed   : > { %p9896_p11 = pneg %p9895_p12  ;;  %p7698_p0 = scmp.lt.u32.totalorder %s8253_s30, %s9894_s23 }
  0xee   : > { %p7699_p6 = scmp.lt.u32.totalorder %s7697_s19, %s7692_s5  ;;  %p7701_p13 = scmp.lt.u32.totalorder %s7692_s5, %s8253_s30 }
  0xef   : > { %p7695_p8 = pnand %p7693_p1, %p9896_p11 }
  0xf0   : > { %p7700_p7 = por %p7699_p6, %p7698_p0 }
  0xf1   : > { %p7696_p10 = pneg %p7695_p8 }
  0xf2   : > { %p7702_p3 = por %p7701_p13, %p7700_p7 }
  0xf4   : > { %p7703_p5 = pnand %p7702_p3, %p7696_p10 }
  0xf6   : > { %7706 = shalt.err (!%p7703_p5)
}
  0xf7   : > { %s7707_s6 = scalar_lea.vmem %s344_s3, 32  ;;  %p9897_p9 = pmov %p9896_p11 }
  0xf8   : > { %p7708_p2 = scmp.ne.s32.totalorder %s344_s3, %s7707_s6  ;;  %s7862_s13 = smov [#allocation10]  }
  0xf9   : > { %s7712_s22 = sshll.u32 %s7862_s13, 4  ;;  %s7713_s22 = int_to_ptr.vmem [resolvable:$false] %s7712_s22 }
  0xfa   : > { %p7710_p1 = pnand %p7708_p2, %p9897_p9  ;;  %s7714_s24 = scalar_lea.vmem %s7713_s22, 64 }
  0xfb   : > { %p7715_p8 = scmp.lt.s32.totalorder %s344_s3, %s7713_s22  ;;  %p7716_p4 = scmp.lt.s32.totalorder %s7714_s24, %s7707_s6 }
  0xfc   : > { %p7711_p11 = pneg %p7710_p1 }
  0xfd   : > { %p7717_p0 = por %p7716_p4, %p7715_p8 }
  0xff   : > { %p7718_p6 = pnand %p7717_p0, %p7711_p11 }
 0x101   : > { %7721 = shalt.err (!%p7718_p6)
}
 0x102   : > { %6854 = dma.hbm_to_vmem [thread:$0]  (!%p9895_p12), %s8253_s30, 32, %s344_s3, %s8116_s4  }
 0x103   : > { %s9898_s1 = sld [smem:[#allocation30_spill]] }
 0x109   : > { %p9899_p10 = scmp.ne.s32.totalorder %s9898_s1, 0 }
 0x10b   : > { %352 = sbr.rel (%p9899_p10) target bundleno = 1753 (0x6d9), region = 48 }
 0x112   : > { %s354_s27 = sand.u32 1, %s7828_s8   ;;  %p9900_p7 = scmp.ne.s32.totalorder %s9885_s25, 0 }
 0x113   : > { %s8304_s9 = sshll.u32 %s354_s27, 3  ;;  %s355_s18 = scalar_lea.sflag [#allocation3], %s354_s27 }
 0x114   : > { %s358_s12 = scalar_lea.vmem [#allocation2], %s8304_s9 }
 0x115   : > { %7779 = dma.done.wait (%p9900_p7), %s355_s18, 128  }
 0x116   : > { %7781 = vsyncadd (%p9900_p7), %s355_s18, 4294967168  ;;  %p9901_p4 = scmp.eq.s32.totalorder %s7991_s15, 0 }
 0x118   : > { %7783 = dma.done.wait (%p9901_p4), [#allocation6], 528   ;;  %p9902_p12 = pmov %p9901_p4 }
 0x119   : > { %s371_s10 = sand.u32 1, %s7991_s15   ;;  %s373_s4 = sand.u32 1, %s7816_s28  }
 0x11a   : > { %7785 = vsyncadd (%p9902_p12), [#allocation6], 4294966768  ;;  %s8317_s3 = sshll.u32 %s373_s4, 4  ;;  %s372_s30 = scalar_lea.sflag [#allocation9], %s371_s10 }
 0x11b   : > { %s375_s5 = scalar_lea.vmem [#allocation8], %s8317_s3  ;;  %p9903_p13 = scmp.ne.s32.totalorder %s9871_s16, 0 }
 0x11d   : > { %7787 = dma.done.wait (%p9903_p13), %s372_s30, 288  }
 0x11e   : > { %7789 = vsyncadd (%p9903_p13), %s372_s30, 4294967008  ;;  %s8324_s25 = sshll.u32 %s373_s4, 1  ;;  %p9904_p3 = pmov %p9901_p4 }
 0x11f   : > { %s384_s17 = scalar_lea.vmem [#allocation10], %s8324_s25 }
 0x120   : > { %7791 = dma.done.wait (%p9904_p3), [#allocation12], 144   ;;  %p9905_p5 = pmov %p9904_p3 }
 0x121   : > { %v7863_v0 = vmov 0.0|0.0   ;;  %vm7864_vm0 = vmmov 0   ;;  %v7865_v1 = vmov 0.0   ;;  %v438_v2 = vld [vmem:[#allocation5] sm:$0xff]  ;;  %v439_v3 = vld [vmem:[#allocation5 + $0x8] sm:$0xff]  ;;  %v440_v4 = vld [vmem:[#allocation5 + $0x10] sm:$0xff]  ;;  %v530_v25 = vlaneseq }
 0x122   : > { %7793 = vsyncadd (%p9905_p5), [#allocation12], 4294967152  ;;  %6796 = vmatprep.subr.bf16.mxu0 %v7863_v0  ;;  %6393 = vmatprep.mubr.msk.f32.mxu0 %vm7864_vm0, %v7865_v1  ;;  %v6797_v5 = vpack.c.bf16 %v439_v3, %v438_v2  ;;  %v441_v6 = vld [vmem:[#allocation5 + $0x18] sm:$0xff]  ;;  %vm454_vm1 = vcmask 261120   ;;  %v5615_v11 = vld [vmem:[#allocation7] ss:$0 sm:$0xff] }
 0x123   : > { %608 = vmatprep.mubr.f32.mxu1 %v7865_v1  ;;  %v6800_v7 = vpack.c.bf16 %v441_v6, %v440_v4  ;;  %v437_v8 = vld [vmem:[%s358_s12] sm:$0xff]  ;;  %vm540_vm2 = vcmask 64512   ;;  %s7866_s15 = smov 104   ;;  %s7867_s16 = smov 120   ;;  %v531_v26 = vshrl.u32 %v530_v25, 7  ;;  %vm1198_vm3 = vcmask 1040384  }
 0x124   : > { %6798 = vmatpush3.bf16.msra.mxu0 %v6797_v5  ;;  %v444_v9 = vld [vmem:[%s375_s5 + $0x8] sm:$0xff]  ;;  %v443_v10 = vld [vmem:[%s375_s5] sm:$0xff]  ;;  %s7868_s21 = smov 96   ;;  %s7869_s19 = smov 112   ;;  %vm1201_vm4 = vcmask 1041408   ;;  %vm1204_vm5 = vcmask 1042432  }
 0x125   : > { %6799 = vmatprep.subr.bf16.mxu0 %v7863_v0  ;;  %544 = vmatprep.subr.mxu1 %v444_v9  ;;  %s7870_s11 = smov 80   ;;  %s7871_s7 = smov 88   ;;  %v532_v27 = vsub.s32 0, %v531_v26  ;;  %v445_v28 = vld [vmem:[%s384_s17] sm:$0x3]  ;;  %v536_v29 = vsub.s32 1, %v531_v26 }
 0x126   : > { %545 = vmatpush1.msra.mxu1 %v443_v10  ;;  %s7872_s6 = smov 72   ;;  %vm1210_vm6 = vcmask 1044480   ;;  %vm1207_vm7 = vcmask 1043456   ;;  %vm1216_vm8 = vcmask 1046528   ;;  %vm1213_vm9 = vcmask 1045504   ;;  %s9927_s13 = sld [smem:[#allocation23_spill]] }
 0x127   : > { %621 = vmatprep.subr.mxu1 %v444_v9  ;;  %v8352_v30 = vrot.slane %v445_v28, %v532_v27  ;;  %v8354_v31 = vrot.slane %v445_v28, %v536_v29 }
 0x128   : > { %6801 = vmatpush3.bf16.msra.mxu0 %v6800_v7 }
 0x129   : > { %775 = vmatprep.subr.mxu0 %v444_v9 }
 0x12b   : > { %6394 = vmatmul.mubr.msk.f32.vlgmr.msra.gmra.mrb[0].mxu0 %vm454_vm1, %v437_v8 }
 0x12c   : > { %839 = vmatprep.mubr.f32.mxu0 %v7865_v1  ;;  %776 = vmatpush1.msra.mxu0 %v443_v10  ;;  %s430_s22 = sand.u32 1, %s9927_s13  }
 0x12d   : > { %929 = vmatprep.subr.mxu0 %v444_v9  ;;  %s5614_s24 = sshll.u32 %s430_s22, 11  ;;  %s5377_s27 = scalar_lea.sflag [#allocation4], %s430_s22 }
 0x12e   : > { %s8917_s1 = scalar_lea.vmem [#allocation14], %s5614_s24 }
 0x1fe   : > { %v524_v12 = vpop.f32.mrb[0].mxu0 }
 0x1ff   : > { %v525_v13 = vadd.f32 %v5615_v11, %v524_v12  ;;  %v6395_v14 = vpop.f32.mrb[1].mxu0 }
 0x201   : > { %v528_v15 = vmax.f32 %v525_v13, 0.0 }
 0x203   : > { %771 = vrot.lane.b32.xlu1 %v528_v15, %s7866_s15  ;;  %617 = vrot.lane.b32.xlu0 %v528_v15, %s7867_s16 }
 0x204   : > { %5617 = vmatmul.mubr.msk.f32.vlgmr.msra.gmra.mrb[0].mxu1 %vm540_vm2, %v528_v15 }
 0x205   : > { %622 = vmatpush1.msra.mxu1 %v443_v10  ;;  %685 = vmatprep.mubr.f32.mxu1 %v7865_v1 }
 0x206   : > { %698 = vmatprep.subr.mxu1 %v444_v9 }
 0x207   : > { %848 = vrot.lane.b32.xlu1 %v528_v15, %s7868_s21  ;;  %694 = vrot.lane.b32.xlu0 %v528_v15, %s7869_s19 }
 0x20b   : > { %1002 = vrot.lane.b32.xlu1 %v528_v15, %s7870_s11  ;;  %925 = vrot.lane.b32.xlu0 %v528_v15, %s7871_s7 }
 0x20f   : > { %1079 = vrot.lane.b32.xlu0 %v528_v15, %s7872_s6 }
 0x275   : > { %v772_v16 = vpop.permute.xlu1 %771  ;;  %v618_v17 = vpop.permute.xlu0 %617 }
 0x276   : > { %5618 = vmatmul.mubr.msk.f32.vlgmr.msra.gmra.mrb[2].mxu1 %vm540_vm2, %v618_v17  ;;  %5620 = vmatmul.mubr.msk.f32.vlgmr.msra.gmra.mrb[2].mxu0 %vm540_vm2, %v772_v16 }
 0x277   : > { %699 = vmatpush1.msra.mxu1 %v443_v10  ;;  %762 = vmatprep.mubr.f32.mxu1 %v7865_v1 }
 0x278   : > { %852 = vmatprep.subr.mxu1 %v444_v9  ;;  %930 = vmatpush1.msra.mxu0 %v443_v10 }
 0x279   : > { %v695_v18 = vpop.permute.xlu0 %694  ;;  %993 = vmatprep.mubr.f32.mxu0 %v7865_v1  ;;  %1083 = vmatprep.subr.mxu0 %v444_v9  ;;  %v849_v19 = vpop.permute.xlu1 %848 }
 0x27a   : > { %5619 = vmatmul.mubr.msk.f32.vlgmr.msra.gmra.mrb[4].mxu1 %vm540_vm2, %v695_v18 }
 0x27b   : > { %853 = vmatpush1.msra.mxu1 %v443_v10  ;;  %916 = vmatprep.mubr.f32.mxu1 %v7865_v1 }
 0x27c   : > { %1006 = vmatprep.subr.mxu1 %v444_v9 }
 0x27d   : > { %v926_v20 = vpop.permute.xlu0 %925  ;;  %v1003_v21 = vpop.permute.xlu1 %1002 }
 0x27e   : > { %5621 = vmatmul.mubr.msk.f32.vlgmr.msra.gmra.mrb[6].mxu1 %vm540_vm2, %v849_v19  ;;  %5622 = vmatmul.mubr.msk.f32.vlgmr.msra.gmra.mrb[4].mxu0 %vm540_vm2, %v926_v20 }
 0x27f   : > { %1007 = vmatpush1.msra.mxu1 %v443_v10  ;;  %1084 = vmatpush1.msra.mxu0 %v443_v10 }
 0x280   : > { %1147 = vmatprep.mubr.f32.mxu0 %v7865_v1  ;;  %1070 = vmatprep.mubr.f32.mxu1 %v7865_v1 }
 0x281   : > { %v1080_v22 = vpop.permute.xlu0 %1079 }
 0x282   : > { %5623 = vmatmul.mubr.msk.f32.vlgmr.msra.gmra.mrb[8].mxu1 %vm540_vm2, %v1003_v21  ;;  %5624 = vmatmul.mubr.msk.f32.vlgmr.msra.gmra.mrb[6].mxu0 %vm540_vm2, %v1080_v22 }
 0x2d7   : > { %v610_v23 = vpop.f32.mrb[0].mxu1 }
 0x2d8   : > { %v612_v24 = vpop.f32.mrb[1].mxu1  ;;  %v611_v32 = vadd.f32 %v610_v23, %v8352_v30 }
 0x2d9   : > { %v613_v33 = vadd.f32 %v612_v24, %v8354_v31 }
 0x2da   : > { %v8358_v34 = vmax.f32 %v611_v32, 0.0 }
 0x2db   : > { %v8360_v35 = vmax.f32 %v613_v33, 0.0 }
 0x2dc   : > { %v1708_v38 = vrot.slane %v8358_v34, 1  ;;  %v2232_v39 = vrot.slane %v8358_v34, 2  ;;  %v2756_v40 = vrot.slane %v8358_v34, 3  ;;  %v3280_v41 = vrot.slane %v8358_v34, 4 }
 0x2dd   : > { %v3804_v46 = vrot.slane %v8358_v34, 5  ;;  %v1709_v47 = vrot.slane %v8360_v35, 1  ;;  %v2233_v50 = vrot.slane %v8360_v35, 2  ;;  %v2757_v51 = vrot.slane %v8360_v35, 3 }
 0x2de   : > { %v3281_v54 = vrot.slane %v8360_v35, 4  ;;  %v3805_v55 = vrot.slane %v8360_v35, 5  ;;  %v4328_v58 = vrot.slane %v8358_v34, 6  ;;  %v4852_v59 = vrot.slane %v8358_v34, 7 }
 0x2df   : > { %v4329_v60 = vrot.slane %v8360_v35, 6 }
 0x349   : > { %v687_v36 = vpop.f32.mrb[2].mxu1  ;;  %v841_v37 = vpop.f32.mrb[2].mxu0 }
 0x34a   : > { %v688_v42 = vadd.f32 %v687_v36, %v8352_v30  ;;  %v842_v43 = vadd.f32 %v841_v37, %v8352_v30  ;;  %v689_v44 = vpop.f32.mrb[3].mxu1  ;;  %v843_v45 = vpop.f32.mrb[3].mxu0 }
 0x34b   : > { %v690_v48 = vadd.f32 %v689_v44, %v8354_v31  ;;  %v844_v49 = vadd.f32 %v843_v45, %v8354_v31 }
 0x34c   : > { %v8374_v52 = vmax.f32 %v688_v42, 0.0  ;;  %v8376_v53 = vmax.f32 %v842_v43, 0.0 }
 0x34d   : > { %v8380_v56 = vmax.f32 %v690_v48, 0.0  ;;  %v764_v57 = vpop.f32.mrb[4].mxu1  ;;  %v8385_v61 = vmax.f32 %v844_v49, 0.0 }
 0x34e   : > { %v765_v62 = vadd.f32 %v764_v57, %v8352_v30  ;;  %v766_v63 = vpop.f32.mrb[5].mxu1  ;;  %v1716_v0 = vrot.slane %v8376_v53, 6  ;;  %v1158_v1 = vrot.slane %v8374_v52, 7  ;;  %v1736_v3 = vsel %vm1198_vm3, %v1708_v38, %v8374_v52 }
 0x34f   : > { %v767_v2 = vadd.f32 %v766_v63, %v8354_v31  ;;  %v1170_v4 = vrot.slane %v8376_v53, 5  ;;  %v2236_v5 = vrot.slane %v8374_v52, 1  ;;  %v2240_v8 = vrot.slane %v8376_v53, 7 }
 0x350   : > { %v8395_v6 = vmax.f32 %v765_v62, 0.0  ;;  %v1199_v7 = vsel %vm1198_vm3, %v8358_v34, %v1158_v1  ;;  %v2760_v9 = vrot.slane %v8374_v52, 2  ;;  %v3284_v14 = vrot.slane %v8374_v52, 3 }
 0x351   : > { %v8401_v10 = vmax.f32 %v767_v2, 0.0  ;;  %v918_v11 = vpop.f32.mrb[6].mxu1  ;;  %v995_v12 = vpop.f32.mrb[4].mxu0  ;;  %v2260_v13 = vsel %vm1198_vm3, %v2232_v39, %v2236_v5  ;;  %v3292_v15 = vrot.slane %v8376_v53, 1  ;;  %v3808_v25 = vrot.slane %v8374_v52, 4 }
 0x352   : > { %v919_v16 = vadd.f32 %v918_v11, %v8352_v30  ;;  %v996_v17 = vadd.f32 %v995_v12, %v8352_v30  ;;  %v920_v18 = vpop.f32.mrb[7].mxu1  ;;  %v997_v19 = vpop.f32.mrb[5].mxu0  ;;  %v1712_v20 = vrot.slane %v8395_v6, 7  ;;  %v1164_v21 = vrot.slane %v8395_v6, 6 }
 0x353   : > { %v921_v22 = vadd.f32 %v920_v18, %v8354_v31  ;;  %v998_v23 = vadd.f32 %v997_v19, %v8354_v31  ;;  %v2262_v24 = vsel %vm1201_vm4, %v2260_v13, %v8395_v6  ;;  %v2764_v39 = vrot.slane %v8395_v6, 1 }
 0x354   : > { %v8415_v26 = vmax.f32 %v919_v16, 0.0  ;;  %v8417_v27 = vmax.f32 %v996_v17, 0.0  ;;  %v1738_v28 = vsel %vm1201_vm4, %v1736_v3, %v1712_v20  ;;  %v1202_v29 = vsel %vm1201_vm4, %v1199_v7, %v1164_v21 }
 0x355   : > { %v8421_v32 = vmax.f32 %v921_v22, 0.0  ;;  %v1072_v33 = vpop.f32.mrb[8].mxu1  ;;  %v1149_v36 = vpop.f32.mrb[6].mxu0  ;;  %v1740_v37 = vsel %vm1204_vm5, %v1738_v28, %v1716_v0  ;;  %v1205_v38 = vsel %vm1204_vm5, %v1202_v29, %v1170_v4  ;;  %v8434_v1 = vmax.f32 %v998_v23, 0.0 }
 0x356   : > { %v1073_v42 = vadd.f32 %v1072_v33, %v8352_v30  ;;  %v1150_v43 = vadd.f32 %v1149_v36, %v8352_v30  ;;  %v1074_v44 = vpop.f32.mrb[9].mxu1  ;;  %v1151_v45 = vpop.f32.mrb[7].mxu0  ;;  %v1720_v48 = vrot.slane %v8415_v26, 5  ;;  %v1724_v49 = vrot.slane %v8417_v27, 4 }
 0x357   : > { %v1075_v57 = vadd.f32 %v1074_v44, %v8354_v31  ;;  %v1152_v62 = vadd.f32 %v1151_v45, %v8354_v31  ;;  %v1176_v63 = vrot.slane %v8415_v26, 4  ;;  %v1182_v0 = vrot.slane %v8417_v27, 3 }
 0x358   : > { %v8436_v2 = vmax.f32 %v1073_v42, 0.0  ;;  %v8438_v3 = vmax.f32 %v1150_v43, 0.0  ;;  %v1742_v30 = vsel %vm1207_vm7, %v1740_v37, %v1720_v48  ;;  %v2244_v31 = vrot.slane %v8415_v26, 6 }
 0x359   : > { %v8441_v4 = vmax.f32 %v1075_v57, 0.0  ;;  %v1744_v5 = vsel %vm1210_vm6, %v1742_v30, %v1724_v49  ;;  %v1208_v7 = vsel %vm1207_vm7, %v1205_v38, %v1176_v63  ;;  %v8450_v17 = vmax.f32 %v1152_v62, 0.0  ;;  %v8475_v49 = vld [vmem:[#allocation11] sm:$0xff] }
 0x35a   : > { %v1728_v11 = vrot.slane %v8436_v2, 3  ;;  %v1732_v12 = vrot.slane %v8438_v3, 2  ;;  %v1188_v13 = vrot.slane %v8436_v2, 2  ;;  %v1194_v16 = vrot.slane %v8438_v3, 1  ;;  %6396 = vmatprep.subr.mxu1 %v8475_v49  ;;  %6446 = vmatprep.subr.mxu0 %v8475_v49 }
 0x35b   : > { %v1211_v18 = vsel %vm1210_vm6, %v1208_v7, %v1182_v0  ;;  %v2248_v19 = vrot.slane %v8417_v27, 5  ;;  %v2252_v20 = vrot.slane %v8436_v2, 4  ;;  %v2256_v23 = vrot.slane %v8438_v3, 3  ;;  %6397 = vmatpush3.msra.mxu1 %v8475_v49  ;;  %6447 = vmatpush3.msra.mxu0 %v8475_v49 }
 0x35c   : > { %v1746_v21 = vsel %vm1213_vm9, %v1744_v5, %v1728_v11  ;;  %v1214_v22 = vsel %vm1213_vm9, %v1211_v18, %v1188_v13  ;;  %v2264_v28 = vsel %vm1204_vm5, %v2262_v24, %v2240_v8  ;;  %v2768_v37 = vrot.slane %v8415_v26, 7  ;;  %6496 = vmatprep.subr.mxu1 %v8475_v49  ;;  %6546 = vmatprep.subr.mxu0 %v8475_v49 }
 0x35d   : > { %v1748_v29 = vsel %vm1216_vm8, %v1746_v21, %v1732_v12  ;;  %v1217_v33 = vsel %vm1216_vm8, %v1214_v22, %v1194_v16  ;;  %v2266_v36 = vsel %vm1207_vm7, %v2264_v28, %v2244_v31  ;;  %v2772_v42 = vrot.slane %v8417_v27, 6 }
 0x35e   : > { %1750 = vxpose.xlu0.b32.start.end [1/1] (short) %v1748_v29, 128  ;;  %1219 = vxpose.xlu1.b32.start.end [1/1] (short) %v1217_v33, 128  ;;  %v2268_v38 = vsel %vm1210_vm6, %v2266_v36, %v2248_v19  ;;  %v2776_v43 = vrot.slane %v8436_v2, 5  ;;  %v2784_v8 = vsel %vm1198_vm3, %v2756_v40, %v2760_v9  ;;  %v2780_v44 = vrot.slane %v8438_v3, 4 }
 0x35f   : > { %v2270_v24 = vsel %vm1213_vm9, %v2268_v38, %v2252_v20  ;;  %v2786_v45 = vsel %vm1201_vm4, %v2784_v8, %v2764_v39  ;;  %v3288_v48 = vrot.slane %v8395_v6, 2  ;;  %v3296_v63 = vrot.slane %v8417_v27, 7 }
 0x360   : > { %v8478_v57 = vsel %vm1216_vm8, %v2270_v24, %v2256_v23  ;;  %v2788_v62 = vsel %vm1204_vm5, %v2786_v45, %v8376_v53  ;;  %v3300_v40 = vrot.slane %v8436_v2, 6  ;;  %v3304_v39 = vrot.slane %v8438_v3, 5 }
 0x361   : > { %v2790_v9 = vsel %vm1207_vm7, %v2788_v62, %v2768_v37  ;;  %v3308_v0 = vsel %vm1198_vm3, %v3280_v41, %v3284_v14  ;;  %v3812_v30 = vrot.slane %v8395_v6, 3  ;;  %v3816_v31 = vrot.slane %v8376_v53, 2 }
 0x362   : > { %v2792_v5 = vsel %vm1210_vm6, %v2790_v9, %v2772_v42  ;;  %v3310_v7 = vsel %vm1201_vm4, %v3308_v0, %v3288_v48  ;;  %v3820_v11 = vrot.slane %v8415_v26, 1  ;;  %v3824_v12 = vrot.slane %v8436_v2, 7 }
 0x363   : > { %v2794_v41 = vsel %vm1213_vm9, %v2792_v5, %v2776_v43  ;;  %v3312_v14 = vsel %vm1204_vm5, %v3310_v7, %v3292_v15  ;;  %v3832_v13 = vsel %vm1198_vm3, %v3804_v46, %v3808_v25  ;;  %v1159_v20 = vrot.slane %v8380_v56, 7 }
 0x364   : > { %v8513_v16 = vsel %vm1216_vm8, %v2794_v41, %v2780_v44  ;;  %v3314_v18 = vsel %vm1207_vm7, %v3312_v14, %v8415_v26  ;;  %v3834_v19 = vsel %vm1201_vm4, %v3832_v13, %v3812_v30  ;;  %v3828_v21 = vrot.slane %v8438_v3, 6 }
 0x365   : > { %v3316_v15 = vsel %vm1210_vm6, %v3314_v18, %v3296_v63  ;;  %v3836_v22 = vsel %vm1204_vm5, %v3834_v19, %v3816_v31  ;;  %v1165_v23 = vrot.slane %v8401_v10, 6  ;;  %v1171_v28 = vrot.slane %v8385_v61, 5 }
 0x366   : > { %v3318_v46 = vsel %vm1213_vm9, %v3316_v15, %v3300_v40  ;;  %v3838_v25 = vsel %vm1207_vm7, %v3836_v22, %v3820_v11  ;;  %v1177_v29 = vrot.slane %v8421_v32, 4  ;;  %v1183_v37 = vrot.slane %v8434_v1, 3 }
 0x367   : > { %v8528_v33 = vsel %vm1216_vm8, %v3318_v46, %v3304_v39  ;;  %v3840_v36 = vsel %vm1210_vm6, %v3838_v25, %v8417_v27  ;;  %v1189_v38 = vrot.slane %v8441_v4, 2  ;;  %v1195_v43 = vrot.slane %v8450_v17, 1 }
 0x368   : > { %v3842_v42 = vsel %vm1213_vm9, %v3840_v36, %v3824_v12  ;;  %v1200_v8 = vsel %vm1198_vm3, %v8360_v35, %v1159_v20  ;;  %v1713_v24 = vrot.slane %v8401_v10, 7  ;;  %v1717_v48 = vrot.slane %v8385_v61, 6 }
 0x369   : > { %v8540_v44 = vsel %vm1216_vm8, %v3842_v42, %v3828_v21  ;;  %v1203_v45 = vsel %vm1201_vm4, %v1200_v8, %v1165_v23  ;;  %v1721_v62 = vrot.slane %v8421_v32, 5  ;;  %v1725_v40 = vrot.slane %v8434_v1, 4 }
 0x36a   : > { %v1206_v63 = vsel %vm1204_vm5, %v1203_v45, %v1171_v28  ;;  %v1729_v9 = vrot.slane %v8441_v4, 3  ;;  %v1737_v39 = vsel %vm1198_vm3, %v1709_v47, %v8380_v56  ;;  %v1733_v30 = vrot.slane %v8450_v17, 2 }
 0x36b   : > { %v1209_v0 = vsel %vm1207_vm7, %v1206_v63, %v1177_v29  ;;  %v1739_v5 = vsel %vm1201_vm4, %v1737_v39, %v1713_v24  ;;  %v2237_v7 = vrot.slane %v8380_v56, 1  ;;  %v2241_v41 = vrot.slane %v8385_v61, 7 }
 0x36c   : > { %v1212_v31 = vsel %vm1210_vm6, %v1209_v0, %v1183_v37  ;;  %v1741_v11 = vsel %vm1204_vm5, %v1739_v5, %v1717_v48  ;;  %v2245_v14 = vrot.slane %v8421_v32, 6  ;;  %v2249_v13 = vrot.slane %v8434_v1, 5 }
 0x36d   : > { %v1215_v12 = vsel %vm1213_vm9, %v1212_v31, %v1189_v38  ;;  %v1743_v47 = vsel %vm1207_vm7, %v1741_v11, %v1721_v62  ;;  %v2253_v18 = vrot.slane %v8441_v4, 4  ;;  %v2261_v15 = vsel %vm1198_vm3, %v2233_v50, %v2237_v7 }
 0x36e   : > { %v8565_v19 = vsel %vm1216_vm8, %v1215_v12, %v1195_v43  ;;  %v1745_v20 = vsel %vm1210_vm6, %v1743_v47, %v1725_v40  ;;  %v2761_v21 = vrot.slane %v8380_v56, 2  ;;  %v2257_v23 = vrot.slane %v8450_v17, 3 }
 0x36f   : > { %v1747_v22 = vsel %vm1213_vm9, %v1745_v20, %v1729_v9  ;;  %v2263_v46 = vsel %vm1201_vm4, %v2261_v15, %v8401_v10  ;;  %v2765_v25 = vrot.slane %v8401_v10, 1  ;;  %v2769_v36 = vrot.slane %v8421_v32, 7 }
 0x370   : > { %v8578_v28 = vsel %vm1216_vm8, %v1747_v22, %v1733_v30  ;;  %v2265_v29 = vsel %vm1204_vm5, %v2263_v46, %v2241_v41  ;;  %v2773_v50 = vrot.slane %v8434_v1, 6  ;;  %v2777_v38 = vrot.slane %v8441_v4, 5 }
 0x371   : > { %v2267_v37 = vsel %vm1207_vm7, %v2265_v29, %v2245_v14  ;;  %v2785_v42 = vsel %vm1198_vm3, %v2757_v51, %v2761_v21  ;;  %v3285_v43 = vrot.slane %v8380_v56, 3  ;;  %v2781_v24 = vrot.slane %v8450_v17, 4 }
 0x372   : > { %v2269_v8 = vsel %vm1210_vm6, %v2267_v37, %v2249_v13  ;;  %v2787_v45 = vsel %vm1201_vm4, %v2785_v42, %v2765_v25  ;;  %v3289_v48 = vrot.slane %v8401_v10, 2  ;;  %v3293_v40 = vrot.slane %v8385_v61, 1 }
 0x373   : > { %v2271_v62 = vsel %vm1213_vm9, %v2269_v8, %v2253_v18  ;;  %v2789_v63 = vsel %vm1204_vm5, %v2787_v45, %v8385_v61  ;;  %v3297_v9 = vrot.slane %v8434_v1, 7  ;;  %v3301_v0 = vrot.slane %v8441_v4, 6 }
 0x374   : > { %v8599_v51 = vsel %vm1216_vm8, %v2271_v62, %v2257_v23  ;;  %v2791_v39 = vsel %vm1207_vm7, %v2789_v63, %v2769_v36  ;;  %v3309_v30 = vsel %vm1198_vm3, %v3281_v54, %v3285_v43  ;;  %v3809_v31 = vrot.slane %v8380_v56, 4 }
 0x375   : > { %v2793_v5 = vsel %vm1210_vm6, %v2791_v39, %v2773_v50  ;;  %v3311_v7 = vsel %vm1201_vm4, %v3309_v30, %v3289_v48  ;;  %v3813_v11 = vrot.slane %v8401_v10, 3  ;;  %v3305_v14 = vrot.slane %v8450_v17, 5 }
 0x376   : > { %v2795_v41 = vsel %vm1213_vm9, %v2793_v5, %v2777_v38  ;;  %v3313_v12 = vsel %vm1204_vm5, %v3311_v7, %v3293_v40  ;;  %v3817_v47 = vrot.slane %v8385_v61, 2  ;;  %v3821_v18 = vrot.slane %v8421_v32, 1 }
 0x377   : > { %v8615_v13 = vsel %vm1216_vm8, %v2795_v41, %v2781_v24  ;;  %v3315_v54 = vsel %vm1207_vm7, %v3313_v12, %v8421_v32  ;;  %v3825_v20 = vrot.slane %v8441_v4, 7  ;;  %v3833_v21 = vsel %vm1198_vm3, %v3805_v55, %v3809_v31 }
 0x378   : > { %v3317_v15 = vsel %vm1210_vm6, %v3315_v54, %v3297_v9  ;;  %v4332_v22 = vrot.slane %v8374_v52, 5  ;;  %v4336_v23 = vrot.slane %v8395_v6, 4  ;;  %v3829_v25 = vrot.slane %v8450_v17, 6 }
 0x379   : > { %v3319_v46 = vsel %vm1213_vm9, %v3317_v15, %v3301_v0  ;;  %v3835_v29 = vsel %vm1201_vm4, %v3833_v21, %v3813_v11  ;;  %v4340_v36 = vrot.slane %v8376_v53, 3  ;;  %v4344_v38 = vrot.slane %v8415_v26, 2 }
 0x37a   : > { %v8632_v50 = vsel %vm1216_vm8, %v3319_v46, %v3305_v14  ;;  %v3837_v37 = vsel %vm1204_vm5, %v3835_v29, %v3817_v47  ;;  %v4348_v55 = vrot.slane %v8417_v27, 1  ;;  %v4356_v43 = vsel %vm1198_vm3, %v4328_v58, %v4332_v22 }
 0x37b   : > { %v3839_v42 = vsel %vm1207_vm7, %v3837_v37, %v3821_v18  ;;  %v4856_v8 = vrot.slane %v8374_v52, 6  ;;  %v4860_v24 = vrot.slane %v8395_v6, 5  ;;  %v4352_v48 = vrot.slane %v8438_v3, 7 }
 0x37c   : > { %v3841_v45 = vsel %vm1210_vm6, %v3839_v42, %v8434_v1  ;;  %v4358_v62 = vsel %vm1201_vm4, %v4356_v43, %v4336_v23  ;;  %v4864_v63 = vrot.slane %v8376_v53, 4  ;;  %v4868_v39 = vrot.slane %v8415_v26, 3 }
 0x37d   : > { %v3843_v40 = vsel %vm1213_vm9, %v3841_v45, %v3825_v20  ;;  %v4360_v9 = vsel %vm1204_vm5, %v4358_v62, %v4340_v36  ;;  %v4872_v58 = vrot.slane %v8417_v27, 2  ;;  %v4880_v0 = vsel %vm1198_vm3, %v4852_v59, %v4856_v8 }
 0x37e   : > { %v8653_v52 = vsel %vm1216_vm8, %v3843_v40, %v3829_v25  ;;  %v4362_v6 = vsel %vm1207_vm7, %v4360_v9, %v4344_v38  ;;  %v4333_v30 = vrot.slane %v8380_v56, 5  ;;  %v4876_v5 = vrot.slane %v8436_v2, 1 }
 0x37f   : > { %v4364_v53 = vsel %vm1210_vm6, %v4362_v6, %v4348_v55  ;;  %v4882_v7 = vsel %vm1201_vm4, %v4880_v0, %v4860_v24  ;;  %v4337_v26 = vrot.slane %v8401_v10, 4  ;;  %v4341_v11 = vrot.slane %v8385_v61, 3 }
 0x380   : > { %v4366_v27 = vsel %vm1213_vm9, %v4364_v53, %v8436_v2  ;;  %v4884_v31 = vsel %vm1204_vm5, %v4882_v7, %v4864_v63  ;;  %v4345_v34 = vrot.slane %v8421_v32, 2  ;;  %v4349_v14 = vrot.slane %v8434_v1, 1 }
 0x381   : > { %v8670_v59 = vsel %vm1216_vm8, %v4366_v27, %v4352_v48  ;;  %v4886_v41 = vsel %vm1207_vm7, %v4884_v31, %v4868_v39  ;;  %v4357_v12 = vsel %vm1198_vm3, %v4329_v60, %v4333_v30  ;;  %v4857_v54 = vrot.slane %v8380_v56, 6 }
 0x382   : > { %v4888_v47 = vsel %vm1210_vm6, %v4886_v41, %v4872_v58  ;;  %v4359_v2 = vsel %vm1201_vm4, %v4357_v12, %v4337_v26  ;;  %v4861_v18 = vrot.slane %v8401_v10, 5  ;;  %v4353_v15 = vrot.slane %v8450_v17, 7 }
 0x383   : > { %v4890_v20 = vsel %vm1213_vm9, %v4888_v47, %v4876_v5  ;;  %v4361_v21 = vsel %vm1204_vm5, %v4359_v2, %v4341_v11  ;;  %v4853_v22 = vrot.slane %v8360_v35, 7  ;;  %v4869_v46 = vrot.slane %v8421_v32, 3 }
 0x384   : > { %v8687_v23 = vsel %vm1216_vm8, %v4890_v20, %v8438_v3  ;;  %v4363_v60 = vsel %vm1207_vm7, %v4361_v21, %v4345_v34  ;;  %v4865_v10 = vrot.slane %v8385_v61, 4  ;;  %v4873_v25 = vrot.slane %v8434_v1, 2 }
 0x385   : > { %v4365_v56 = vsel %vm1210_vm6, %v4363_v60, %v4349_v14  ;;  %v4881_v29 = vsel %vm1198_vm3, %v4853_v22, %v4857_v54  ;;  %v4877_v35 = vrot.slane %v8441_v4, 1 }
 0x386   : > { %v4367_v36 = vsel %vm1213_vm9, %v4365_v56, %v8441_v4  ;;  %v4883_v3 = vsel %vm1201_vm4, %v4881_v29, %v4861_v18 }
 0x387   : > { %v8700_v37 = vsel %vm1216_vm8, %v4367_v36, %v4353_v15  ;;  %v4885_v32 = vsel %vm1204_vm5, %v4883_v3, %v4865_v10 }
 0x388   : > { %v4887_v38 = vsel %vm1207_vm7, %v4885_v32, %v4869_v46 }
 0x389   : > { %v4889_v61 = vsel %vm1210_vm6, %v4887_v38, %v4873_v25 }
 0x38a   : > { %v4891_v1 = vsel %vm1213_vm9, %v4889_v61, %v4877_v35 }
 0x38b   : > { %v8708_v55 = vsel %vm1216_vm8, %v4891_v1, %v8450_v17 }
 0x39b   : > { %2274 = vxpose.xlu0.b32.start.end [1/1] (short) %v8478_v57, 128  ;;  %2798 = vxpose.xlu1.b32.start.end [1/1] (short) %v8513_v16, 128 }
 0x3d8   : > { %3322 = vxpose.xlu0.b32.start.end [1/1] (short) %v8528_v33, 128  ;;  %3846 = vxpose.xlu1.b32.start.end [1/1] (short) %v8540_v44, 128 }
 0x3de   : > { %v1766_v4 = vpop.trf.xlu0  ;;  %v1235_v42 = vpop.trf.xlu1 }
 0x3df   : > { %6398 = vmatprep.mubr.msk.f32.mxu1 %vm540_vm2, %v1235_v42  ;;  %6448 = vmatprep.mubr.msk.f32.mxu0 %vm540_vm2, %v1766_v4 }
 0x3e2   : > { %v1767_v43 = vpop.trf.xlu0  ;;  %v1236_v8 = vpop.trf.xlu1 }
 0x3e3   : > { %6399 = vmatmul.mubr.msk.f32.vlgmr.msra.gmra.mrb[10].mxu1 %vm540_vm2, %v1236_v8  ;;  %6449 = vmatmul.mubr.msk.f32.vlgmr.msra.gmra.mrb[8].mxu0 %vm540_vm2, %v1767_v43 }
 0x3e4   : > { %6547 = vmatpush3.msra.mxu0 %v8475_v49  ;;  %6497 = vmatpush3.msra.mxu1 %v8475_v49 }
 0x3e5   : > { %6596 = vmatprep.subr.mxu1 %v8475_v49  ;;  %6646 = vmatprep.subr.mxu0 %v8475_v49 }
 0x3e6   : > { %v1768_v17 = vpop.trf.xlu0  ;;  %v1237_v57 = vpop.trf.xlu1 }
 0x3e7   : > { %6401 = vmatprep.mubr.msk.f32.mxu1 %vm540_vm2, %v1237_v57  ;;  %6451 = vmatprep.mubr.msk.f32.mxu0 %vm540_vm2, %v1768_v17 }
 0x3ea   : > { %v1769_v16 = vpop.trf.xlu0  ;;  %v1238_v33 = vpop.trf.xlu1 }
 0x3eb   : > { %6402 = vmatmul.mubr.msk.f32.gmra.mrb[12].mxu1 %vm540_vm2, %v1238_v33  ;;  %6452 = vmatmul.mubr.msk.f32.gmra.mrb[10].mxu0 %vm540_vm2, %v1769_v16 }
 0x3ee   : > { %v1770_v44 = vpop.trf.xlu0  ;;  %v1239_v24 = vpop.trf.xlu1 }
 0x3ef   : > { %6404 = vmatprep.mubr.msk.f32.mxu1 %vm540_vm2, %v1239_v24  ;;  %6454 = vmatprep.mubr.msk.f32.mxu0 %vm540_vm2, %v1770_v44 }
 0x3f2   : > { %v1771_v45 = vpop.trf.xlu0  ;;  %v1240_v48 = vpop.trf.xlu1 }
 0x3f3   : > { %6405 = vmatmul.mubr.msk.f32.gmra.mrb[14].mxu1 %vm540_vm2, %v1240_v48  ;;  %6455 = vmatmul.mubr.msk.f32.gmra.mrb[12].mxu0 %vm540_vm2, %v1771_v45 }
 0x3f6   : > { %v1772_v62 = vpop.trf.xlu0  ;;  %v1241_v63 = vpop.trf.xlu1 }
 0x3f7   : > { %6407 = vmatprep.mubr.msk.f32.mxu1 %vm540_vm2, %v1241_v63  ;;  %6457 = vmatprep.mubr.msk.f32.mxu0 %vm540_vm2, %v1772_v62 }
 0x3fa   : > { %v1773_v40 = vpop.trf.xlu0  ;;  %v1242_v9 = vpop.trf.xlu1 }
 0x3fb   : > { %6408 = vmatmul.mubr.msk.f32.gmra.mrb[16].mxu1 %vm540_vm2, %v1242_v9  ;;  %6458 = vmatmul.mubr.msk.f32.gmra.mrb[14].mxu0 %vm540_vm2, %v1773_v40 }
 0x3fe   : > { %v1774_v39 = vpop.trf.xlu0  ;;  %v1243_v58 = vpop.trf.xlu1 }
 0x3ff   : > { %6410 = vmatprep.mubr.msk.f32.mxu1 %vm540_vm2, %v1243_v58  ;;  %6460 = vmatprep.mubr.msk.f32.mxu0 %vm540_vm2, %v1774_v39 }
 0x402   : > { %v1775_v6 = vpop.trf.xlu0  ;;  %v1244_v0 = vpop.trf.xlu1 }
 0x403   : > { %6411 = vmatmul.mubr.msk.f32.gmra.mrb[18].mxu1 %vm540_vm2, %v1244_v0  ;;  %6461 = vmatmul.mubr.msk.f32.gmra.mrb[16].mxu0 %vm540_vm2, %v1775_v6 }
 0x406   : > { %v1776_v30 = vpop.trf.xlu0  ;;  %v1245_v53 = vpop.trf.xlu1 }
 0x407   : > { %6413 = vmatprep.mubr.msk.f32.mxu1 %vm540_vm2, %v1245_v53  ;;  %6463 = vmatprep.mubr.msk.f32.mxu0 %vm540_vm2, %v1776_v30 }
 0x40a   : > { %v1777_v5 = vpop.trf.xlu0  ;;  %v1246_v7 = vpop.trf.xlu1 }
 0x40b   : > { %6414 = vmatmul.mubr.msk.f32.gmra.mrb[20].mxu1 %vm540_vm2, %v1246_v7  ;;  %6464 = vmatmul.mubr.msk.f32.gmra.mrb[18].mxu0 %vm540_vm2, %v1777_v5 }
 0x40e   : > { %v1778_v26 = vpop.trf.xlu0  ;;  %v1247_v27 = vpop.trf.xlu1 }
 0x40f   : > { %6416 = vmatprep.mubr.msk.f32.mxu1 %vm540_vm2, %v1247_v27  ;;  %6466 = vmatprep.mubr.msk.f32.mxu0 %vm540_vm2, %v1778_v26 }
 0x412   : > { %v1779_v31 = vpop.trf.xlu0  ;;  %v1248_v11 = vpop.trf.xlu1 }
 0x413   : > { %6417 = vmatmul.mubr.msk.f32.gmra.mrb[22].mxu1 %vm540_vm2, %v1248_v11  ;;  %6467 = vmatmul.mubr.msk.f32.gmra.mrb[20].mxu0 %vm540_vm2, %v1779_v31 }
 0x416   : > { %v1780_v34 = vpop.trf.xlu0  ;;  %1251 = vxpose.xlu0.b32.start.end [1/1] (short) %v8565_v19, 128  ;;  %v1249_v41 = vpop.trf.xlu1  ;;  %1782 = vxpose.xlu1.b32.start.end [1/1] (short) %v8578_v28, 128 }
 0x417   : > { %6419 = vmatprep.mubr.msk.f32.mxu1 %vm540_vm2, %v1249_v41  ;;  %6469 = vmatprep.mubr.msk.f32.mxu0 %vm540_vm2, %v1780_v34 }
 0x41a   : > { %v1781_v14 = vpop.trf.xlu0  ;;  %v1250_v12 = vpop.trf.xlu1 }
 0x41b   : > { %6420 = vmatmul.mubr.msk.f32.gmra.mrb[24].mxu1 %vm540_vm2, %v1250_v12  ;;  %6470 = vmatmul.mubr.msk.f32.gmra.mrb[22].mxu0 %vm540_vm2, %v1781_v14 }
 0x41e   : > { %v8752_v47 = vpop.trf.xlu0  ;;  %v8754_v2 = vpop.trf.xlu1 }
 0x422   : > { %v8756_v54 = vpop.trf.xlu0  ;;  %v8758_v19 = vpop.trf.xlu1 }
 0x426   : > { %v8760_v18 = vpop.trf.xlu0  ;;  %v8762_v28 = vpop.trf.xlu1 }
 0x42a   : > { %v8764_v20 = vpop.trf.xlu0  ;;  %v8766_v15 = vpop.trf.xlu1 }
 0x42e   : > { %v8768_v21 = vpop.trf.xlu0  ;;  %v8770_v22 = vpop.trf.xlu1 }
 0x432   : > { %v8772_v60 = vpop.trf.xlu0  ;;  %v8774_v46 = vpop.trf.xlu1 }
 0x436   : > { %v8776_v56 = vpop.trf.xlu0  ;;  %v8778_v10 = vpop.trf.xlu1 }
 0x43a   : > { %v8780_v25 = vpop.trf.xlu0  ;;  %v8782_v29 = vpop.trf.xlu1 }
 0x43e   : > { %v8784_v36 = vpop.trf.xlu0  ;;  %v8786_v35 = vpop.trf.xlu1 }
 0x442   : > { %v8788_v3 = vpop.trf.xlu0  ;;  %v8790_v32 = vpop.trf.xlu1 }
 0x446   : > { %v8792_v38 = vpop.trf.xlu0  ;;  %v8794_v61 = vpop.trf.xlu1 }
 0x44a   : > { %v8796_v1 = vpop.trf.xlu0  ;;  %v8798_v4 = vpop.trf.xlu1 }
 0x44e   : > { %v8800_v42 = vpop.trf.xlu0  ;;  %v8802_v43 = vpop.trf.xlu1 }
 0x452   : > { %v8804_v8 = vpop.trf.xlu0  ;;  %v8806_v17 = vpop.trf.xlu1 }
 0x456   : > { %v8808_v57 = vpop.trf.xlu0  ;;  %2306 = vxpose.xlu0.b32.start.end [1/1] (short) %v8599_v51, 128  ;;  %v8811_v16 = vpop.trf.xlu1  ;;  %2830 = vxpose.xlu1.b32.start.end [1/1] (short) %v8615_v13, 128 }
 0x45a   : > { %v8814_v33 = vpop.trf.xlu0  ;;  %v8816_v44 = vpop.trf.xlu1 }
 0x45e   : > { %v8818_v24 = vpop.trf.xlu0  ;;  %v8820_v45 = vpop.trf.xlu1 }
 0x462   : > { %v8822_v48 = vpop.trf.xlu0  ;;  %v8824_v62 = vpop.trf.xlu1 }
 0x466   : > { %v8826_v63 = vpop.trf.xlu0  ;;  %v8828_v40 = vpop.trf.xlu1 }
 0x46a   : > { %v8830_v51 = vpop.trf.xlu0  ;;  %v8832_v9 = vpop.trf.xlu1 }
 0x46e   : > { %v8834_v13 = vpop.trf.xlu0  ;;  %v8836_v39 = vpop.trf.xlu1 }
 0x472   : > { %v8838_v58 = vpop.trf.xlu0  ;;  %v8840_v6 = vpop.trf.xlu1 }
 0x473   : > { %9906 = vst [vmem:[#allocation35_spill] sm:$0xff] %v8840_v6 }
 0x476   : > { %v8842_v0 = vpop.trf.xlu0  ;;  %v8844_v30 = vpop.trf.xlu1 }
 0x477   : > { %9907 = vst [vmem:[#allocation36_spill] sm:$0xff] %v8842_v0  ;;  %9908 = vst [vmem:[#allocation37_spill] sm:$0xff] %v8844_v30 }
 0x47a   : > { %v8846_v53 = vpop.trf.xlu0  ;;  %v8848_v5 = vpop.trf.xlu1 }
 0x47b   : > { %9909 = vst [vmem:[#allocation38_spill] sm:$0xff] %v8846_v53  ;;  %9910 = vst [vmem:[#allocation39_spill] sm:$0xff] %v8848_v5 }
 0x47e   : > { %v8850_v7 = vpop.trf.xlu0  ;;  %v8852_v26 = vpop.trf.xlu1 }
 0x47f   : > { %9911 = vst [vmem:[#allocation40_spill] sm:$0xff] %v8850_v7  ;;  %9912 = vst [vmem:[#allocation41_spill] sm:$0xff] %v8852_v26 }
 0x482   : > { %v8854_v27 = vpop.trf.xlu0  ;;  %v8856_v31 = vpop.trf.xlu1 }
 0x483   : > { %9913 = vst [vmem:[#allocation42_spill] sm:$0xff] %v8854_v27  ;;  %9914 = vst [vmem:[#allocation43_spill] sm:$0xff] %v8856_v31 }
 0x486   : > { %v8858_v11 = vpop.trf.xlu0  ;;  %v8860_v34 = vpop.trf.xlu1 }
 0x487   : > { %9915 = vst [vmem:[#allocation44_spill] sm:$0xff] %v8858_v11  ;;  %9916 = vst [vmem:[#allocation45_spill] sm:$0xff] %v8860_v34 }
 0x48a   : > { %v8862_v41 = vpop.trf.xlu0  ;;  %v8864_v14 = vpop.trf.xlu1 }
 0x48b   : > { %9917 = vst [vmem:[#allocation46_spill] sm:$0xff] %v8862_v41  ;;  %9918 = vst [vmem:[#allocation47_spill] sm:$0xff] %v8864_v14 }
 0x48e   : > { %v8866_v12 = vpop.trf.xlu0  ;;  %v8868_v53 = vpop.trf.xlu1 }
 0x48f   : > { %9919 = vst [vmem:[#allocation48_spill] sm:$0xff] %v8866_v12  ;;  %9920 = vst [vmem:[#allocation49_spill] sm:$0xff] %v8868_v53 }
 0x492   : > { %v8870_v5 = vpop.trf.xlu0  ;;  %v8872_v7 = vpop.trf.xlu1 }
 0x493   : > { %9921 = vst [vmem:[#allocation50_spill] sm:$0xff] %v8870_v5  ;;  %9922 = vst [vmem:[#allocation51_spill] sm:$0xff] %v8872_v7 }
 0x496   : > { %v8874_v26 = vpop.trf.xlu0  ;;  %3354 = vxpose.xlu0.b32.start.end [1/1] (short) %v8632_v50, 128  ;;  %v8877_v31 = vpop.trf.xlu1  ;;  %3878 = vxpose.xlu1.b32.start.end [1/1] (short) %v8653_v52, 128 }
 0x497   : > { %9923 = vst [vmem:[#allocation52_spill] sm:$0xff] %v8874_v26  ;;  %9924 = vst [vmem:[#allocation53_spill] sm:$0xff] %v8877_v31 }
 0x49a   : > { %v8880_v34 = vpop.trf.xlu0  ;;  %v8882_v41 = vpop.trf.xlu1 }
 0x49b   : > { %9925 = vst [vmem:[#allocation54_spill] sm:$0xff] %v8880_v34  ;;  %9926 = vst [vmem:[#allocation55_spill] sm:$0xff] %v8882_v41 }
 0x49e   : > { %v1267_v14 = vpop.trf.xlu0  ;;  %v1798_v12 = vpop.trf.xlu1 }
 0x49f   : > { %6422 = vmatprep.mubr.msk.f32.mxu1 %vm540_vm2, %v1267_v14  ;;  %6472 = vmatprep.mubr.msk.f32.mxu0 %vm540_vm2, %v1798_v12 }
 0x4a2   : > { %v1268_v5 = vpop.trf.xlu0  ;;  %v1799_v7 = vpop.trf.xlu1 }
 0x4a3   : > { %6423 = vmatmul.mubr.msk.f32.gmra.mrb[26].mxu1 %vm540_vm2, %v1268_v5  ;;  %6473 = vmatmul.mubr.msk.f32.gmra.mrb[24].mxu0 %vm540_vm2, %v1799_v7 }
 0x4a6   : > { %v1269_v50 = vpop.trf.xlu0  ;;  %v1800_v31 = vpop.trf.xlu1 }
 0x4a7   : > { %6425 = vmatprep.mubr.msk.f32.mxu1 %vm540_vm2, %v1269_v50  ;;  %6475 = vmatprep.mubr.msk.f32.mxu0 %vm540_vm2, %v1800_v31  ;;  %v8896_v50 = vld [vmem:[#allocation13] ss:$0 sm:$0xff] }
 0x4aa   : > { %v1270_v52 = vpop.trf.xlu0  ;;  %v1801_v41 = vpop.trf.xlu1 }
 0x4ab   : > { %6426 = vmatmul.mubr.msk.f32.gmra.mrb[28].mxu1 %vm540_vm2, %v1270_v52  ;;  %6476 = vmatmul.mubr.msk.f32.gmra.mrb[26].mxu0 %vm540_vm2, %v1801_v41 }
 0x4ae   : > { %v1271_v14 = vpop.trf.xlu0  ;;  %v1802_v12 = vpop.trf.xlu1 }
 0x4af   : > { %6428 = vmatprep.mubr.msk.f32.mxu1 %vm540_vm2, %v1271_v14  ;;  %6478 = vmatprep.mubr.msk.f32.mxu0 %vm540_vm2, %v1802_v12 }
 0x4b2   : > { %v1272_v5 = vpop.trf.xlu0  ;;  %v1803_v7 = vpop.trf.xlu1 }
 0x4b3   : > { %6429 = vmatmul.mubr.msk.f32.gmra.mrb[30].mxu1 %vm540_vm2, %v1272_v5  ;;  %6479 = vmatmul.mubr.msk.f32.gmra.mrb[28].mxu0 %vm540_vm2, %v1803_v7 }
 0x4b6   : > { %v6450_v31 = vpop.f32.mrb[8].mxu0  ;;  %v1273_v34 = vpop.trf.xlu0 }
 0x4b7   : > { %v1982_v52 = vadd.f32 %v6450_v31, %v8896_v50  ;;  %v6400_v26 = vpop.f32.mrb[10].mxu1  ;;  %v1804_v41 = vpop.trf.xlu1  ;;  %6431 = vmatprep.mubr.msk.f32.mxu1 %vm540_vm2, %v1273_v34 }
 0x4b8   : > { %v1457_v14 = vadd.f32 %v6400_v26, %v8896_v50  ;;  %v1451_v12 = vpop.f32.mrb[11].mxu1  ;;  %v1976_v53 = vpop.f32.mrb[9].mxu0  ;;  %6481 = vmatprep.mubr.msk.f32.mxu0 %vm540_vm2, %v1804_v41 }
 0x4b9   : > { %v2137_v5 = vmul.f32 1.442695, %v1982_v52  ;;  %v1452_v7 = vadd.f32 %v8896_v50, %v1451_v12  ;;  %v1977_v11 = vadd.f32 %v8896_v50, %v1976_v53 }
 0x4ba   : > { %v1612_v27 = vmul.f32 1.442695, %v1457_v14  ;;  %v1274_v30 = vpop.trf.xlu0 }
 0x4bb   : > { %7004 = vpow2.f32 %v2137_v5  ;;  %v1610_v31 = vmul.f32 1.442695, %v1452_v7  ;;  %v2135_v0 = vmul.f32 1.442695, %v1977_v11  ;;  %v1805_v6 = vpop.trf.xlu1  ;;  %6432 = vmatmul.mubr.msk.f32.gmra.mrb[32].mxu1 %vm540_vm2, %v1274_v30 }
 0x4bc   : > { %7006 = vpow2.f32 %v1612_v27  ;;  %6482 = vmatmul.mubr.msk.f32.gmra.mrb[30].mxu0 %vm540_vm2, %v1805_v6 }
 0x4bd   : > { %7008 = vpow2.f32 %v1610_v31 }
 0x4be   : > { %7010 = vpow2.f32 %v2135_v0  ;;  %v6453_v26 = vpop.f32.mrb[10].mxu0  ;;  %v1275_v34 = vpop.trf.xlu0 }
 0x4bf   : > { %v1992_v52 = vadd.f32 %v6453_v26, %v8896_v50  ;;  %v6403_v53 = vpop.f32.mrb[12].mxu1  ;;  %v1806_v41 = vpop.trf.xlu1  ;;  %6434 = vmatprep.mubr.msk.f32.mxu1 %vm540_vm2, %v1275_v34 }
 0x4c0   : > { %v1467_v11 = vadd.f32 %v6403_v53, %v8896_v50  ;;  %v1461_v14 = vpop.f32.mrb[13].mxu1  ;;  %v1986_v30 = vpop.f32.mrb[11].mxu0  ;;  %6484 = vmatprep.mubr.msk.f32.mxu0 %vm540_vm2, %v1806_v41 }
 0x4c1   : > { %v2141_v6 = vmul.f32 1.442695, %v1992_v52  ;;  %v1462_v27 = vadd.f32 %v8896_v50, %v1461_v14  ;;  %v1987_v0 = vadd.f32 %v8896_v50, %v1986_v30 }
 0x4c2   : > { %v1616_v12 = vmul.f32 1.442695, %v1467_v11  ;;  %v1276_v5 = vpop.trf.xlu0 }
 0x4c3   : > { %7012 = vpow2.f32 %v2141_v6  ;;  %v1614_v7 = vmul.f32 1.442695, %v1462_v27  ;;  %v2139_v31 = vmul.f32 1.442695, %v1987_v0  ;;  %v1807_v26 = vpop.trf.xlu1  ;;  %6435 = vmatmul.mubr.msk.f32.gmra.mrb[34].mxu1 %vm540_vm2, %v1276_v5 }
 0x4c4   : > { %7014 = vpow2.f32 %v1616_v12  ;;  %6485 = vmatmul.mubr.msk.f32.gmra.mrb[32].mxu0 %vm540_vm2, %v1807_v26 }
 0x4c5   : > { %v7005_v34 = vpop.eup %7004  ;;  %7016 = vpow2.f32 %v1614_v7 }
 0x4c6   : > { %v7007_v53 = vpop.eup %7006  ;;  %5691 = vst [vmem:[%s8917_s1 + $0x108] sm:$0xff] %v7005_v34  ;;  %7018 = vpow2.f32 %v2139_v31  ;;  %v6456_v52 = vpop.f32.mrb[12].mxu0 }
 0x4c7   : > { %v1277_v41 = vpop.trf.xlu0  ;;  %v7009_v11 = vpop.eup %7008  ;;  %1675 = vst [vmem:[%s8917_s1 + $0x8] sm:$0xff] %v7007_v53  ;;  %v2002_v14 = vadd.f32 %v6456_v52, %v8896_v50 }
 0x4c8   : > { %v6406_v30 = vpop.f32.mrb[14].mxu1  ;;  %v1808_v6 = vpop.trf.xlu1  ;;  %6437 = vmatprep.mubr.msk.f32.mxu1 %vm540_vm2, %v1277_v41  ;;  %1674 = vst [vmem:[%s8917_s1] sm:$0xff] %v7009_v11 }
 0x4c9   : > { %v7011_v27 = vpop.eup %7010  ;;  %v1477_v0 = vadd.f32 %v6406_v30, %v8896_v50  ;;  %v1471_v12 = vpop.f32.mrb[15].mxu1  ;;  %6487 = vmatprep.mubr.msk.f32.mxu0 %vm540_vm2, %v1808_v6  ;;  %v2145_v7 = vmul.f32 1.442695, %v2002_v14 }
 0x4ca   : > { %v1996_v5 = vpop.f32.mrb[13].mxu0  ;;  %5690 = vst [vmem:[%s8917_s1 + $0x100] sm:$0xff] %v7011_v27  ;;  %v1472_v31 = vadd.f32 %v8896_v50, %v1471_v12 }
 0x4cb   : > { %v1997_v26 = vadd.f32 %v8896_v50, %v1996_v5  ;;  %v1620_v34 = vmul.f32 1.442695, %v1477_v0  ;;  %v1278_v53 = vpop.trf.xlu0  ;;  %7020 = vpow2.f32 %v2145_v7 }
 0x4cc   : > { %v1618_v52 = vmul.f32 1.442695, %v1472_v31  ;;  %v1809_v11 = vpop.trf.xlu1  ;;  %6438 = vmatmul.mubr.msk.f32.gmra.mrb[36].mxu1 %vm540_vm2, %v1278_v53 }
 0x4cd   : > { %v2143_v41 = vmul.f32 1.442695, %v1997_v26  ;;  %7022 = vpow2.f32 %v1620_v34  ;;  %6488 = vmatmul.mubr.msk.f32.gmra.mrb[34].mxu0 %vm540_vm2, %v1809_v11  ;;  %v7013_v30 = vpop.eup %7012 }
 0x4ce   : > { %7024 = vpow2.f32 %v1618_v52  ;;  %v7015_v14 = vpop.eup %7014  ;;  %5693 = vst [vmem:[%s8917_s1 + $0x118] sm:$0xff] %v7013_v30  ;;  %v6459_v6 = vpop.f32.mrb[14].mxu0 }
 0x4cf   : > { %7026 = vpow2.f32 %v2143_v41  ;;  %v1279_v27 = vpop.trf.xlu0  ;;  %v7017_v0 = vpop.eup %7016  ;;  %1677 = vst [vmem:[%s8917_s1 + $0x18] sm:$0xff] %v7015_v14  ;;  %v2012_v12 = vadd.f32 %v6459_v6, %v8896_v50 }
 0x4d0   : > { %v6409_v5 = vpop.f32.mrb[16].mxu1  ;;  %v1810_v7 = vpop.trf.xlu1  ;;  %6440 = vmatprep.mubr.msk.f32.mxu1 %vm540_vm2, %v1279_v27  ;;  %1676 = vst [vmem:[%s8917_s1 + $0x10] sm:$0xff] %v7017_v0 }
 0x4d1   : > { %v7019_v31 = vpop.eup %7018  ;;  %v1487_v26 = vadd.f32 %v6409_v5, %v8896_v50  ;;  %v1481_v34 = vpop.f32.mrb[17].mxu1  ;;  %6490 = vmatprep.mubr.msk.f32.mxu0 %vm540_vm2, %v1810_v7  ;;  %v2149_v52 = vmul.f32 1.442695, %v2012_v12 }
 0x4d2   : > { %v2006_v53 = vpop.f32.mrb[15].mxu0  ;;  %5692 = vst [vmem:[%s8917_s1 + $0x110] sm:$0xff] %v7019_v31  ;;  %v1482_v41 = vadd.f32 %v8896_v50, %v1481_v34 }
 0x4d3   : > { %v2007_v11 = vadd.f32 %v8896_v50, %v2006_v53  ;;  %v1624_v30 = vmul.f32 1.442695, %v1487_v26  ;;  %v1280_v14 = vpop.trf.xlu0  ;;  %7028 = vpow2.f32 %v2149_v52 }
 0x4d4   : > { %v1622_v6 = vmul.f32 1.442695, %v1482_v41  ;;  %v1811_v0 = vpop.trf.xlu1  ;;  %6441 = vmatmul.mubr.msk.f32.gmra.mrb[38].mxu1 %vm540_vm2, %v1280_v14 }
 0x4d5   : > { %v2147_v27 = vmul.f32 1.442695, %v2007_v11  ;;  %7030 = vpow2.f32 %v1624_v30  ;;  %6491 = vmatmul.mubr.msk.f32.gmra.mrb[36].mxu0 %vm540_vm2, %v1811_v0  ;;  %v7021_v5 = vpop.eup %7020 }
 0x4d6   : > { %7032 = vpow2.f32 %v1622_v6  ;;  %5695 = vst [vmem:[%s8917_s1 + $0x128] sm:$0xff] %v7021_v5  ;;  %v6462_v7 = vpop.f32.mrb[16].mxu0  ;;  %v6412_v53 = vpop.f32.mrb[18].mxu1 }
 0x4d7   : > { %v7023_v12 = vpop.eup %7022  ;;  %7034 = vpow2.f32 %v2147_v27  ;;  %v1281_v31 = vpop.trf.xlu0  ;;  %4370 = vxpose.xlu0.b32.start.end [1/1] (short) %v8670_v59, 128  ;;  %v2022_v34 = vadd.f32 %v6462_v7, %v8896_v50  ;;  %v1497_v11 = vadd.f32 %v6412_v53, %v8896_v50 }
 0x4d8   : > { %v7025_v26 = vpop.eup %7024  ;;  %1679 = vst [vmem:[%s8917_s1 + $0x28] sm:$0xff] %v7023_v12  ;;  %v1812_v52 = vpop.trf.xlu1  ;;  %4894 = vxpose.xlu1.b32.start.end [1/1] (short) %v8687_v23, 128  ;;  %6443 = vmatprep.mubr.msk.f32.mxu1 %vm540_vm2, %v1281_v31 }
 0x4d9   : > { %v7027_v41 = vpop.eup %7026  ;;  %1678 = vst [vmem:[%s8917_s1 + $0x20] sm:$0xff] %v7025_v26  ;;  %v1491_v30 = vpop.f32.mrb[19].mxu1  ;;  %6493 = vmatprep.mubr.msk.f32.mxu0 %vm540_vm2, %v1812_v52  ;;  %v2153_v59 = vmul.f32 1.442695, %v2022_v34  ;;  %v1628_v0 = vmul.f32 1.442695, %v1497_v11 }
 0x4da   : > { %v2016_v14 = vpop.f32.mrb[17].mxu0  ;;  %5694 = vst [vmem:[%s8917_s1 + $0x120] sm:$0xff] %v7027_v41  ;;  %v1492_v6 = vadd.f32 %v8896_v50, %v1491_v30 }
 0x4db   : > { %v2017_v27 = vadd.f32 %v8896_v50, %v2016_v14  ;;  %v1282_v5 = vpop.trf.xlu0  ;;  %7036 = vpow2.f32 %v2153_v59 }
 0x4dc   : > { %v1626_v23 = vmul.f32 1.442695, %v1492_v6  ;;  %v1813_v7 = vpop.trf.xlu1  ;;  %6444 = vmatmul.mubr.msk.f32.gmra.mrb[40].mxu1 %vm540_vm2, %v1282_v5  ;;  %7038 = vpow2.f32 %v1628_v0 }
 0x4dd   : > { %v2151_v12 = vmul.f32 1.442695, %v2017_v27  ;;  %6494 = vmatmul.mubr.msk.f32.gmra.mrb[38].mxu0 %vm540_vm2, %v1813_v7  ;;  %6498 = vmatprep.mubr.msk.f32.mxu1 %vm540_vm2, %v8752_v47  ;;  %v7029_v31 = vpop.eup %7028 }
 0x4de   : > { %7040 = vpow2.f32 %v1626_v23  ;;  %6548 = vmatprep.mubr.msk.f32.mxu0 %vm540_vm2, %v8754_v2  ;;  %5697 = vst [vmem:[%s8917_s1 + $0x138] sm:$0xff] %v7029_v31  ;;  %v6465_v34 = vpop.f32.mrb[18].mxu0  ;;  %v6415_v11 = vpop.f32.mrb[20].mxu1 }
 0x4df   : > { %v7031_v26 = vpop.eup %7030  ;;  %7042 = vpow2.f32 %v2151_v12  ;;  %v8962_v53 = vpop.trf.xlu0  ;;  %v2032_v41 = vadd.f32 %v6465_v34, %v8896_v50  ;;  %v1507_v2 = vadd.f32 %v6415_v11, %v8896_v50 }
 0x4e0   : > { %v7033_v52 = vpop.eup %7032  ;;  %1681 = vst [vmem:[%s8917_s1 + $0x38] sm:$0xff] %v7031_v26  ;;  %v8966_v30 = vpop.trf.xlu1  ;;  %6499 = vmatmul.mubr.msk.f32.vlgmr.msra.gmra.mrb[42].mxu1 %vm540_vm2, %v8756_v54 }
 0x4e1   : > { %v7035_v47 = vpop.eup %7034  ;;  %1680 = vst [vmem:[%s8917_s1 + $0x30] sm:$0xff] %v7033_v52  ;;  %v1501_v14 = vpop.f32.mrb[21].mxu1  ;;  %6549 = vmatmul.mubr.msk.f32.vlgmr.msra.gmra.mrb[40].mxu0 %vm540_vm2, %v8758_v19  ;;  %6501 = vmatprep.mubr.msk.f32.mxu1 %vm540_vm2, %v8760_v18  ;;  %v2157_v6 = vmul.f32 1.442695, %v2032_v41  ;;  %v1632_v54 = vmul.f32 1.442695, %v1507_v2 }
 0x4e2   : > { %v2026_v59 = vpop.f32.mrb[19].mxu0  ;;  %5696 = vst [vmem:[%s8917_s1 + $0x130] sm:$0xff] %v7035_v47  ;;  %v1502_v27 = vadd.f32 %v8896_v50, %v1501_v14  ;;  %6551 = vmatprep.mubr.msk.f32.mxu0 %vm540_vm2, %v8762_v28  ;;  %6597 = vmatpush3.msra.mxu1 %v8475_v49  ;;  %v8985_v19 = vld [vmem:[#allocation11] sm:$0xff] }
 0x4e3   : > { %v2027_v0 = vadd.f32 %v8896_v50, %v2026_v59  ;;  %v8982_v5 = vpop.trf.xlu0  ;;  %6647 = vmatpush3.msra.mxu0 %v8475_v49  ;;  %6696 = vmatprep.subr.mxu1 %v8985_v19  ;;  %7044 = vpow2.f32 %v2157_v6 }
 0x4e4   : > { %v1630_v18 = vmul.f32 1.442695, %v1502_v27  ;;  %v8988_v12 = vpop.trf.xlu1  ;;  %6502 = vmatmul.mubr.msk.f32.gmra.mrb[44].mxu1 %vm540_vm2, %v8764_v20  ;;  %6746 = vmatprep.subr.mxu0 %v8985_v19  ;;  %7046 = vpow2.f32 %v1632_v54 }
 0x4e5   : > { %v2155_v23 = vmul.f32 1.442695, %v2027_v0  ;;  %6552 = vmatmul.mubr.msk.f32.gmra.mrb[42].mxu0 %vm540_vm2, %v8766_v15  ;;  %6504 = vmatprep.mubr.msk.f32.mxu1 %vm540_vm2, %v8768_v21  ;;  %v7037_v49 = vpop.eup %7036 }
 0x4e6   : > { %7048 = vpow2.f32 %v1630_v18  ;;  %6554 = vmatprep.mubr.msk.f32.mxu0 %vm540_vm2, %v8770_v22  ;;  %v7039_v28 = vpop.eup %7038  ;;  %5699 = vst [vmem:[%s8917_s1 + $0x148] sm:$0xff] %v7037_v49  ;;  %v6468_v20 = vpop.f32.mrb[20].mxu0 }
 0x4e7   : > { %7050 = vpow2.f32 %v2155_v23  ;;  %v9000_v7 = vpop.trf.xlu0  ;;  %1683 = vst [vmem:[%s8917_s1 + $0x48] sm:$0xff] %v7039_v28  ;;  %v2042_v15 = vadd.f32 %v6468_v20, %v8896_v50  ;;  %v6418_v26 = vpop.f32.mrb[22].mxu1 }
 0x4e8   : > { %v7041_v31 = vpop.eup %7040  ;;  %v9004_v34 = vpop.trf.xlu1  ;;  %6505 = vmatmul.mubr.msk.f32.gmra.mrb[46].mxu1 %vm540_vm2, %v8772_v60  ;;  %v1517_v22 = vadd.f32 %v6418_v26, %v8896_v50 }
 0x4e9   : > { %v7043_v21 = vpop.eup %7042  ;;  %1682 = vst [vmem:[%s8917_s1 + $0x40] sm:$0xff] %v7041_v31  ;;  %v1511_v52 = vpop.f32.mrb[23].mxu1  ;;  %6555 = vmatmul.mubr.msk.f32.gmra.mrb[44].mxu0 %vm540_vm2, %v8774_v46  ;;  %6507 = vmatprep.mubr.msk.f32.mxu1 %vm540_vm2, %v8776_v56  ;;  %v2161_v11 = vmul.f32 1.442695, %v2042_v15 }
 0x4ea   : > { %v2036_v41 = vpop.f32.mrb[21].mxu0  ;;  %5698 = vst [vmem:[%s8917_s1 + $0x140] sm:$0xff] %v7043_v21  ;;  %v1512_v47 = vadd.f32 %v8896_v50, %v1511_v52  ;;  %6557 = vmatprep.mubr.msk.f32.mxu0 %vm540_vm2, %v8778_v10  ;;  %v1636_v60 = vmul.f32 1.442695, %v1517_v22 }
 0x4eb   : > { %v2037_v2 = vadd.f32 %v8896_v50, %v2036_v41  ;;  %v9019_v14 = vpop.trf.xlu0  ;;  %7052 = vpow2.f32 %v2161_v11 }
 0x4ec   : > { %v1634_v59 = vmul.f32 1.442695, %v1512_v47  ;;  %v9021_v6 = vpop.trf.xlu1  ;;  %6508 = vmatmul.mubr.msk.f32.gmra.mrb[48].mxu1 %vm540_vm2, %v8780_v25  ;;  %7054 = vpow2.f32 %v1636_v60 }
 0x4ed   : > { %v2159_v46 = vmul.f32 1.442695, %v2037_v2  ;;  %6558 = vmatmul.mubr.msk.f32.gmra.mrb[46].mxu0 %vm540_vm2, %v8782_v29  ;;  %6510 = vmatprep.mubr.msk.f32.mxu1 %vm540_vm2, %v8784_v36  ;;  %v7045_v56 = vpop.eup %7044 }
 0x4ee   : > { %7056 = vpow2.f32 %v1634_v59  ;;  %6560 = vmatprep.mubr.msk.f32.mxu0 %vm540_vm2, %v8786_v35  ;;  %v7047_v10 = vpop.eup %7046  ;;  %5701 = vst [vmem:[%s8917_s1 + $0x158] sm:$0xff] %v7045_v56  ;;  %v6471_v27 = vpop.f32.mrb[22].mxu0 }
 0x4ef   : > { %7058 = vpow2.f32 %v2159_v46  ;;  %v9032_v0 = vpop.trf.xlu0  ;;  %1685 = vst [vmem:[%s8917_s1 + $0x58] sm:$0xff] %v7047_v10  ;;  %v2052_v29 = vadd.f32 %v6471_v27, %v8896_v50  ;;  %v6421_v54 = vpop.f32.mrb[24].mxu1  ;;  %v9935_v27 = vld [vmem:[#allocation42_spill] sm:$0xff] }
 0x4f0   : > { %v7049_v25 = vpop.eup %7048  ;;  %v9036_v18 = vpop.trf.xlu1  ;;  %6511 = vmatmul.mubr.msk.f32.gmra.mrb[50].mxu1 %vm540_vm2, %v8788_v3  ;;  %v1527_v35 = vadd.f32 %v6421_v54, %v8896_v50 }
 0x4f1   : > { %v7051_v36 = vpop.eup %7050  ;;  %1684 = vst [vmem:[%s8917_s1 + $0x50] sm:$0xff] %v7049_v25  ;;  %v1521_v23 = vpop.f32.mrb[25].mxu1  ;;  %6561 = vmatmul.mubr.msk.f32.gmra.mrb[48].mxu0 %vm540_vm2, %v8790_v32  ;;  %6513 = vmatprep.mubr.msk.f32.mxu1 %vm540_vm2, %v8792_v38  ;;  %v2165_v28 = vmul.f32 1.442695, %v2052_v29  ;;  %v9937_v25 = vld [vmem:[#allocation44_spill] sm:$0xff]  ;;  %v9938_v29 = vld [vmem:[#allocation45_spill] sm:$0xff] }
 0x4f2   : > { %v2046_v49 = vpop.f32.mrb[23].mxu0  ;;  %5700 = vst [vmem:[%s8917_s1 + $0x150] sm:$0xff] %v7051_v36  ;;  %v1522_v20 = vadd.f32 %v8896_v50, %v1521_v23  ;;  %6563 = vmatprep.mubr.msk.f32.mxu0 %vm540_vm2, %v8794_v61  ;;  %v1640_v3 = vmul.f32 1.442695, %v1527_v35  ;;  %v9939_v36 = vld [vmem:[#allocation46_spill] sm:$0xff]  ;;  %v9940_v35 = vld [vmem:[#allocation47_spill] sm:$0xff] }
 0x4f3   : > { %v2047_v31 = vadd.f32 %v8896_v50, %v2046_v49  ;;  %v2327_v15 = vpop.trf.xlu0  ;;  %7060 = vpow2.f32 %v2165_v28  ;;  %v9941_v23 = vld [vmem:[#allocation48_spill] sm:$0xff]  ;;  %v9942_v49 = vld [vmem:[#allocation49_spill] sm:$0xff] }
 0x4f4   : > { %v1638_v26 = vmul.f32 1.442695, %v1522_v20  ;;  %v2851_v32 = vpop.trf.xlu1  ;;  %6514 = vmatmul.mubr.msk.f32.gmra.mrb[52].mxu1 %vm540_vm2, %v8796_v1  ;;  %7062 = vpow2.f32 %v1640_v3  ;;  %v9944_v3 = vld [vmem:[#allocation51_spill] sm:$0xff] }
 0x4f5   : > { %v2163_v21 = vmul.f32 1.442695, %v2047_v31  ;;  %6564 = vmatmul.mubr.msk.f32.gmra.mrb[50].mxu0 %vm540_vm2, %v8798_v4  ;;  %6516 = vmatprep.mubr.msk.f32.mxu1 %vm540_vm2, %v8800_v42  ;;  %v7053_v38 = vpop.eup %7052  ;;  %v9943_v31 = vld [vmem:[#allocation50_spill] sm:$0xff] }
 0x4f6   : > { %7064 = vpow2.f32 %v1638_v26  ;;  %6566 = vmatprep.mubr.msk.f32.mxu0 %vm540_vm2, %v8802_v43  ;;  %v7055_v61 = vpop.eup %7054  ;;  %5703 = vst [vmem:[%s8917_s1 + $0x168] sm:$0xff] %v7053_v38  ;;  %v9946_v26 = vld [vmem:[#allocation53_spill] sm:$0xff]  ;;  %v9947_v38 = vld [vmem:[#allocation54_spill] sm:$0xff] }
 0x4f7   : > { %7066 = vpow2.f32 %v2163_v21  ;;  %v2328_v22 = vpop.trf.xlu0  ;;  %1687 = vst [vmem:[%s8917_s1 + $0x68] sm:$0xff] %v7055_v61  ;;  %v9948_v61 = vld [vmem:[#allocation55_spill] sm:$0xff] }
 0x4f8   : > { %v7057_v52 = vpop.eup %7056  ;;  %v2852_v1 = vpop.trf.xlu1  ;;  %6517 = vmatmul.mubr.msk.f32.gmra.mrb[54].mxu1 %vm540_vm2, %v8804_v8 }
 0x4f9   : > { %v7059_v4 = vpop.eup %7058  ;;  %1686 = vst [vmem:[%s8917_s1 + $0x60] sm:$0xff] %v7057_v52  ;;  %6567 = vmatmul.mubr.msk.f32.gmra.mrb[52].mxu0 %vm540_vm2, %v8806_v17  ;;  %6519 = vmatprep.mubr.msk.f32.mxu1 %vm540_vm2, %v8808_v57 }
 0x4fa   : > { %5702 = vst [vmem:[%s8917_s1 + $0x160] sm:$0xff] %v7059_v4  ;;  %6569 = vmatprep.mubr.msk.f32.mxu0 %vm540_vm2, %v8811_v16 }
 0x4fb   : > { %v2329_v42 = vpop.trf.xlu0 }
 0x4fc   : > { %v2853_v43 = vpop.trf.xlu1  ;;  %6520 = vmatmul.mubr.msk.f32.gmra.mrb[56].mxu1 %vm540_vm2, %v8814_v33 }
 0x4fd   : > { %6570 = vmatmul.mubr.msk.f32.gmra.mrb[54].mxu0 %vm540_vm2, %v8816_v44  ;;  %6522 = vmatprep.mubr.msk.f32.mxu1 %vm540_vm2, %v8962_v53  ;;  %v7061_v8 = vpop.eup %7060 }
 0x4fe   : > { %6572 = vmatprep.mubr.msk.f32.mxu0 %vm540_vm2, %v8966_v30  ;;  %v7063_v17 = vpop.eup %7062  ;;  %5705 = vst [vmem:[%s8917_s1 + $0x178] sm:$0xff] %v7061_v8 }
 0x4ff   : > { %v2330_v57 = vpop.trf.xlu0  ;;  %1689 = vst [vmem:[%s8917_s1 + $0x78] sm:$0xff] %v7063_v17 }
 0x500   : > { %v7065_v16 = vpop.eup %7064  ;;  %v2854_v41 = vpop.trf.xlu1  ;;  %6523 = vmatmul.mubr.msk.f32.gmra.mrb[58].mxu1 %vm540_vm2, %v8982_v5 }
 0x501   : > { %v7067_v33 = vpop.eup %7066  ;;  %1688 = vst [vmem:[%s8917_s1 + $0x70] sm:$0xff] %v7065_v16  ;;  %6573 = vmatmul.mubr.msk.f32.gmra.mrb[56].mxu0 %vm540_vm2, %v8988_v12  ;;  %6525 = vmatprep.mubr.msk.f32.mxu1 %vm540_vm2, %v9000_v7 }
 0x502   : > { %5704 = vst [vmem:[%s8917_s1 + $0x170] sm:$0xff] %v7067_v33  ;;  %6575 = vmatprep.mubr.msk.f32.mxu0 %vm540_vm2, %v9004_v34 }
 0x503   : > { %v2331_v44 = vpop.trf.xlu0 }
 0x504   : > { %v2855_v53 = vpop.trf.xlu1  ;;  %6526 = vmatmul.mubr.msk.f32.gmra.mrb[60].mxu1 %vm540_vm2, %v9019_v14 }
 0x505   : > { %6576 = vmatmul.mubr.msk.f32.gmra.mrb[58].mxu0 %vm540_vm2, %v9021_v6  ;;  %6528 = vmatprep.mubr.msk.f32.mxu1 %vm540_vm2, %v9032_v0  ;;  %v9933_v6 = vld [vmem:[#allocation40_spill] sm:$0xff]  ;;  %v9936_v0 = vld [vmem:[#allocation43_spill] sm:$0xff] }
 0x506   : > { %6578 = vmatprep.mubr.msk.f32.mxu0 %vm540_vm2, %v9036_v18 }
 0x507   : > { %v2332_v30 = vpop.trf.xlu0 }
 0x508   : > { %v2856_v5 = vpop.trf.xlu1  ;;  %6529 = vmatmul.mubr.msk.f32.gmra.mrb[62].mxu1 %vm540_vm2, %v2327_v15  ;;  %v9945_v15 = vld [vmem:[#allocation52_spill] sm:$0xff] }
 0x509   : > { %6579 = vmatmul.mubr.msk.f32.gmra.mrb[60].mxu0 %vm540_vm2, %v2851_v32  ;;  %6531 = vmatprep.mubr.msk.f32.mxu1 %vm540_vm2, %v2328_v22 }
 0x50a   : > { %6581 = vmatprep.mubr.msk.f32.mxu0 %vm540_vm2, %v2852_v1 }
 0x50b   : > { %v2333_v12 = vpop.trf.xlu0 }
 0x50c   : > { %v2857_v7 = vpop.trf.xlu1  ;;  %6532 = vmatmul.mubr.msk.f32.gmra.mrb[64].mxu1 %vm540_vm2, %v2329_v42 }
 0x50d   : > { %6582 = vmatmul.mubr.msk.f32.gmra.mrb[62].mxu0 %vm540_vm2, %v2853_v43  ;;  %6534 = vmatprep.mubr.msk.f32.mxu1 %vm540_vm2, %v2330_v57 }
 0x50e   : > { %6584 = vmatprep.mubr.msk.f32.mxu0 %vm540_vm2, %v2854_v41 }
 0x50f   : > { %v2334_v34 = vpop.trf.xlu0 }
 0x510   : > { %v2858_v11 = vpop.trf.xlu1  ;;  %6535 = vmatmul.mubr.msk.f32.gmra.mrb[66].mxu1 %vm540_vm2, %v2331_v44 }
 0x511   : > { %6585 = vmatmul.mubr.msk.f32.gmra.mrb[64].mxu0 %vm540_vm2, %v2855_v53  ;;  %6537 = vmatprep.mubr.msk.f32.mxu1 %vm540_vm2, %v2332_v30 }
 0x512   : > { %6587 = vmatprep.mubr.msk.f32.mxu0 %vm540_vm2, %v2856_v5 }
 0x513   : > { %v2335_v47 = vpop.trf.xlu0 }
 0x514   : > { %v2859_v2 = vpop.trf.xlu1  ;;  %6538 = vmatmul.mubr.msk.f32.gmra.mrb[68].mxu1 %vm540_vm2, %v2333_v12 }
 0x515   : > { %6588 = vmatmul.mubr.msk.f32.gmra.mrb[66].mxu0 %vm540_vm2, %v2857_v7  ;;  %6540 = vmatprep.mubr.msk.f32.mxu1 %vm540_vm2, %v2334_v34 }
 0x516   : > { %6590 = vmatprep.mubr.msk.f32.mxu0 %vm540_vm2, %v2858_v11 }
 0x517   : > { %v2336_v60 = vpop.trf.xlu0  ;;  %4402 = vxpose.xlu0.b32.start.end [1/1] (short) %v8700_v37, 128 }
 0x518   : > { %v2860_v14 = vpop.trf.xlu1  ;;  %4926 = vxpose.xlu1.b32.start.end [1/1] (short) %v8708_v55, 128  ;;  %6541 = vmatmul.mubr.msk.f32.gmra.mrb[70].mxu1 %vm540_vm2, %v2335_v47 }
 0x519   : > { %6591 = vmatmul.mubr.msk.f32.gmra.mrb[68].mxu0 %vm540_vm2, %v2859_v2  ;;  %6543 = vmatprep.mubr.msk.f32.mxu1 %vm540_vm2, %v2336_v60 }
 0x51a   : > { %6593 = vmatprep.mubr.msk.f32.mxu0 %vm540_vm2, %v2860_v14 }
 0x51b   : > { %v2337_v59 = vpop.trf.xlu0 }
 0x51c   : > { %v2861_v46 = vpop.trf.xlu1  ;;  %6544 = vmatmul.mubr.msk.f32.gmra.mrb[72].mxu1 %vm540_vm2, %v2337_v59 }
 0x51d   : > { %6594 = vmatmul.mubr.msk.f32.gmra.mrb[70].mxu0 %vm540_vm2, %v2861_v46  ;;  %6598 = vmatprep.mubr.msk.f32.mxu1 %vm540_vm2, %v8818_v24 }
 0x51e   : > { %6648 = vmatprep.mubr.msk.f32.mxu0 %vm540_vm2, %v8820_v45 }
 0x51f   : > { %v3370_v37 = vpop.trf.xlu0 }
 0x520   : > { %v3894_v55 = vpop.trf.xlu1  ;;  %6599 = vmatmul.mubr.msk.f32.vlgmr.msra.gmra.mrb[74].mxu1 %vm540_vm2, %v8822_v48 }
 0x521   : > { %6649 = vmatmul.mubr.msk.f32.vlgmr.msra.gmra.mrb[72].mxu0 %vm540_vm2, %v8824_v62  ;;  %6601 = vmatprep.mubr.msk.f32.mxu1 %vm540_vm2, %v8826_v63  ;;  %v9928_v63 = vld [vmem:[#allocation35_spill] sm:$0xff] }
 0x522   : > { %6651 = vmatprep.mubr.msk.f32.mxu0 %vm540_vm2, %v8828_v40  ;;  %6697 = vmatpush3.msra.mxu1 %v8985_v19  ;;  %v9929_v40 = vld [vmem:[#allocation36_spill] sm:$0xff] }
 0x523   : > { %v3371_v24 = vpop.trf.xlu0  ;;  %6747 = vmatpush3.msra.mxu0 %v8985_v19 }
 0x524   : > { %v3895_v45 = vpop.trf.xlu1  ;;  %6602 = vmatmul.mubr.msk.f32.gmra.mrb[76].mxu1 %vm540_vm2, %v8830_v51  ;;  %v9930_v51 = vld [vmem:[#allocation37_spill] sm:$0xff] }
 0x525   : > { %6652 = vmatmul.mubr.msk.f32.gmra.mrb[74].mxu0 %vm540_vm2, %v8832_v9  ;;  %6604 = vmatprep.mubr.msk.f32.mxu1 %vm540_vm2, %v8834_v13  ;;  %v9931_v13 = vld [vmem:[#allocation38_spill] sm:$0xff] }
 0x526   : > { %6654 = vmatprep.mubr.msk.f32.mxu0 %vm540_vm2, %v8836_v39  ;;  %v9932_v39 = vld [vmem:[#allocation39_spill] sm:$0xff] }
 0x527   : > { %v3372_v48 = vpop.trf.xlu0 }
 0x528   : > { %v3896_v62 = vpop.trf.xlu1  ;;  %6605 = vmatmul.mubr.msk.f32.gmra.mrb[78].mxu1 %vm540_vm2, %v8838_v58  ;;  %v9934_v58 = vld [vmem:[#allocation41_spill] sm:$0xff] }
 0x529   : > { %6655 = vmatmul.mubr.msk.f32.gmra.mrb[76].mxu0 %vm540_vm2, %v9928_v63  ;;  %6607 = vmatprep.mubr.msk.f32.mxu1 %vm540_vm2, %v9929_v40 }
 0x52a   : > { %6657 = vmatprep.mubr.msk.f32.mxu0 %vm540_vm2, %v9930_v51 }
 0x52b   : > { %v3373_v9 = vpop.trf.xlu0 }
 0x52c   : > { %v3897_v19 = vpop.trf.xlu1  ;;  %6608 = vmatmul.mubr.msk.f32.gmra.mrb[80].mxu1 %vm540_vm2, %v9931_v13 }
 0x52d   : > { %6658 = vmatmul.mubr.msk.f32.gmra.mrb[78].mxu0 %vm540_vm2, %v9932_v39  ;;  %6610 = vmatprep.mubr.msk.f32.mxu1 %vm540_vm2, %v9933_v6 }
 0x52e   : > { %6660 = vmatprep.mubr.msk.f32.mxu0 %vm540_vm2, %v9934_v58 }
 0x52f   : > { %v3374_v56 = vpop.trf.xlu0 }
 0x530   : > { %v3898_v10 = vpop.trf.xlu1  ;;  %6611 = vmatmul.mubr.msk.f32.gmra.mrb[82].mxu1 %vm540_vm2, %v9935_v27 }
 0x531   : > { %6661 = vmatmul.mubr.msk.f32.gmra.mrb[80].mxu0 %vm540_vm2, %v9936_v0  ;;  %6613 = vmatprep.mubr.msk.f32.mxu1 %vm540_vm2, %v9937_v25 }
 0x532   : > { %6663 = vmatprep.mubr.msk.f32.mxu0 %vm540_vm2, %v9938_v29 }
 0x533   : > { %v3375_v54 = vpop.trf.xlu0 }
 0x534   : > { %v3899_v18 = vpop.trf.xlu1  ;;  %6614 = vmatmul.mubr.msk.f32.gmra.mrb[84].mxu1 %vm540_vm2, %v9939_v36 }
 0x535   : > { %6664 = vmatmul.mubr.msk.f32.gmra.mrb[82].mxu0 %vm540_vm2, %v9940_v35  ;;  %6616 = vmatprep.mubr.msk.f32.mxu1 %vm540_vm2, %v9941_v23 }
 0x536   : > { %6666 = vmatprep.mubr.msk.f32.mxu0 %vm540_vm2, %v9942_v49 }
 0x537   : > { %v3376_v28 = vpop.trf.xlu0 }
 0x538   : > { %v3900_v20 = vpop.trf.xlu1  ;;  %6617 = vmatmul.mubr.msk.f32.gmra.mrb[86].mxu1 %vm540_vm2, %v9943_v31 }
 0x539   : > { %6667 = vmatmul.mubr.msk.f32.gmra.mrb[84].mxu0 %vm540_vm2, %v9944_v3  ;;  %6619 = vmatprep.mubr.msk.f32.mxu1 %vm540_vm2, %v9945_v15 }
 0x53a   : > { %6669 = vmatprep.mubr.msk.f32.mxu0 %vm540_vm2, %v9946_v26 }
 0x53b   : > { %v3377_v21 = vpop.trf.xlu0 }
 0x53c   : > { %v3901_v32 = vpop.trf.xlu1  ;;  %6620 = vmatmul.mubr.msk.f32.gmra.mrb[88].mxu1 %vm540_vm2, %v9947_v38 }
 0x53d   : > { %6670 = vmatmul.mubr.msk.f32.gmra.mrb[86].mxu0 %vm540_vm2, %v9948_v61  ;;  %6622 = vmatprep.mubr.msk.f32.mxu1 %vm540_vm2, %v3370_v37 }
 0x53e   : > { %6672 = vmatprep.mubr.msk.f32.mxu0 %vm540_vm2, %v3894_v55 }
 0x53f   : > { %v3378_v22 = vpop.trf.xlu0 }
 0x540   : > { %v3902_v52 = vpop.trf.xlu1  ;;  %6623 = vmatmul.mubr.msk.f32.gmra.mrb[90].mxu1 %vm540_vm2, %v3371_v24 }
 0x541   : > { %6673 = vmatmul.mubr.msk.f32.gmra.mrb[88].mxu0 %vm540_vm2, %v3895_v45  ;;  %6625 = vmatprep.mubr.msk.f32.mxu1 %vm540_vm2, %v3372_v48 }
 0x542   : > { %6675 = vmatprep.mubr.msk.f32.mxu0 %vm540_vm2, %v3896_v62 }
 0x543   : > { %v3379_v1 = vpop.trf.xlu0 }
 0x544   : > { %v3903_v4 = vpop.trf.xlu1  ;;  %6626 = vmatmul.mubr.msk.f32.gmra.mrb[92].mxu1 %vm540_vm2, %v3373_v9 }
 0x545   : > { %6676 = vmatmul.mubr.msk.f32.gmra.mrb[90].mxu0 %vm540_vm2, %v3897_v19  ;;  %6628 = vmatprep.mubr.msk.f32.mxu1 %vm540_vm2, %v3374_v56 }
 0x546   : > { %6678 = vmatprep.mubr.msk.f32.mxu0 %vm540_vm2, %v3898_v10 }
 0x547   : > { %v3380_v42 = vpop.trf.xlu0 }
 0x548   : > { %v3904_v43 = vpop.trf.xlu1  ;;  %6629 = vmatmul.mubr.msk.f32.gmra.mrb[94].mxu1 %vm540_vm2, %v3375_v54 }
 0x549   : > { %6679 = vmatmul.mubr.msk.f32.gmra.mrb[92].mxu0 %vm540_vm2, %v3899_v18  ;;  %6631 = vmatprep.mubr.msk.f32.mxu1 %vm540_vm2, %v3376_v28 }
 0x54a   : > { %6681 = vmatprep.mubr.msk.f32.mxu0 %vm540_vm2, %v3900_v20 }
 0x54b   : > { %v3381_v8 = vpop.trf.xlu0 }
 0x54c   : > { %v3905_v17 = vpop.trf.xlu1  ;;  %6632 = vmatmul.mubr.msk.f32.gmra.mrb[96].mxu1 %vm540_vm2, %v3377_v21 }
 0x54d   : > { %6682 = vmatmul.mubr.msk.f32.gmra.mrb[94].mxu0 %vm540_vm2, %v3901_v32  ;;  %6634 = vmatprep.mubr.msk.f32.mxu1 %vm540_vm2, %v3378_v22 }
 0x54e   : > { %6684 = vmatprep.mubr.msk.f32.mxu0 %vm540_vm2, %v3902_v52  ;;  %v9251_v52 = vld [vmem:[#allocation13] ss:$0 sm:$0xff] }
 0x54f   : > { %v3382_v57 = vpop.trf.xlu0 }
 0x550   : > { %v3906_v16 = vpop.trf.xlu1  ;;  %6635 = vmatmul.mubr.msk.f32.gmra.mrb[98].mxu1 %vm540_vm2, %v3379_v1 }
 0x551   : > { %6685 = vmatmul.mubr.msk.f32.gmra.mrb[96].mxu0 %vm540_vm2, %v3903_v4  ;;  %6637 = vmatprep.mubr.msk.f32.mxu1 %vm540_vm2, %v3380_v42 }
 0x552   : > { %6687 = vmatprep.mubr.msk.f32.mxu0 %vm540_vm2, %v3904_v43 }
 0x553   : > { %v3383_v41 = vpop.trf.xlu0 }
 0x554   : > { %v3907_v33 = vpop.trf.xlu1  ;;  %6638 = vmatmul.mubr.msk.f32.gmra.mrb[100].mxu1 %vm540_vm2, %v3381_v8 }
 0x555   : > { %6688 = vmatmul.mubr.msk.f32.gmra.mrb[98].mxu0 %vm540_vm2, %v3905_v17  ;;  %6640 = vmatprep.mubr.msk.f32.mxu1 %vm540_vm2, %v3382_v57 }
 0x556   : > { %6690 = vmatprep.mubr.msk.f32.mxu0 %vm540_vm2, %v3906_v16 }
 0x557   : > { %v3384_v44 = vpop.trf.xlu0 }
 0x558   : > { %v3908_v53 = vpop.trf.xlu1  ;;  %6641 = vmatmul.mubr.msk.f32.gmra.mrb[102].mxu1 %vm540_vm2, %v3383_v41 }
 0x559   : > { %6691 = vmatmul.mubr.msk.f32.gmra.mrb[100].mxu0 %vm540_vm2, %v3907_v33  ;;  %6643 = vmatprep.mubr.msk.f32.mxu1 %vm540_vm2, %v3384_v44 }
 0x55a   : > { %6693 = vmatprep.mubr.msk.f32.mxu0 %vm540_vm2, %v3908_v53 }
 0x55b   : > { %v3385_v30 = vpop.trf.xlu0 }
 0x55c   : > { %v3909_v5 = vpop.trf.xlu1  ;;  %6644 = vmatmul.mubr.msk.f32.gmra.mrb[104].mxu1 %vm540_vm2, %v3385_v30 }
 0x55d   : > { %6694 = vmatmul.mubr.msk.f32.gmra.mrb[102].mxu0 %vm540_vm2, %v3909_v5 }
 0x55f   : > { %v4386_v12 = vpop.trf.xlu0 }
 0x560   : > { %v4910_v7 = vpop.trf.xlu1  ;;  %6698 = vmatprep.mubr.msk.f32.mxu1 %vm540_vm2, %v4386_v12 }
 0x561   : > { %6748 = vmatprep.mubr.msk.f32.mxu0 %vm540_vm2, %v4910_v7 }
 0x563   : > { %v4387_v34 = vpop.trf.xlu0 }
 0x564   : > { %v4911_v11 = vpop.trf.xlu1  ;;  %6699 = vmatmul.mubr.msk.f32.vlgmr.msra.gmra.mrb[106].mxu1 %vm540_vm2, %v4387_v34 }
 0x565   : > { %6749 = vmatmul.mubr.msk.f32.vlgmr.msra.gmra.mrb[104].mxu0 %vm540_vm2, %v4911_v11 }
 0x567   : > { %v4388_v47 = vpop.trf.xlu0 }
 0x568   : > { %v4912_v2 = vpop.trf.xlu1  ;;  %6701 = vmatprep.mubr.msk.f32.mxu1 %vm540_vm2, %v4388_v47 }
 0x569   : > { %6751 = vmatprep.mubr.msk.f32.mxu0 %vm540_vm2, %v4912_v2 }
 0x56b   : > { %v4389_v60 = vpop.trf.xlu0 }
 0x56c   : > { %v4913_v14 = vpop.trf.xlu1  ;;  %6702 = vmatmul.mubr.msk.f32.gmra.mrb[108].mxu1 %vm540_vm2, %v4389_v60 }
 0x56d   : > { %6752 = vmatmul.mubr.msk.f32.gmra.mrb[106].mxu0 %vm540_vm2, %v4913_v14 }
 0x56f   : > { %v4390_v59 = vpop.trf.xlu0 }
 0x570   : > { %v4914_v46 = vpop.trf.xlu1  ;;  %6704 = vmatprep.mubr.msk.f32.mxu1 %vm540_vm2, %v4390_v59 }
 0x571   : > { %6754 = vmatprep.mubr.msk.f32.mxu0 %vm540_vm2, %v4914_v46 }
 0x573   : > { %v4391_v37 = vpop.trf.xlu0 }
 0x574   : > { %v4915_v55 = vpop.trf.xlu1  ;;  %6705 = vmatmul.mubr.msk.f32.gmra.mrb[110].mxu1 %vm540_vm2, %v4391_v37 }
 0x575   : > { %6755 = vmatmul.mubr.msk.f32.gmra.mrb[108].mxu0 %vm540_vm2, %v4915_v55 }
 0x576   : > { %v6424_v45 = vpop.f32.mrb[26].mxu1  ;;  %v6474_v62 = vpop.f32.mrb[24].mxu0 }
 0x577   : > { %v4392_v24 = vpop.trf.xlu0  ;;  %v1537_v48 = vadd.f32 %v6424_v45, %v8896_v50  ;;  %v2062_v40 = vadd.f32 %v6474_v62, %v8896_v50  ;;  %v1531_v51 = vpop.f32.mrb[27].mxu1 }
 0x578   : > { %v4916_v63 = vpop.trf.xlu1  ;;  %6707 = vmatprep.mubr.msk.f32.mxu1 %vm540_vm2, %v4392_v24  ;;  %v2056_v9 = vpop.f32.mrb[25].mxu0  ;;  %v1532_v13 = vadd.f32 %v8896_v50, %v1531_v51 }
 0x579   : > { %6757 = vmatprep.mubr.msk.f32.mxu0 %vm540_vm2, %v4916_v63  ;;  %v1644_v19 = vmul.f32 1.442695, %v1537_v48  ;;  %v2057_v39 = vadd.f32 %v8896_v50, %v2056_v9  ;;  %v2169_v6 = vmul.f32 1.442695, %v2062_v40 }
 0x57a   : > { %v1642_v56 = vmul.f32 1.442695, %v1532_v13 }
 0x57b   : > { %v4393_v58 = vpop.trf.xlu0  ;;  %7068 = vpow2.f32 %v1644_v19  ;;  %v2167_v10 = vmul.f32 1.442695, %v2057_v39 }
 0x57c   : > { %v4917_v27 = vpop.trf.xlu1  ;;  %6708 = vmatmul.mubr.msk.f32.gmra.mrb[112].mxu1 %vm540_vm2, %v4393_v58  ;;  %7070 = vpow2.f32 %v2169_v6 }
 0x57d   : > { %6758 = vmatmul.mubr.msk.f32.gmra.mrb[110].mxu0 %vm540_vm2, %v4917_v27  ;;  %7072 = vpow2.f32 %v1642_v56 }
 0x57e   : > { %7074 = vpow2.f32 %v2167_v10  ;;  %v6427_v25 = vpop.f32.mrb[28].mxu1  ;;  %v6477_v54 = vpop.f32.mrb[26].mxu0 }
 0x57f   : > { %v4394_v0 = vpop.trf.xlu0  ;;  %v1547_v29 = vadd.f32 %v6427_v25, %v8896_v50  ;;  %v2072_v36 = vadd.f32 %v6477_v54, %v8896_v50  ;;  %v1541_v35 = vpop.f32.mrb[29].mxu1 }
 0x580   : > { %v4918_v18 = vpop.trf.xlu1  ;;  %6710 = vmatprep.mubr.msk.f32.mxu1 %vm540_vm2, %v4394_v0  ;;  %v2066_v23 = vpop.f32.mrb[27].mxu0  ;;  %v1542_v28 = vadd.f32 %v8896_v50, %v1541_v35 }
 0x581   : > { %6760 = vmatprep.mubr.msk.f32.mxu0 %vm540_vm2, %v4918_v18  ;;  %v1648_v49 = vmul.f32 1.442695, %v1547_v29  ;;  %v2067_v20 = vadd.f32 %v8896_v50, %v2066_v23  ;;  %v2173_v31 = vmul.f32 1.442695, %v2072_v36 }
 0x582   : > { %v1646_v15 = vmul.f32 1.442695, %v1542_v28 }
 0x583   : > { %v4395_v3 = vpop.trf.xlu0  ;;  %7076 = vpow2.f32 %v1648_v49  ;;  %v2171_v26 = vmul.f32 1.442695, %v2067_v20 }
 0x584   : > { %v4919_v21 = vpop.trf.xlu1  ;;  %6711 = vmatmul.mubr.msk.f32.gmra.mrb[114].mxu1 %vm540_vm2, %v4395_v3  ;;  %7078 = vpow2.f32 %v2173_v31 }
 0x585   : > { %6761 = vmatmul.mubr.msk.f32.gmra.mrb[112].mxu0 %vm540_vm2, %v4919_v21  ;;  %v7069_v32 = vpop.eup %7068  ;;  %7080 = vpow2.f32 %v1646_v15 }
 0x586   : > { %v7071_v38 = vpop.eup %7070  ;;  %1691 = vst [vmem:[%s8917_s1 + $0x88] sm:$0xff] %v7069_v32  ;;  %7082 = vpow2.f32 %v2171_v26  ;;  %v6430_v61 = vpop.f32.mrb[30].mxu1 }
 0x587   : > { %v4396_v50 = vpop.trf.xlu0  ;;  %v7073_v22 = vpop.eup %7072  ;;  %5707 = vst [vmem:[%s8917_s1 + $0x188] sm:$0xff] %v7071_v38  ;;  %v1557_v1 = vadd.f32 %v9251_v52, %v6430_v61 }
 0x588   : > { %v6480_v4 = vpop.f32.mrb[28].mxu0  ;;  %v4920_v42 = vpop.trf.xlu1  ;;  %6713 = vmatprep.mubr.msk.f32.mxu1 %vm540_vm2, %v4396_v50  ;;  %1690 = vst [vmem:[%s8917_s1 + $0x80] sm:$0xff] %v7073_v22 }
 0x589   : > { %v7075_v43 = vpop.eup %7074  ;;  %v2082_v8 = vadd.f32 %v9251_v52, %v6480_v4  ;;  %v1551_v17 = vpop.f32.mrb[31].mxu1  ;;  %6763 = vmatprep.mubr.msk.f32.mxu0 %vm540_vm2, %v4920_v42  ;;  %v1652_v16 = vmul.f32 1.442695, %v1557_v1 }
 0x58a   : > { %v2076_v57 = vpop.f32.mrb[29].mxu0  ;;  %5706 = vst [vmem:[%s8917_s1 + $0x180] sm:$0xff] %v7075_v43  ;;  %v1552_v41 = vadd.f32 %v9251_v52, %v1551_v17 }
 0x58b   : > { %v2077_v33 = vadd.f32 %v9251_v52, %v2076_v57  ;;  %v2177_v44 = vmul.f32 1.442695, %v2082_v8  ;;  %v4397_v53 = vpop.trf.xlu0  ;;  %7084 = vpow2.f32 %v1652_v16 }
 0x58c   : > { %v1650_v30 = vmul.f32 1.442695, %v1552_v41  ;;  %v4921_v12 = vpop.trf.xlu1  ;;  %6714 = vmatmul.mubr.msk.f32.gmra.mrb[116].mxu1 %vm540_vm2, %v4397_v53 }
 0x58d   : > { %v2175_v5 = vmul.f32 1.442695, %v2077_v33  ;;  %7086 = vpow2.f32 %v2177_v44  ;;  %6764 = vmatmul.mubr.msk.f32.gmra.mrb[114].mxu0 %vm540_vm2, %v4921_v12  ;;  %v7077_v7 = vpop.eup %7076 }
 0x58e   : > { %7088 = vpow2.f32 %v1650_v30  ;;  %v7079_v34 = vpop.eup %7078  ;;  %1693 = vst [vmem:[%s8917_s1 + $0x98] sm:$0xff] %v7077_v7  ;;  %v6433_v47 = vpop.f32.mrb[32].mxu1 }
 0x58f   : > { %7090 = vpow2.f32 %v2175_v5  ;;  %v4398_v11 = vpop.trf.xlu0  ;;  %v7081_v2 = vpop.eup %7080  ;;  %5709 = vst [vmem:[%s8917_s1 + $0x198] sm:$0xff] %v7079_v34  ;;  %v1567_v60 = vadd.f32 %v9251_v52, %v6433_v47 }
 0x590   : > { %v6483_v14 = vpop.f32.mrb[30].mxu0  ;;  %v4922_v59 = vpop.trf.xlu1  ;;  %6716 = vmatprep.mubr.msk.f32.mxu1 %vm540_vm2, %v4398_v11  ;;  %1692 = vst [vmem:[%s8917_s1 + $0x90] sm:$0xff] %v7081_v2 }
 0x591   : > { %v7083_v46 = vpop.eup %7082  ;;  %v2092_v37 = vadd.f32 %v9251_v52, %v6483_v14  ;;  %v1561_v55 = vpop.f32.mrb[33].mxu1  ;;  %6766 = vmatprep.mubr.msk.f32.mxu0 %vm540_vm2, %v4922_v59  ;;  %v1656_v45 = vmul.f32 1.442695, %v1567_v60 }
 0x592   : > { %v2086_v24 = vpop.f32.mrb[31].mxu0  ;;  %5708 = vst [vmem:[%s8917_s1 + $0x190] sm:$0xff] %v7083_v46  ;;  %v1562_v48 = vadd.f32 %v9251_v52, %v1561_v55 }
 0x593   : > { %v2087_v62 = vadd.f32 %v9251_v52, %v2086_v24  ;;  %v2181_v63 = vmul.f32 1.442695, %v2092_v37  ;;  %v4399_v40 = vpop.trf.xlu0  ;;  %7092 = vpow2.f32 %v1656_v45 }
 0x594   : > { %v1654_v51 = vmul.f32 1.442695, %v1562_v48  ;;  %v4923_v19 = vpop.trf.xlu1  ;;  %6717 = vmatmul.mubr.msk.f32.gmra.mrb[118].mxu1 %vm540_vm2, %v4399_v40 }
 0x595   : > { %v2179_v9 = vmul.f32 1.442695, %v2087_v62  ;;  %7094 = vpow2.f32 %v2181_v63  ;;  %6767 = vmatmul.mubr.msk.f32.gmra.mrb[116].mxu0 %vm540_vm2, %v4923_v19  ;;  %v7085_v13 = vpop.eup %7084 }
 0x596   : > { %7096 = vpow2.f32 %v1654_v51  ;;  %1695 = vst [vmem:[%s8917_s1 + $0xa8] sm:$0xff] %v7085_v13  ;;  %v6436_v58 = vpop.f32.mrb[34].mxu1 }
 0x597   : > { %v7087_v39 = vpop.eup %7086  ;;  %7098 = vpow2.f32 %v2179_v9  ;;  %v4400_v6 = vpop.trf.xlu0  ;;  %v1577_v10 = vadd.f32 %v9251_v52, %v6436_v58 }
 0x598   : > { %v7089_v56 = vpop.eup %7088  ;;  %5711 = vst [vmem:[%s8917_s1 + $0x1a8] sm:$0xff] %v7087_v39  ;;  %v6486_v27 = vpop.f32.mrb[32].mxu0  ;;  %6719 = vmatprep.mubr.msk.f32.mxu1 %vm540_vm2, %v4400_v6 }
 0x599   : > { %v4924_v0 = vpop.trf.xlu1  ;;  %v7091_v25 = vpop.eup %7090  ;;  %1694 = vst [vmem:[%s8917_s1 + $0xa0] sm:$0xff] %v7089_v56  ;;  %v2102_v29 = vadd.f32 %v9251_v52, %v6486_v27  ;;  %v1660_v36 = vmul.f32 1.442695, %v1577_v10 }
 0x59a   : > { %v1571_v54 = vpop.f32.mrb[35].mxu1  ;;  %v2096_v18 = vpop.f32.mrb[33].mxu0  ;;  %6769 = vmatprep.mubr.msk.f32.mxu0 %vm540_vm2, %v4924_v0  ;;  %5710 = vst [vmem:[%s8917_s1 + $0x1a0] sm:$0xff] %v7091_v25 }
 0x59b   : > { %v1572_v35 = vadd.f32 %v9251_v52, %v1571_v54  ;;  %v2097_v23 = vadd.f32 %v9251_v52, %v2096_v18  ;;  %v2185_v49 = vmul.f32 1.442695, %v2102_v29  ;;  %v4401_v28 = vpop.trf.xlu0  ;;  %7100 = vpow2.f32 %v1660_v36 }
 0x59c   : > { %6720 = vmatmul.mubr.msk.f32.gmra.mrb[120].mxu1 %vm540_vm2, %v4401_v28 }
 0x59d   : > { %v1658_v20 = vmul.f32 1.442695, %v1572_v35  ;;  %v2183_v31 = vmul.f32 1.442695, %v2097_v23  ;;  %v4925_v3 = vpop.trf.xlu1  ;;  %7102 = vpow2.f32 %v2185_v49  ;;  %v7093_v15 = vpop.eup %7092 }
 0x59e   : > { %6770 = vmatmul.mubr.msk.f32.gmra.mrb[118].mxu0 %vm540_vm2, %v4925_v3  ;;  %1697 = vst [vmem:[%s8917_s1 + $0xb8] sm:$0xff] %v7093_v15 }
 0x59f   : > { %7104 = vpow2.f32 %v1658_v20  ;;  %v7095_v26 = vpop.eup %7094  ;;  %v4418_v21 = vpop.trf.xlu0 }
 0x5a0   : > { %7106 = vpow2.f32 %v2183_v31  ;;  %v6439_v32 = vpop.f32.mrb[36].mxu1  ;;  %v7097_v38 = vpop.eup %7096  ;;  %5713 = vst [vmem:[%s8917_s1 + $0x1b8] sm:$0xff] %v7095_v26  ;;  %6722 = vmatprep.mubr.msk.f32.mxu1 %vm540_vm2, %v4418_v21 }
 0x5a1   : > { %v1587_v50 = vadd.f32 %v9251_v52, %v6439_v32  ;;  %v6489_v61 = vpop.f32.mrb[34].mxu0  ;;  %v4942_v22 = vpop.trf.xlu1  ;;  %1696 = vst [vmem:[%s8917_s1 + $0xb0] sm:$0xff] %v7097_v38 }
 0x5a2   : > { %v7099_v1 = vpop.eup %7098  ;;  %v2112_v4 = vadd.f32 %v9251_v52, %v6489_v61  ;;  %v1581_v42 = vpop.f32.mrb[37].mxu1  ;;  %6772 = vmatprep.mubr.msk.f32.mxu0 %vm540_vm2, %v4942_v22 }
 0x5a3   : > { %v2106_v43 = vpop.f32.mrb[35].mxu0  ;;  %5712 = vst [vmem:[%s8917_s1 + $0x1b0] sm:$0xff] %v7099_v1  ;;  %v1664_v8 = vmul.f32 1.442695, %v1587_v50  ;;  %v1582_v17 = vadd.f32 %v9251_v52, %v1581_v42  ;;  %v4419_v41 = vpop.trf.xlu0 }
 0x5a4   : > { %v2107_v57 = vadd.f32 %v9251_v52, %v2106_v43  ;;  %v2189_v16 = vmul.f32 1.442695, %v2112_v4  ;;  %6723 = vmatmul.mubr.msk.f32.gmra.mrb[122].mxu1 %vm540_vm2, %v4419_v41 }
 0x5a5   : > { %7108 = vpow2.f32 %v1664_v8  ;;  %v1662_v33 = vmul.f32 1.442695, %v1582_v17  ;;  %v4943_v53 = vpop.trf.xlu1  ;;  %v7101_v30 = vpop.eup %7100 }
 0x5a6   : > { %v2187_v44 = vmul.f32 1.442695, %v2107_v57  ;;  %7110 = vpow2.f32 %v2189_v16  ;;  %6773 = vmatmul.mubr.msk.f32.gmra.mrb[120].mxu0 %vm540_vm2, %v4943_v53  ;;  %1699 = vst [vmem:[%s8917_s1 + $0xc8] sm:$0xff] %v7101_v30 }
 0x5a7   : > { %7112 = vpow2.f32 %v1662_v33  ;;  %v7103_v5 = vpop.eup %7102  ;;  %v4420_v12 = vpop.trf.xlu0 }
 0x5a8   : > { %7114 = vpow2.f32 %v2187_v44  ;;  %v6442_v7 = vpop.f32.mrb[38].mxu1  ;;  %5715 = vst [vmem:[%s8917_s1 + $0x1c8] sm:$0xff] %v7103_v5  ;;  %v6492_v47 = vpop.f32.mrb[36].mxu0  ;;  %6725 = vmatprep.mubr.msk.f32.mxu1 %vm540_vm2, %v4420_v12 }
 0x5a9   : > { %v7105_v34 = vpop.eup %7104  ;;  %v1597_v11 = vadd.f32 %v9251_v52, %v6442_v7  ;;  %v4944_v2 = vpop.trf.xlu1  ;;  %v2122_v14 = vadd.f32 %v9251_v52, %v6492_v47 }
 0x5aa   : > { %v7107_v60 = vpop.eup %7106  ;;  %1698 = vst [vmem:[%s8917_s1 + $0xc0] sm:$0xff] %v7105_v34  ;;  %v1591_v59 = vpop.f32.mrb[39].mxu1  ;;  %6775 = vmatprep.mubr.msk.f32.mxu0 %vm540_vm2, %v4944_v2 }
 0x5ab   : > { %v2116_v46 = vpop.f32.mrb[37].mxu0  ;;  %5714 = vst [vmem:[%s8917_s1 + $0x1c0] sm:$0xff] %v7107_v60  ;;  %v1668_v37 = vmul.f32 1.442695, %v1597_v11  ;;  %v1592_v55 = vadd.f32 %v9251_v52, %v1591_v59  ;;  %v2193_v45 = vmul.f32 1.442695, %v2122_v14  ;;  %v4421_v48 = vpop.trf.xlu0 }
 0x5ac   : > { %v2117_v24 = vadd.f32 %v9251_v52, %v2116_v46  ;;  %6726 = vmatmul.mubr.msk.f32.gmra.mrb[124].mxu1 %vm540_vm2, %v4421_v48 }
 0x5ad   : > { %7116 = vpow2.f32 %v1668_v37  ;;  %v1666_v62 = vmul.f32 1.442695, %v1592_v55  ;;  %v4945_v40 = vpop.trf.xlu1 }
 0x5ae   : > { %v2191_v63 = vmul.f32 1.442695, %v2117_v24  ;;  %7118 = vpow2.f32 %v2193_v45  ;;  %6776 = vmatmul.mubr.msk.f32.gmra.mrb[122].mxu0 %vm540_vm2, %v4945_v40 }
 0x5af   : > { %v7109_v51 = vpop.eup %7108  ;;  %7120 = vpow2.f32 %v1666_v62  ;;  %v4422_v19 = vpop.trf.xlu0 }
 0x5b0   : > { %v7111_v9 = vpop.eup %7110  ;;  %1701 = vst [vmem:[%s8917_s1 + $0xd8] sm:$0xff] %v7109_v51  ;;  %7122 = vpow2.f32 %v2191_v63  ;;  %v6445_v13 = vpop.f32.mrb[40].mxu1  ;;  %6728 = vmatprep.mubr.msk.f32.mxu1 %vm540_vm2, %v4422_v19 }
 0x5b1   : > { %v7113_v39 = vpop.eup %7112  ;;  %5717 = vst [vmem:[%s8917_s1 + $0x1d8] sm:$0xff] %v7111_v9  ;;  %v1607_v6 = vadd.f32 %v9251_v52, %v6445_v13  ;;  %v6495_v58 = vpop.f32.mrb[38].mxu0 }
 0x5b2   : > { %v4946_v56 = vpop.trf.xlu1  ;;  %v7115_v10 = vpop.eup %7114  ;;  %1700 = vst [vmem:[%s8917_s1 + $0xd0] sm:$0xff] %v7113_v39  ;;  %v2132_v27 = vadd.f32 %v9251_v52, %v6495_v58 }
 0x5b3   : > { %v1601_v0 = vpop.f32.mrb[41].mxu1  ;;  %v2126_v25 = vpop.f32.mrb[39].mxu0  ;;  %6778 = vmatprep.mubr.msk.f32.mxu0 %vm540_vm2, %v4946_v56  ;;  %5716 = vst [vmem:[%s8917_s1 + $0x1d0] sm:$0xff] %v7115_v10  ;;  %v1672_v29 = vmul.f32 1.442695, %v1607_v6 }
 0x5b4   : > { %v1602_v54 = vadd.f32 %v9251_v52, %v1601_v0  ;;  %v2127_v18 = vadd.f32 %v9251_v52, %v2126_v25  ;;  %v2197_v36 = vmul.f32 1.442695, %v2132_v27  ;;  %v4423_v35 = vpop.trf.xlu0  ;;  %v6500_v23 = vpop.f32.mrb[42].mxu1 }
 0x5b5   : > { %7124 = vpow2.f32 %v1672_v29  ;;  %v2506_v20 = vadd.f32 %v9251_v52, %v6500_v23  ;;  %v6550_v31 = vpop.f32.mrb[40].mxu0  ;;  %6729 = vmatmul.mubr.msk.f32.gmra.mrb[126].mxu1 %vm540_vm2, %v4423_v35  ;;  %v2500_v26 = vpop.f32.mrb[43].mxu1 }
 0x5b6   : > { %v1670_v49 = vmul.f32 1.442695, %v1602_v54  ;;  %v2195_v28 = vmul.f32 1.442695, %v2127_v18  ;;  %v4947_v3 = vpop.trf.xlu1  ;;  %7126 = vpow2.f32 %v2197_v36  ;;  %v3030_v15 = vadd.f32 %v9251_v52, %v6550_v31  ;;  %v3024_v21 = vpop.f32.mrb[41].mxu0 }
 0x5b7   : > { %6779 = vmatmul.mubr.msk.f32.gmra.mrb[124].mxu0 %vm540_vm2, %v4947_v3  ;;  %v7117_v32 = vpop.eup %7116  ;;  %v2661_v38 = vmul.f32 1.442695, %v2506_v20  ;;  %v2501_v50 = vadd.f32 %v9251_v52, %v2500_v26  ;;  %v3025_v61 = vadd.f32 %v9251_v52, %v3024_v21  ;;  %v6503_v42 = vpop.f32.mrb[44].mxu1 }
 0x5b8   : > { %7128 = vpow2.f32 %v1670_v49  ;;  %v7119_v22 = vpop.eup %7118  ;;  %1703 = vst [vmem:[%s8917_s1 + $0xe8] sm:$0xff] %v7117_v32  ;;  %v3185_v1 = vmul.f32 1.442695, %v3030_v15  ;;  %v4424_v4 = vpop.trf.xlu0  ;;  %v2516_v57 = vadd.f32 %v9251_v52, %v6503_v42 }
 0x5b9   : > { %7130 = vpow2.f32 %v2195_v28  ;;  %v7121_v43 = vpop.eup %7120  ;;  %5719 = vst [vmem:[%s8917_s1 + $0x1e8] sm:$0xff] %v7119_v22  ;;  %v2659_v8 = vmul.f32 1.442695, %v2501_v50  ;;  %v3183_v17 = vmul.f32 1.442695, %v3025_v61  ;;  %v6553_v16 = vpop.f32.mrb[42].mxu0  ;;  %6731 = vmatprep.mubr.msk.f32.mxu1 %vm540_vm2, %v4424_v4 }
 0x5ba   : > { %7132 = vpow2.f32 %v2661_v38  ;;  %v4948_v41 = vpop.trf.xlu1  ;;  %v7123_v33 = vpop.eup %7122  ;;  %1702 = vst [vmem:[%s8917_s1 + $0xe0] sm:$0xff] %v7121_v43  ;;  %v3040_v44 = vadd.f32 %v9251_v52, %v6553_v16  ;;  %v2665_v5 = vmul.f32 1.442695, %v2516_v57 }
 0x5bb   : > { %7134 = vpow2.f32 %v3185_v1  ;;  %v2510_v53 = vpop.f32.mrb[45].mxu1  ;;  %v3034_v30 = vpop.f32.mrb[43].mxu0  ;;  %6781 = vmatprep.mubr.msk.f32.mxu0 %vm540_vm2, %v4948_v41  ;;  %5718 = vst [vmem:[%s8917_s1 + $0x1e0] sm:$0xff] %v7123_v33 }
 0x5bc   : > { %7136 = vpow2.f32 %v2659_v8  ;;  %v2511_v12 = vadd.f32 %v9251_v52, %v2510_v53  ;;  %v3035_v7 = vadd.f32 %v9251_v52, %v3034_v30  ;;  %v3189_v34 = vmul.f32 1.442695, %v3040_v44  ;;  %v4425_v11 = vpop.trf.xlu0  ;;  %v6506_v47 = vpop.f32.mrb[46].mxu1 }
 0x5bd   : > { %7138 = vpow2.f32 %v3183_v17  ;;  %v2526_v14 = vadd.f32 %v9251_v52, %v6506_v47  ;;  %v6556_v59 = vpop.f32.mrb[44].mxu0  ;;  %6732 = vmatmul.mubr.msk.f32.gmra.mrb[128].mxu1 %vm540_vm2, %v4425_v11  ;;  %v2520_v55 = vpop.f32.mrb[47].mxu1 }
 0x5be   : > { %7140 = vpow2.f32 %v2665_v5  ;;  %v2663_v2 = vmul.f32 1.442695, %v2511_v12  ;;  %v3187_v60 = vmul.f32 1.442695, %v3035_v7  ;;  %v4949_v46 = vpop.trf.xlu1  ;;  %v3050_v37 = vadd.f32 %v9251_v52, %v6556_v59  ;;  %v3044_v24 = vpop.f32.mrb[45].mxu0 }
 0x5bf   : > { %7142 = vpow2.f32 %v3189_v34  ;;  %6782 = vmatmul.mubr.msk.f32.gmra.mrb[126].mxu0 %vm540_vm2, %v4949_v46  ;;  %v7125_v45 = vpop.eup %7124  ;;  %v2669_v48 = vmul.f32 1.442695, %v2526_v14  ;;  %v2521_v62 = vadd.f32 %v9251_v52, %v2520_v55  ;;  %v3045_v63 = vadd.f32 %v9251_v52, %v3044_v24  ;;  %v6509_v19 = vpop.f32.mrb[48].mxu1 }
 0x5c0   : > { %7144 = vpow2.f32 %v2663_v2  ;;  %v7127_v40 = vpop.eup %7126  ;;  %1705 = vst [vmem:[%s8917_s1 + $0xf8] sm:$0xff] %v7125_v45  ;;  %v3193_v51 = vmul.f32 1.442695, %v3050_v37  ;;  %v4426_v9 = vpop.trf.xlu0  ;;  %v2536_v58 = vadd.f32 %v9251_v52, %v6509_v19 }
 0x5c1   : > { %7146 = vpow2.f32 %v3187_v60  ;;  %5721 = vst [vmem:[%s8917_s1 + $0x1f8] sm:$0xff] %v7127_v40  ;;  %v2667_v39 = vmul.f32 1.442695, %v2521_v62  ;;  %v3191_v6 = vmul.f32 1.442695, %v3045_v63  ;;  %v6559_v56 = vpop.f32.mrb[46].mxu0  ;;  %6734 = vmatprep.mubr.msk.f32.mxu1 %vm540_vm2, %v4426_v9 }
 0x5c2   : > { %v7129_v13 = vpop.eup %7128  ;;  %7148 = vpow2.f32 %v2669_v48  ;;  %v4950_v10 = vpop.trf.xlu1  ;;  %v3060_v0 = vadd.f32 %v9251_v52, %v6559_v56  ;;  %v2673_v18 = vmul.f32 1.442695, %v2536_v58 }
 0x5c3   : > { %v7131_v27 = vpop.eup %7130  ;;  %1704 = vst [vmem:[%s8917_s1 + $0xf0] sm:$0xff] %v7129_v13  ;;  %7150 = vpow2.f32 %v3193_v51  ;;  %v2530_v25 = vpop.f32.mrb[49].mxu1  ;;  %6784 = vmatprep.mubr.msk.f32.mxu0 %vm540_vm2, %v4950_v10 }
 0x5c4   : > { %v3054_v29 = vpop.f32.mrb[47].mxu0  ;;  %v7133_v54 = vpop.eup %7132  ;;  %5720 = vst [vmem:[%s8917_s1 + $0x1f0] sm:$0xff] %v7131_v27  ;;  %7152 = vpow2.f32 %v2667_v39  ;;  %v2531_v36 = vadd.f32 %v9251_v52, %v2530_v25  ;;  %v3197_v49 = vmul.f32 1.442695, %v3060_v0 }
 0x5c5   : > { %v3055_v35 = vadd.f32 %v9251_v52, %v3054_v29  ;;  %v7135_v23 = vpop.eup %7134  ;;  %5755 = vst [vmem:[%s8917_s1 + $0x208] sm:$0xff] %v7133_v54  ;;  %7154 = vpow2.f32 %v3191_v6  ;;  %v4427_v28 = vpop.trf.xlu0 }
 0x5c6   : > { %v6512_v20 = vpop.f32.mrb[50].mxu1  ;;  %v7137_v31 = vpop.eup %7136  ;;  %5819 = vst [vmem:[%s8917_s1 + $0x308] sm:$0xff] %v7135_v23  ;;  %7156 = vpow2.f32 %v2673_v18  ;;  %v2671_v3 = vmul.f32 1.442695, %v2531_v36  ;;  %6735 = vmatmul.mubr.msk.f32.gmra.mrb[130].mxu1 %vm540_vm2, %v4427_v28 }
 0x5c7   : > { %v3195_v15 = vmul.f32 1.442695, %v3055_v35  ;;  %v2546_v26 = vadd.f32 %v9251_v52, %v6512_v20  ;;  %v6562_v21 = vpop.f32.mrb[48].mxu0  ;;  %v4951_v32 = vpop.trf.xlu1  ;;  %5754 = vst [vmem:[%s8917_s1 + $0x200] sm:$0xff] %v7137_v31  ;;  %7158 = vpow2.f32 %v3197_v49 }
 0x5c8   : > { %v7139_v38 = vpop.eup %7138  ;;  %v3070_v50 = vadd.f32 %v9251_v52, %v6562_v21  ;;  %v2540_v61 = vpop.f32.mrb[51].mxu1  ;;  %6785 = vmatmul.mubr.msk.f32.gmra.mrb[128].mxu0 %vm540_vm2, %v4951_v32  ;;  %7160 = vpow2.f32 %v2671_v3 }
 0x5c9   : > { %v3064_v22 = vpop.f32.mrb[49].mxu0  ;;  %v7141_v1 = vpop.eup %7140  ;;  %5818 = vst [vmem:[%s8917_s1 + $0x300] sm:$0xff] %v7139_v38  ;;  %v2677_v4 = vmul.f32 1.442695, %v2546_v26  ;;  %v2541_v42 = vadd.f32 %v9251_v52, %v2540_v61  ;;  %7162 = vpow2.f32 %v3195_v15 }
 0x5ca   : > { %v3065_v43 = vadd.f32 %v9251_v52, %v3064_v22  ;;  %v7143_v8 = vpop.eup %7142  ;;  %5757 = vst [vmem:[%s8917_s1 + $0x218] sm:$0xff] %v7141_v1  ;;  %v3201_v17 = vmul.f32 1.442695, %v3070_v50  ;;  %v4428_v57 = vpop.trf.xlu0 }
 0x5cb   : > { %v6515_v16 = vpop.f32.mrb[52].mxu1  ;;  %v7145_v41 = vpop.eup %7144  ;;  %5821 = vst [vmem:[%s8917_s1 + $0x318] sm:$0xff] %v7143_v8  ;;  %7164 = vpow2.f32 %v2677_v4  ;;  %v2675_v33 = vmul.f32 1.442695, %v2541_v42  ;;  %6737 = vmatprep.mubr.msk.f32.mxu1 %vm540_vm2, %v4428_v57 }
 0x5cc   : > { %v3199_v44 = vmul.f32 1.442695, %v3065_v43  ;;  %v2556_v53 = vadd.f32 %v9251_v52, %v6515_v16  ;;  %v6565_v30 = vpop.f32.mrb[50].mxu0  ;;  %v4952_v5 = vpop.trf.xlu1  ;;  %5756 = vst [vmem:[%s8917_s1 + $0x210] sm:$0xff] %v7145_v41  ;;  %7166 = vpow2.f32 %v3201_v17 }
 0x5cd   : > { %v7147_v12 = vpop.eup %7146  ;;  %v3080_v7 = vadd.f32 %v9251_v52, %v6565_v30  ;;  %v2550_v34 = vpop.f32.mrb[53].mxu1  ;;  %6787 = vmatprep.mubr.msk.f32.mxu0 %vm540_vm2, %v4952_v5  ;;  %7168 = vpow2.f32 %v2675_v33 }
 0x5ce   : > { %v3074_v11 = vpop.f32.mrb[51].mxu0  ;;  %v7149_v47 = vpop.eup %7148  ;;  %5820 = vst [vmem:[%s8917_s1 + $0x310] sm:$0xff] %v7147_v12  ;;  %v2681_v2 = vmul.f32 1.442695, %v2556_v53  ;;  %v2551_v60 = vadd.f32 %v9251_v52, %v2550_v34  ;;  %7170 = vpow2.f32 %v3199_v44 }
 0x5cf   : > { %v3075_v14 = vadd.f32 %v9251_v52, %v3074_v11  ;;  %v7151_v59 = vpop.eup %7150  ;;  %5759 = vst [vmem:[%s8917_s1 + $0x228] sm:$0xff] %v7149_v47  ;;  %v3205_v46 = vmul.f32 1.442695, %v3080_v7  ;;  %v4429_v37 = vpop.trf.xlu0 }
 0x5d0   : > { %v6518_v55 = vpop.f32.mrb[54].mxu1  ;;  %v7153_v24 = vpop.eup %7152  ;;  %5823 = vst [vmem:[%s8917_s1 + $0x328] sm:$0xff] %v7151_v59  ;;  %7172 = vpow2.f32 %v2681_v2  ;;  %v2679_v45 = vmul.f32 1.442695, %v2551_v60  ;;  %6738 = vmatmul.mubr.msk.f32.gmra.mrb[132].mxu1 %vm540_vm2, %v4429_v37 }
 0x5d1   : > { %v3203_v48 = vmul.f32 1.442695, %v3075_v14  ;;  %v2566_v62 = vadd.f32 %v9251_v52, %v6518_v55  ;;  %v6568_v63 = vpop.f32.mrb[52].mxu0  ;;  %v4953_v40 = vpop.trf.xlu1  ;;  %5758 = vst [vmem:[%s8917_s1 + $0x220] sm:$0xff] %v7153_v24  ;;  %7174 = vpow2.f32 %v3205_v46 }
 0x5d2   : > { %v7155_v51 = vpop.eup %7154  ;;  %v3090_v9 = vadd.f32 %v9251_v52, %v6568_v63  ;;  %v2560_v19 = vpop.f32.mrb[55].mxu1  ;;  %6788 = vmatmul.mubr.msk.f32.gmra.mrb[130].mxu0 %vm540_vm2, %v4953_v40  ;;  %7176 = vpow2.f32 %v2679_v45 }
 0x5d3   : > { %v3084_v13 = vpop.f32.mrb[53].mxu0  ;;  %v7157_v39 = vpop.eup %7156  ;;  %5822 = vst [vmem:[%s8917_s1 + $0x320] sm:$0xff] %v7155_v51  ;;  %v2685_v6 = vmul.f32 1.442695, %v2566_v62  ;;  %v2561_v58 = vadd.f32 %v9251_v52, %v2560_v19  ;;  %7178 = vpow2.f32 %v3203_v48 }
 0x5d4   : > { %v3085_v56 = vadd.f32 %v9251_v52, %v3084_v13  ;;  %v7159_v10 = vpop.eup %7158  ;;  %5761 = vst [vmem:[%s8917_s1 + $0x238] sm:$0xff] %v7157_v39  ;;  %v3209_v27 = vmul.f32 1.442695, %v3090_v9  ;;  %v4430_v0 = vpop.trf.xlu0 }
 0x5d5   : > { %v6521_v25 = vpop.f32.mrb[56].mxu1  ;;  %v7161_v29 = vpop.eup %7160  ;;  %5825 = vst [vmem:[%s8917_s1 + $0x338] sm:$0xff] %v7159_v10  ;;  %7180 = vpow2.f32 %v2685_v6  ;;  %v2683_v54 = vmul.f32 1.442695, %v2561_v58  ;;  %6740 = vmatprep.mubr.msk.f32.mxu1 %vm540_vm2, %v4430_v0 }
 0x5d6   : > { %v3207_v18 = vmul.f32 1.442695, %v3085_v56  ;;  %v2576_v36 = vadd.f32 %v9251_v52, %v6521_v25  ;;  %v6571_v35 = vpop.f32.mrb[54].mxu0  ;;  %v4954_v23 = vpop.trf.xlu1  ;;  %5760 = vst [vmem:[%s8917_s1 + $0x230] sm:$0xff] %v7161_v29  ;;  %7182 = vpow2.f32 %v3209_v27 }
 0x5d7   : > { %v7163_v49 = vpop.eup %7162  ;;  %v3100_v28 = vadd.f32 %v9251_v52, %v6571_v35  ;;  %v2570_v20 = vpop.f32.mrb[57].mxu1  ;;  %6790 = vmatprep.mubr.msk.f32.mxu0 %vm540_vm2, %v4954_v23  ;;  %7184 = vpow2.f32 %v2683_v54 }
 0x5d8   : > { %v3094_v31 = vpop.f32.mrb[55].mxu0  ;;  %v7165_v3 = vpop.eup %7164  ;;  %5824 = vst [vmem:[%s8917_s1 + $0x330] sm:$0xff] %v7163_v49  ;;  %v2689_v15 = vmul.f32 1.442695, %v2576_v36  ;;  %v2571_v26 = vadd.f32 %v9251_v52, %v2570_v20  ;;  %7186 = vpow2.f32 %v3207_v18 }
 0x5d9   : > { %v3095_v21 = vadd.f32 %v9251_v52, %v3094_v31  ;;  %v7167_v32 = vpop.eup %7166  ;;  %5763 = vst [vmem:[%s8917_s1 + $0x248] sm:$0xff] %v7165_v3  ;;  %v3213_v38 = vmul.f32 1.442695, %v3100_v28  ;;  %v4431_v50 = vpop.trf.xlu0 }
 0x5da   : > { %v6524_v61 = vpop.f32.mrb[58].mxu1  ;;  %v7169_v22 = vpop.eup %7168  ;;  %5827 = vst [vmem:[%s8917_s1 + $0x348] sm:$0xff] %v7167_v32  ;;  %7188 = vpow2.f32 %v2689_v15  ;;  %v2687_v1 = vmul.f32 1.442695, %v2571_v26  ;;  %6741 = vmatmul.mubr.msk.f32.gmra.mrb[134].mxu1 %vm540_vm2, %v4431_v50 }
 0x5db   : > { %v3211_v4 = vmul.f32 1.442695, %v3095_v21  ;;  %v2586_v42 = vadd.f32 %v9251_v52, %v6524_v61  ;;  %v6574_v43 = vpop.f32.mrb[56].mxu0  ;;  %v4955_v8 = vpop.trf.xlu1  ;;  %5762 = vst [vmem:[%s8917_s1 + $0x240] sm:$0xff] %v7169_v22  ;;  %7190 = vpow2.f32 %v3213_v38 }
 0x5dc   : > { %v7171_v17 = vpop.eup %7170  ;;  %v3110_v57 = vadd.f32 %v9251_v52, %v6574_v43  ;;  %v2580_v16 = vpop.f32.mrb[59].mxu1  ;;  %6791 = vmatmul.mubr.msk.f32.gmra.mrb[132].mxu0 %vm540_vm2, %v4955_v8  ;;  %7192 = vpow2.f32 %v2687_v1 }
 0x5dd   : > { %v3104_v41 = vpop.f32.mrb[57].mxu0  ;;  %v7173_v33 = vpop.eup %7172  ;;  %5826 = vst [vmem:[%s8917_s1 + $0x340] sm:$0xff] %v7171_v17  ;;  %v2693_v44 = vmul.f32 1.442695, %v2586_v42  ;;  %v2581_v53 = vadd.f32 %v9251_v52, %v2580_v16  ;;  %7194 = vpow2.f32 %v3211_v4 }
 0x5de   : > { %v3105_v30 = vadd.f32 %v9251_v52, %v3104_v41  ;;  %v7175_v5 = vpop.eup %7174  ;;  %5765 = vst [vmem:[%s8917_s1 + $0x258] sm:$0xff] %v7173_v33  ;;  %v3217_v12 = vmul.f32 1.442695, %v3110_v57  ;;  %v4432_v7 = vpop.trf.xlu0 }
 0x5df   : > { %v6527_v34 = vpop.f32.mrb[60].mxu1  ;;  %v7177_v11 = vpop.eup %7176  ;;  %5829 = vst [vmem:[%s8917_s1 + $0x358] sm:$0xff] %v7175_v5  ;;  %7196 = vpow2.f32 %v2693_v44  ;;  %v2691_v47 = vmul.f32 1.442695, %v2581_v53  ;;  %6743 = vmatprep.mubr.msk.f32.mxu1 %vm540_vm2, %v4432_v7 }
 0x5e0   : > { %v3215_v2 = vmul.f32 1.442695, %v3105_v30  ;;  %v2596_v60 = vadd.f32 %v9251_v52, %v6527_v34  ;;  %v6577_v14 = vpop.f32.mrb[58].mxu0  ;;  %v4956_v59 = vpop.trf.xlu1  ;;  %5764 = vst [vmem:[%s8917_s1 + $0x250] sm:$0xff] %v7177_v11  ;;  %7198 = vpow2.f32 %v3217_v12  ;;  %v9438_v11 = vld [vmem:[#allocation13] ss:$0 sm:$0xff] }
 0x5e1   : > { %v7179_v46 = vpop.eup %7178  ;;  %v3120_v37 = vadd.f32 %v9251_v52, %v6577_v14  ;;  %v2590_v55 = vpop.f32.mrb[61].mxu1  ;;  %6793 = vmatprep.mubr.msk.f32.mxu0 %vm540_vm2, %v4956_v59  ;;  %7200 = vpow2.f32 %v2691_v47 }
 0x5e2   : > { %v3114_v24 = vpop.f32.mrb[59].mxu0  ;;  %v7181_v45 = vpop.eup %7180  ;;  %5828 = vst [vmem:[%s8917_s1 + $0x350] sm:$0xff] %v7179_v46  ;;  %v2697_v48 = vmul.f32 1.442695, %v2596_v60  ;;  %v2591_v62 = vadd.f32 %v9251_v52, %v2590_v55  ;;  %7202 = vpow2.f32 %v3215_v2 }
 0x5e3   : > { %v3115_v63 = vadd.f32 %v9251_v52, %v3114_v24  ;;  %v7183_v40 = vpop.eup %7182  ;;  %5767 = vst [vmem:[%s8917_s1 + $0x268] sm:$0xff] %v7181_v45  ;;  %v3221_v51 = vmul.f32 1.442695, %v3120_v37  ;;  %v4433_v9 = vpop.trf.xlu0 }
 0x5e4   : > { %v6530_v19 = vpop.f32.mrb[62].mxu1  ;;  %v7185_v13 = vpop.eup %7184  ;;  %5831 = vst [vmem:[%s8917_s1 + $0x368] sm:$0xff] %v7183_v40  ;;  %7204 = vpow2.f32 %v2697_v48  ;;  %v2695_v39 = vmul.f32 1.442695, %v2591_v62  ;;  %6744 = vmatmul.mubr.msk.f32.gmra.mrb[136].mxu1 %vm540_vm2, %v4433_v9 }
 0x5e5   : > { %v3219_v6 = vmul.f32 1.442695, %v3115_v63  ;;  %v2606_v58 = vadd.f32 %v9251_v52, %v6530_v19  ;;  %v6580_v56 = vpop.f32.mrb[60].mxu0  ;;  %v4957_v10 = vpop.trf.xlu1  ;;  %5766 = vst [vmem:[%s8917_s1 + $0x260] sm:$0xff] %v7185_v13  ;;  %7206 = vpow2.f32 %v3221_v51 }
 0x5e6   : > { %v7187_v27 = vpop.eup %7186  ;;  %v3130_v0 = vadd.f32 %v9251_v52, %v6580_v56  ;;  %v2600_v25 = vpop.f32.mrb[63].mxu1  ;;  %6794 = vmatmul.mubr.msk.f32.gmra.mrb[134].mxu0 %vm540_vm2, %v4957_v10  ;;  %7208 = vpow2.f32 %v2695_v39 }
 0x5e7   : > { %v3124_v29 = vpop.f32.mrb[61].mxu0  ;;  %v7189_v54 = vpop.eup %7188  ;;  %5830 = vst [vmem:[%s8917_s1 + $0x360] sm:$0xff] %v7187_v27  ;;  %v2701_v18 = vmul.f32 1.442695, %v2606_v58  ;;  %v2601_v36 = vadd.f32 %v9251_v52, %v2600_v25  ;;  %7210 = vpow2.f32 %v3219_v6 }
 0x5e8   : > { %v3125_v35 = vadd.f32 %v9251_v52, %v3124_v29  ;;  %v7191_v23 = vpop.eup %7190  ;;  %5769 = vst [vmem:[%s8917_s1 + $0x278] sm:$0xff] %v7189_v54  ;;  %v3225_v49 = vmul.f32 1.442695, %v3130_v0  ;;  %v6533_v28 = vpop.f32.mrb[64].mxu1 }
 0x5e9   : > { %v7193_v20 = vpop.eup %7192  ;;  %5833 = vst [vmem:[%s8917_s1 + $0x378] sm:$0xff] %v7191_v23  ;;  %7212 = vpow2.f32 %v2701_v18  ;;  %v2699_v31 = vmul.f32 1.442695, %v2601_v36  ;;  %v2616_v15 = vadd.f32 %v9251_v52, %v6533_v28  ;;  %v6583_v26 = vpop.f32.mrb[62].mxu0 }
 0x5ea   : > { %v3223_v3 = vmul.f32 1.442695, %v3125_v35  ;;  %v2610_v21 = vpop.f32.mrb[65].mxu1  ;;  %v7195_v32 = vpop.eup %7194  ;;  %5768 = vst [vmem:[%s8917_s1 + $0x270] sm:$0xff] %v7193_v20  ;;  %7214 = vpow2.f32 %v3225_v49  ;;  %v3140_v38 = vadd.f32 %v9251_v52, %v6583_v26 }
 0x5eb   : > { %v2611_v50 = vadd.f32 %v9251_v52, %v2610_v21  ;;  %v3134_v61 = vpop.f32.mrb[63].mxu0  ;;  %v7197_v22 = vpop.eup %7196  ;;  %5832 = vst [vmem:[%s8917_s1 + $0x370] sm:$0xff] %v7195_v32  ;;  %7216 = vpow2.f32 %v2699_v31  ;;  %v2705_v1 = vmul.f32 1.442695, %v2616_v15 }
 0x5ec   : > { %v3135_v4 = vadd.f32 %v9251_v52, %v3134_v61  ;;  %v7199_v42 = vpop.eup %7198  ;;  %5771 = vst [vmem:[%s8917_s1 + $0x288] sm:$0xff] %v7197_v22  ;;  %7218 = vpow2.f32 %v3223_v3  ;;  %v3229_v43 = vmul.f32 1.442695, %v3140_v38  ;;  %v6536_v17 = vpop.f32.mrb[66].mxu1 }
 0x5ed   : > { %v2703_v8 = vmul.f32 1.442695, %v2611_v50  ;;  %v7201_v57 = vpop.eup %7200  ;;  %5835 = vst [vmem:[%s8917_s1 + $0x388] sm:$0xff] %v7199_v42  ;;  %7220 = vpow2.f32 %v2705_v1  ;;  %v2626_v41 = vadd.f32 %v9251_v52, %v6536_v17  ;;  %v6586_v33 = vpop.f32.mrb[64].mxu0 }
 0x5ee   : > { %v3227_v16 = vmul.f32 1.442695, %v3135_v4  ;;  %v2620_v44 = vpop.f32.mrb[67].mxu1  ;;  %v7203_v53 = vpop.eup %7202  ;;  %5770 = vst [vmem:[%s8917_s1 + $0x280] sm:$0xff] %v7201_v57  ;;  %7222 = vpow2.f32 %v3229_v43  ;;  %v3150_v30 = vadd.f32 %v9251_v52, %v6586_v33 }
 0x5ef   : > { %v2621_v5 = vadd.f32 %v9251_v52, %v2620_v44  ;;  %v3144_v12 = vpop.f32.mrb[65].mxu0  ;;  %v7205_v7 = vpop.eup %7204  ;;  %5834 = vst [vmem:[%s8917_s1 + $0x380] sm:$0xff] %v7203_v53  ;;  %7224 = vpow2.f32 %v2703_v8  ;;  %v2709_v34 = vmul.f32 1.442695, %v2626_v41 }
 0x5f0   : > { %v3145_v47 = vadd.f32 %v9438_v11, %v3144_v12  ;;  %v7207_v2 = vpop.eup %7206  ;;  %5773 = vst [vmem:[%s8917_s1 + $0x298] sm:$0xff] %v7205_v7  ;;  %7226 = vpow2.f32 %v3227_v16  ;;  %v3233_v60 = vmul.f32 1.442695, %v3150_v30  ;;  %v6539_v59 = vpop.f32.mrb[68].mxu1 }
 0x5f1   : > { %v2707_v14 = vmul.f32 1.442695, %v2621_v5  ;;  %v7209_v46 = vpop.eup %7208  ;;  %5837 = vst [vmem:[%s8917_s1 + $0x398] sm:$0xff] %v7207_v2  ;;  %7228 = vpow2.f32 %v2709_v34  ;;  %v2636_v37 = vadd.f32 %v9438_v11, %v6539_v59  ;;  %v6589_v55 = vpop.f32.mrb[66].mxu0 }
 0x5f2   : > { %v3231_v52 = vmul.f32 1.442695, %v3145_v47  ;;  %v2630_v24 = vpop.f32.mrb[69].mxu1  ;;  %v7211_v45 = vpop.eup %7210  ;;  %5772 = vst [vmem:[%s8917_s1 + $0x290] sm:$0xff] %v7209_v46  ;;  %7230 = vpow2.f32 %v3233_v60  ;;  %v3160_v48 = vadd.f32 %v9438_v11, %v6589_v55 }
 0x5f3   : > { %v2631_v62 = vadd.f32 %v9438_v11, %v2630_v24  ;;  %v3154_v63 = vpop.f32.mrb[67].mxu0  ;;  %v7213_v40 = vpop.eup %7212  ;;  %5836 = vst [vmem:[%s8917_s1 + $0x390] sm:$0xff] %v7211_v45  ;;  %7232 = vpow2.f32 %v2707_v14  ;;  %v2713_v51 = vmul.f32 1.442695, %v2636_v37 }
 0x5f4   : > { %v3155_v9 = vadd.f32 %v9438_v11, %v3154_v63  ;;  %v7215_v19 = vpop.eup %7214  ;;  %5775 = vst [vmem:[%s8917_s1 + $0x2a8] sm:$0xff] %v7213_v40  ;;  %7234 = vpow2.f32 %v3231_v52  ;;  %v3237_v13 = vmul.f32 1.442695, %v3160_v48  ;;  %v6542_v6 = vpop.f32.mrb[70].mxu1 }
 0x5f5   : > { %v2711_v39 = vmul.f32 1.442695, %v2631_v62  ;;  %v7217_v58 = vpop.eup %7216  ;;  %5839 = vst [vmem:[%s8917_s1 + $0x3a8] sm:$0xff] %v7215_v19  ;;  %7236 = vpow2.f32 %v2713_v51  ;;  %v2646_v10 = vadd.f32 %v9438_v11, %v6542_v6  ;;  %v6592_v27 = vpop.f32.mrb[68].mxu0 }
 0x5f6   : > { %v3235_v56 = vmul.f32 1.442695, %v3155_v9  ;;  %v2640_v0 = vpop.f32.mrb[71].mxu1  ;;  %v7219_v25 = vpop.eup %7218  ;;  %5774 = vst [vmem:[%s8917_s1 + $0x2a0] sm:$0xff] %v7217_v58  ;;  %7238 = vpow2.f32 %v3237_v13  ;;  %v3170_v29 = vadd.f32 %v9438_v11, %v6592_v27 }
 0x5f7   : > { %v2641_v54 = vadd.f32 %v9438_v11, %v2640_v0  ;;  %v3164_v18 = vpop.f32.mrb[69].mxu0  ;;  %v7221_v36 = vpop.eup %7220  ;;  %5838 = vst [vmem:[%s8917_s1 + $0x3a0] sm:$0xff] %v7219_v25  ;;  %7240 = vpow2.f32 %v2711_v39  ;;  %v2717_v35 = vmul.f32 1.442695, %v2646_v10 }
 0x5f8   : > { %v3165_v23 = vadd.f32 %v9438_v11, %v3164_v18  ;;  %v7223_v49 = vpop.eup %7222  ;;  %5777 = vst [vmem:[%s8917_s1 + $0x2b8] sm:$0xff] %v7221_v36  ;;  %7242 = vpow2.f32 %v3235_v56  ;;  %v3241_v28 = vmul.f32 1.442695, %v3170_v29  ;;  %v6545_v31 = vpop.f32.mrb[72].mxu1 }
 0x5f9   : > { %v2715_v20 = vmul.f32 1.442695, %v2641_v54  ;;  %v7225_v3 = vpop.eup %7224  ;;  %5841 = vst [vmem:[%s8917_s1 + $0x3b8] sm:$0xff] %v7223_v49  ;;  %7244 = vpow2.f32 %v2717_v35  ;;  %v2656_v26 = vadd.f32 %v9438_v11, %v6545_v31  ;;  %v6595_v21 = vpop.f32.mrb[70].mxu0 }
 0x5fa   : > { %v3239_v15 = vmul.f32 1.442695, %v3165_v23  ;;  %v2650_v32 = vpop.f32.mrb[73].mxu1  ;;  %v7227_v38 = vpop.eup %7226  ;;  %5776 = vst [vmem:[%s8917_s1 + $0x2b0] sm:$0xff] %v7225_v3  ;;  %7246 = vpow2.f32 %v3241_v28  ;;  %v3180_v50 = vadd.f32 %v9438_v11, %v6595_v21 }
 0x5fb   : > { %v2651_v61 = vadd.f32 %v9438_v11, %v2650_v32  ;;  %v3174_v22 = vpop.f32.mrb[71].mxu0  ;;  %v7229_v1 = vpop.eup %7228  ;;  %5840 = vst [vmem:[%s8917_s1 + $0x3b0] sm:$0xff] %v7227_v38  ;;  %7248 = vpow2.f32 %v2715_v20  ;;  %v2721_v4 = vmul.f32 1.442695, %v2656_v26 }
 0x5fc   : > { %v3175_v42 = vadd.f32 %v9438_v11, %v3174_v22  ;;  %v7231_v43 = vpop.eup %7230  ;;  %5779 = vst [vmem:[%s8917_s1 + $0x2c8] sm:$0xff] %v7229_v1  ;;  %7250 = vpow2.f32 %v3239_v15  ;;  %v3245_v8 = vmul.f32 1.442695, %v3180_v50  ;;  %v6600_v57 = vpop.f32.mrb[74].mxu1 }
 0x5fd   : > { %v2719_v17 = vmul.f32 1.442695, %v2651_v61  ;;  %v7233_v16 = vpop.eup %7232  ;;  %5843 = vst [vmem:[%s8917_s1 + $0x3c8] sm:$0xff] %v7231_v43  ;;  %7252 = vpow2.f32 %v2721_v4  ;;  %v3554_v33 = vadd.f32 %v9438_v11, %v6600_v57  ;;  %v6650_v44 = vpop.f32.mrb[72].mxu0 }
 0x5fe   : > { %v3243_v41 = vmul.f32 1.442695, %v3175_v42  ;;  %v3548_v53 = vpop.f32.mrb[75].mxu1  ;;  %v7235_v30 = vpop.eup %7234  ;;  %5778 = vst [vmem:[%s8917_s1 + $0x2c0] sm:$0xff] %v7233_v16  ;;  %7254 = vpow2.f32 %v3245_v8  ;;  %v4078_v5 = vadd.f32 %v9438_v11, %v6650_v44 }
 0x5ff   : > { %v3549_v12 = vadd.f32 %v9438_v11, %v3548_v53  ;;  %v4072_v7 = vpop.f32.mrb[73].mxu0  ;;  %v7237_v34 = vpop.eup %7236  ;;  %5842 = vst [vmem:[%s8917_s1 + $0x3c0] sm:$0xff] %v7235_v30  ;;  %7256 = vpow2.f32 %v2719_v17  ;;  %v3709_v47 = vmul.f32 1.442695, %v3554_v33 }
 0x600   : > { %v4073_v2 = vadd.f32 %v9438_v11, %v4072_v7  ;;  %v7239_v60 = vpop.eup %7238  ;;  %5781 = vst [vmem:[%s8917_s1 + $0x2d8] sm:$0xff] %v7237_v34  ;;  %7258 = vpow2.f32 %v3243_v41  ;;  %v4233_v14 = vmul.f32 1.442695, %v4078_v5  ;;  %v6603_v46 = vpop.f32.mrb[76].mxu1 }
 0x601   : > { %v3707_v59 = vmul.f32 1.442695, %v3549_v12  ;;  %v7241_v52 = vpop.eup %7240  ;;  %5845 = vst [vmem:[%s8917_s1 + $0x3d8] sm:$0xff] %v7239_v60  ;;  %7260 = vpow2.f32 %v3709_v47  ;;  %v3564_v55 = vadd.f32 %v9438_v11, %v6603_v46  ;;  %v6653_v24 = vpop.f32.mrb[74].mxu0 }
 0x602   : > { %v4231_v37 = vmul.f32 1.442695, %v4073_v2  ;;  %v3558_v45 = vpop.f32.mrb[77].mxu1  ;;  %v7243_v48 = vpop.eup %7242  ;;  %5780 = vst [vmem:[%s8917_s1 + $0x2d0] sm:$0xff] %v7241_v52  ;;  %7262 = vpow2.f32 %v4233_v14  ;;  %v4088_v62 = vadd.f32 %v9438_v11, %v6653_v24 }
 0x603   : > { %v3559_v63 = vadd.f32 %v9438_v11, %v3558_v45  ;;  %v4082_v40 = vpop.f32.mrb[75].mxu0  ;;  %v7245_v51 = vpop.eup %7244  ;;  %5844 = vst [vmem:[%s8917_s1 + $0x3d0] sm:$0xff] %v7243_v48  ;;  %7264 = vpow2.f32 %v3707_v59  ;;  %v3713_v9 = vmul.f32 1.442695, %v3564_v55 }
 0x604   : > { %v4083_v19 = vadd.f32 %v9438_v11, %v4082_v40  ;;  %v7247_v13 = vpop.eup %7246  ;;  %5783 = vst [vmem:[%s8917_s1 + $0x2e8] sm:$0xff] %v7245_v51  ;;  %7266 = vpow2.f32 %v4231_v37  ;;  %v4237_v39 = vmul.f32 1.442695, %v4088_v62  ;;  %v6606_v58 = vpop.f32.mrb[78].mxu1 }
 0x605   : > { %v3711_v6 = vmul.f32 1.442695, %v3559_v63  ;;  %v7249_v56 = vpop.eup %7248  ;;  %5847 = vst [vmem:[%s8917_s1 + $0x3e8] sm:$0xff] %v7247_v13  ;;  %7268 = vpow2.f32 %v3713_v9  ;;  %v3574_v27 = vadd.f32 %v9438_v11, %v6606_v58  ;;  %v6656_v0 = vpop.f32.mrb[76].mxu0 }
 0x606   : > { %v4235_v10 = vmul.f32 1.442695, %v4083_v19  ;;  %v3568_v25 = vpop.f32.mrb[79].mxu1  ;;  %v7251_v29 = vpop.eup %7250  ;;  %5782 = vst [vmem:[%s8917_s1 + $0x2e0] sm:$0xff] %v7249_v56  ;;  %7270 = vpow2.f32 %v4237_v39  ;;  %v4098_v54 = vadd.f32 %v9438_v11, %v6656_v0 }
 0x607   : > { %v3569_v18 = vadd.f32 %v9438_v11, %v3568_v25  ;;  %v4092_v36 = vpop.f32.mrb[77].mxu0  ;;  %v7253_v35 = vpop.eup %7252  ;;  %5846 = vst [vmem:[%s8917_s1 + $0x3e0] sm:$0xff] %v7251_v29  ;;  %7272 = vpow2.f32 %v3711_v6  ;;  %v3717_v23 = vmul.f32 1.442695, %v3574_v27 }
 0x608   : > { %v4093_v49 = vadd.f32 %v9438_v11, %v4092_v36  ;;  %v7255_v28 = vpop.eup %7254  ;;  %5785 = vst [vmem:[%s8917_s1 + $0x2f8] sm:$0xff] %v7253_v35  ;;  %7274 = vpow2.f32 %v4235_v10  ;;  %v4241_v20 = vmul.f32 1.442695, %v4098_v54  ;;  %v6609_v3 = vpop.f32.mrb[80].mxu1 }
 0x609   : > { %v3715_v31 = vmul.f32 1.442695, %v3569_v18  ;;  %v7257_v15 = vpop.eup %7256  ;;  %5849 = vst [vmem:[%s8917_s1 + $0x3f8] sm:$0xff] %v7255_v28  ;;  %7276 = vpow2.f32 %v3717_v23  ;;  %v3584_v21 = vadd.f32 %v9438_v11, %v6609_v3  ;;  %v6659_v32 = vpop.f32.mrb[78].mxu0 }
 0x60a   : > { %v4239_v26 = vmul.f32 1.442695, %v4093_v49  ;;  %v3578_v38 = vpop.f32.mrb[81].mxu1  ;;  %v7259_v50 = vpop.eup %7258  ;;  %5784 = vst [vmem:[%s8917_s1 + $0x2f0] sm:$0xff] %v7257_v15  ;;  %7278 = vpow2.f32 %v4241_v20  ;;  %v4108_v61 = vadd.f32 %v9438_v11, %v6659_v32 }
 0x60b   : > { %v3579_v22 = vadd.f32 %v9438_v11, %v3578_v38  ;;  %v4102_v1 = vpop.f32.mrb[79].mxu0  ;;  %v7261_v4 = vpop.eup %7260  ;;  %5848 = vst [vmem:[%s8917_s1 + $0x3f0] sm:$0xff] %v7259_v50  ;;  %7280 = vpow2.f32 %v3715_v31  ;;  %v3721_v42 = vmul.f32 1.442695, %v3584_v21 }
 0x60c   : > { %v4103_v43 = vadd.f32 %v9438_v11, %v4102_v1  ;;  %v7263_v8 = vpop.eup %7262  ;;  %5883 = vst [vmem:[%s8917_s1 + $0x408] sm:$0xff] %v7261_v4  ;;  %7282 = vpow2.f32 %v4239_v26  ;;  %v4245_v17 = vmul.f32 1.442695, %v4108_v61  ;;  %v6612_v16 = vpop.f32.mrb[82].mxu1 }
 0x60d   : > { %v3719_v57 = vmul.f32 1.442695, %v3579_v22  ;;  %v7265_v41 = vpop.eup %7264  ;;  %5947 = vst [vmem:[%s8917_s1 + $0x508] sm:$0xff] %v7263_v8  ;;  %7284 = vpow2.f32 %v3721_v42  ;;  %v3594_v44 = vadd.f32 %v9438_v11, %v6612_v16  ;;  %v6662_v53 = vpop.f32.mrb[80].mxu0 }
 0x60e   : > { %v4243_v33 = vmul.f32 1.442695, %v4103_v43  ;;  %v3588_v30 = vpop.f32.mrb[83].mxu1  ;;  %v7267_v5 = vpop.eup %7266  ;;  %5882 = vst [vmem:[%s8917_s1 + $0x400] sm:$0xff] %v7265_v41  ;;  %7286 = vpow2.f32 %v4245_v17  ;;  %v4118_v12 = vadd.f32 %v9438_v11, %v6662_v53 }
 0x60f   : > { %v3589_v7 = vadd.f32 %v9438_v11, %v3588_v30  ;;  %v4112_v34 = vpop.f32.mrb[81].mxu0  ;;  %v7269_v47 = vpop.eup %7268  ;;  %5946 = vst [vmem:[%s8917_s1 + $0x500] sm:$0xff] %v7267_v5  ;;  %7288 = vpow2.f32 %v3719_v57  ;;  %v3725_v2 = vmul.f32 1.442695, %v3594_v44 }
 0x610   : > { %v4113_v60 = vadd.f32 %v9438_v11, %v4112_v34  ;;  %v7271_v14 = vpop.eup %7270  ;;  %5885 = vst [vmem:[%s8917_s1 + $0x418] sm:$0xff] %v7269_v47  ;;  %7290 = vpow2.f32 %v4243_v33  ;;  %v4249_v59 = vmul.f32 1.442695, %v4118_v12  ;;  %v6615_v52 = vpop.f32.mrb[84].mxu1 }
 0x611   : > { %v3723_v46 = vmul.f32 1.442695, %v3589_v7  ;;  %v7273_v37 = vpop.eup %7272  ;;  %5949 = vst [vmem:[%s8917_s1 + $0x518] sm:$0xff] %v7271_v14  ;;  %7292 = vpow2.f32 %v3725_v2  ;;  %v3604_v24 = vadd.f32 %v9438_v11, %v6615_v52  ;;  %v6665_v45 = vpop.f32.mrb[82].mxu0 }
 0x612   : > { %v4247_v55 = vmul.f32 1.442695, %v4113_v60  ;;  %v3598_v48 = vpop.f32.mrb[85].mxu1  ;;  %v7275_v62 = vpop.eup %7274  ;;  %5884 = vst [vmem:[%s8917_s1 + $0x410] sm:$0xff] %v7273_v37  ;;  %7294 = vpow2.f32 %v4249_v59  ;;  %v4128_v63 = vadd.f32 %v9438_v11, %v6665_v45 }
 0x613   : > { %v3599_v40 = vadd.f32 %v9438_v11, %v3598_v48  ;;  %v4122_v51 = vpop.f32.mrb[83].mxu0  ;;  %v7277_v9 = vpop.eup %7276  ;;  %5948 = vst [vmem:[%s8917_s1 + $0x510] sm:$0xff] %v7275_v62  ;;  %7296 = vpow2.f32 %v3723_v46  ;;  %v3729_v19 = vmul.f32 1.442695, %v3604_v24 }
 0x614   : > { %v4123_v13 = vadd.f32 %v9438_v11, %v4122_v51  ;;  %v7279_v39 = vpop.eup %7278  ;;  %5887 = vst [vmem:[%s8917_s1 + $0x428] sm:$0xff] %v7277_v9  ;;  %7298 = vpow2.f32 %v4247_v55  ;;  %v4253_v6 = vmul.f32 1.442695, %v4128_v63  ;;  %v6618_v56 = vpop.f32.mrb[86].mxu1 }
 0x615   : > { %v3727_v58 = vmul.f32 1.442695, %v3599_v40  ;;  %v7281_v10 = vpop.eup %7280  ;;  %5951 = vst [vmem:[%s8917_s1 + $0x528] sm:$0xff] %v7279_v39  ;;  %7300 = vpow2.f32 %v3729_v19  ;;  %v3614_v0 = vadd.f32 %v9438_v11, %v6618_v56  ;;  %v6668_v25 = vpop.f32.mrb[84].mxu0 }
 0x616   : > { %v4251_v27 = vmul.f32 1.442695, %v4123_v13  ;;  %v3608_v29 = vpop.f32.mrb[87].mxu1  ;;  %v7283_v54 = vpop.eup %7282  ;;  %5886 = vst [vmem:[%s8917_s1 + $0x420] sm:$0xff] %v7281_v10  ;;  %7302 = vpow2.f32 %v4253_v6  ;;  %v4138_v18 = vadd.f32 %v9438_v11, %v6668_v25 }
 0x617   : > { %v3609_v36 = vadd.f32 %v9438_v11, %v3608_v29  ;;  %v4132_v35 = vpop.f32.mrb[85].mxu0  ;;  %v7285_v23 = vpop.eup %7284  ;;  %5950 = vst [vmem:[%s8917_s1 + $0x520] sm:$0xff] %v7283_v54  ;;  %7304 = vpow2.f32 %v3727_v58  ;;  %v3733_v49 = vmul.f32 1.442695, %v3614_v0 }
 0x618   : > { %v4133_v28 = vadd.f32 %v9438_v11, %v4132_v35  ;;  %v7287_v20 = vpop.eup %7286  ;;  %5889 = vst [vmem:[%s8917_s1 + $0x438] sm:$0xff] %v7285_v23  ;;  %7306 = vpow2.f32 %v4251_v27  ;;  %v4257_v31 = vmul.f32 1.442695, %v4138_v18  ;;  %v6621_v15 = vpop.f32.mrb[88].mxu1 }
 0x619   : > { %v3731_v3 = vmul.f32 1.442695, %v3609_v36  ;;  %v7289_v26 = vpop.eup %7288  ;;  %5953 = vst [vmem:[%s8917_s1 + $0x538] sm:$0xff] %v7287_v20  ;;  %7308 = vpow2.f32 %v3733_v49  ;;  %v3624_v32 = vadd.f32 %v9438_v11, %v6621_v15  ;;  %v6671_v38 = vpop.f32.mrb[86].mxu0 }
 0x61a   : > { %v4255_v21 = vmul.f32 1.442695, %v4133_v28  ;;  %v3618_v50 = vpop.f32.mrb[89].mxu1  ;;  %v7291_v61 = vpop.eup %7290  ;;  %5888 = vst [vmem:[%s8917_s1 + $0x430] sm:$0xff] %v7289_v26  ;;  %7310 = vpow2.f32 %v4257_v31  ;;  %v4148_v22 = vadd.f32 %v9438_v11, %v6671_v38 }
 0x61b   : > { %v3619_v1 = vadd.f32 %v9438_v11, %v3618_v50  ;;  %v4142_v4 = vpop.f32.mrb[87].mxu0  ;;  %v7293_v42 = vpop.eup %7292  ;;  %5952 = vst [vmem:[%s8917_s1 + $0x530] sm:$0xff] %v7291_v61  ;;  %7312 = vpow2.f32 %v3731_v3  ;;  %v3737_v43 = vmul.f32 1.442695, %v3624_v32 }
 0x61c   : > { %v4143_v8 = vadd.f32 %v9438_v11, %v4142_v4  ;;  %v7295_v17 = vpop.eup %7294  ;;  %5891 = vst [vmem:[%s8917_s1 + $0x448] sm:$0xff] %v7293_v42  ;;  %7314 = vpow2.f32 %v4255_v21  ;;  %v4261_v57 = vmul.f32 1.442695, %v4148_v22  ;;  %v6624_v41 = vpop.f32.mrb[90].mxu1 }
 0x61d   : > { %v3735_v16 = vmul.f32 1.442695, %v3619_v1  ;;  %v7297_v33 = vpop.eup %7296  ;;  %5955 = vst [vmem:[%s8917_s1 + $0x548] sm:$0xff] %v7295_v17  ;;  %7316 = vpow2.f32 %v3737_v43  ;;  %v3634_v53 = vadd.f32 %v9438_v11, %v6624_v41  ;;  %v6674_v30 = vpop.f32.mrb[88].mxu0 }
 0x61e   : > { %v4259_v44 = vmul.f32 1.442695, %v4143_v8  ;;  %v3628_v5 = vpop.f32.mrb[91].mxu1  ;;  %v7299_v12 = vpop.eup %7298  ;;  %5890 = vst [vmem:[%s8917_s1 + $0x440] sm:$0xff] %v7297_v33  ;;  %7318 = vpow2.f32 %v4261_v57  ;;  %v4158_v7 = vadd.f32 %v9438_v11, %v6674_v30 }
 0x61f   : > { %v3629_v34 = vadd.f32 %v9438_v11, %v3628_v5  ;;  %v4152_v47 = vpop.f32.mrb[89].mxu0  ;;  %v7301_v2 = vpop.eup %7300  ;;  %5954 = vst [vmem:[%s8917_s1 + $0x540] sm:$0xff] %v7299_v12  ;;  %7320 = vpow2.f32 %v3735_v16  ;;  %v3741_v60 = vmul.f32 1.442695, %v3634_v53 }
 0x620   : > { %v4153_v14 = vadd.f32 %v9438_v11, %v4152_v47  ;;  %v7303_v59 = vpop.eup %7302  ;;  %5893 = vst [vmem:[%s8917_s1 + $0x458] sm:$0xff] %v7301_v2  ;;  %7322 = vpow2.f32 %v4259_v44  ;;  %v4265_v46 = vmul.f32 1.442695, %v4158_v7  ;;  %v6627_v37 = vpop.f32.mrb[92].mxu1 }
 0x621   : > { %v3739_v52 = vmul.f32 1.442695, %v3629_v34  ;;  %v7305_v55 = vpop.eup %7304  ;;  %5957 = vst [vmem:[%s8917_s1 + $0x558] sm:$0xff] %v7303_v59  ;;  %7324 = vpow2.f32 %v3741_v60  ;;  %v3644_v45 = vadd.f32 %v9438_v11, %v6627_v37  ;;  %v6677_v48 = vpop.f32.mrb[90].mxu0 }
 0x622   : > { %v4263_v24 = vmul.f32 1.442695, %v4153_v14  ;;  %v3638_v62 = vpop.f32.mrb[93].mxu1  ;;  %v7307_v63 = vpop.eup %7306  ;;  %5892 = vst [vmem:[%s8917_s1 + $0x450] sm:$0xff] %v7305_v55  ;;  %7326 = vpow2.f32 %v4265_v46  ;;  %v4168_v40 = vadd.f32 %v9438_v11, %v6677_v48 }
 0x623   : > { %v3639_v51 = vadd.f32 %v9438_v11, %v3638_v62  ;;  %v4162_v9 = vpop.f32.mrb[91].mxu0  ;;  %v7309_v19 = vpop.eup %7308  ;;  %5956 = vst [vmem:[%s8917_s1 + $0x550] sm:$0xff] %v7307_v63  ;;  %7328 = vpow2.f32 %v3739_v52  ;;  %v3745_v13 = vmul.f32 1.442695, %v3644_v45 }
 0x624   : > { %v4163_v39 = vadd.f32 %v9438_v11, %v4162_v9  ;;  %v7311_v6 = vpop.eup %7310  ;;  %5895 = vst [vmem:[%s8917_s1 + $0x468] sm:$0xff] %v7309_v19  ;;  %7330 = vpow2.f32 %v4263_v24  ;;  %v4269_v58 = vmul.f32 1.442695, %v4168_v40  ;;  %v6630_v10 = vpop.f32.mrb[94].mxu1 }
 0x625   : > { %v3743_v56 = vmul.f32 1.442695, %v3639_v51  ;;  %v7313_v27 = vpop.eup %7312  ;;  %5959 = vst [vmem:[%s8917_s1 + $0x568] sm:$0xff] %v7311_v6  ;;  %7332 = vpow2.f32 %v3745_v13  ;;  %v3654_v25 = vadd.f32 %v9438_v11, %v6630_v10  ;;  %v6680_v29 = vpop.f32.mrb[92].mxu0 }
 0x626   : > { %v4267_v0 = vmul.f32 1.442695, %v4163_v39  ;;  %v3648_v54 = vpop.f32.mrb[95].mxu1  ;;  %v7315_v18 = vpop.eup %7314  ;;  %5894 = vst [vmem:[%s8917_s1 + $0x460] sm:$0xff] %v7313_v27  ;;  %7334 = vpow2.f32 %v4269_v58  ;;  %v4178_v36 = vadd.f32 %v9438_v11, %v6680_v29 }
 0x627   : > { %v3649_v35 = vadd.f32 %v9438_v11, %v3648_v54  ;;  %v4172_v23 = vpop.f32.mrb[93].mxu0  ;;  %v7317_v49 = vpop.eup %7316  ;;  %5958 = vst [vmem:[%s8917_s1 + $0x560] sm:$0xff] %v7315_v18  ;;  %7336 = vpow2.f32 %v3743_v56  ;;  %v3749_v28 = vmul.f32 1.442695, %v3654_v25 }
 0x628   : > { %v4173_v20 = vadd.f32 %v9438_v11, %v4172_v23  ;;  %v7319_v31 = vpop.eup %7318  ;;  %5897 = vst [vmem:[%s8917_s1 + $0x478] sm:$0xff] %v7317_v49  ;;  %7338 = vpow2.f32 %v4267_v0  ;;  %v4273_v3 = vmul.f32 1.442695, %v4178_v36  ;;  %v6633_v26 = vpop.f32.mrb[96].mxu1 }
 0x629   : > { %v3747_v15 = vmul.f32 1.442695, %v3649_v35  ;;  %v7321_v21 = vpop.eup %7320  ;;  %5961 = vst [vmem:[%s8917_s1 + $0x578] sm:$0xff] %v7319_v31  ;;  %7340 = vpow2.f32 %v3749_v28  ;;  %v3664_v38 = vadd.f32 %v9438_v11, %v6633_v26  ;;  %v6683_v50 = vpop.f32.mrb[94].mxu0 }
 0x62a   : > { %v4271_v32 = vmul.f32 1.442695, %v4173_v20  ;;  %v3658_v61 = vpop.f32.mrb[97].mxu1  ;;  %v7323_v22 = vpop.eup %7322  ;;  %5896 = vst [vmem:[%s8917_s1 + $0x470] sm:$0xff] %v7321_v21  ;;  %7342 = vpow2.f32 %v4273_v3  ;;  %v4188_v1 = vadd.f32 %v9438_v11, %v6683_v50 }
 0x62b   : > { %v3659_v4 = vadd.f32 %v9438_v11, %v3658_v61  ;;  %v4182_v42 = vpop.f32.mrb[95].mxu0  ;;  %v7325_v43 = vpop.eup %7324  ;;  %5960 = vst [vmem:[%s8917_s1 + $0x570] sm:$0xff] %v7323_v22  ;;  %7344 = vpow2.f32 %v3747_v15  ;;  %v3753_v8 = vmul.f32 1.442695, %v3664_v38 }
 0x62c   : > { %v4183_v17 = vadd.f32 %v9438_v11, %v4182_v42  ;;  %v7327_v57 = vpop.eup %7326  ;;  %5899 = vst [vmem:[%s8917_s1 + $0x488] sm:$0xff] %v7325_v43  ;;  %7346 = vpow2.f32 %v4271_v32  ;;  %v4277_v16 = vmul.f32 1.442695, %v4188_v1  ;;  %v6636_v33 = vpop.f32.mrb[98].mxu1 }
 0x62d   : > { %v3751_v41 = vmul.f32 1.442695, %v3659_v4  ;;  %v7329_v44 = vpop.eup %7328  ;;  %5963 = vst [vmem:[%s8917_s1 + $0x588] sm:$0xff] %v7327_v57  ;;  %7348 = vpow2.f32 %v3753_v8  ;;  %v3674_v30 = vadd.f32 %v9438_v11, %v6636_v33  ;;  %v6686_v5 = vpop.f32.mrb[96].mxu0 }
 0x62e   : > { %v4275_v53 = vmul.f32 1.442695, %v4183_v17  ;;  %v3668_v12 = vpop.f32.mrb[99].mxu1  ;;  %v7331_v7 = vpop.eup %7330  ;;  %5898 = vst [vmem:[%s8917_s1 + $0x480] sm:$0xff] %v7329_v44  ;;  %7350 = vpow2.f32 %v4277_v16  ;;  %v4198_v34 = vadd.f32 %v9438_v11, %v6686_v5 }
 0x62f   : > { %v3669_v47 = vadd.f32 %v9438_v11, %v3668_v12  ;;  %v4192_v2 = vpop.f32.mrb[97].mxu0  ;;  %v7333_v60 = vpop.eup %7332  ;;  %5962 = vst [vmem:[%s8917_s1 + $0x580] sm:$0xff] %v7331_v7  ;;  %7352 = vpow2.f32 %v3751_v41  ;;  %v3757_v14 = vmul.f32 1.442695, %v3674_v30 }
 0x630   : > { %v4193_v59 = vadd.f32 %v9438_v11, %v4192_v2  ;;  %v7335_v46 = vpop.eup %7334  ;;  %5901 = vst [vmem:[%s8917_s1 + $0x498] sm:$0xff] %v7333_v60  ;;  %7354 = vpow2.f32 %v4275_v53  ;;  %v4281_v52 = vmul.f32 1.442695, %v4198_v34  ;;  %v6639_v55 = vpop.f32.mrb[100].mxu1 }
 0x631   : > { %v3755_v37 = vmul.f32 1.442695, %v3669_v47  ;;  %v7337_v24 = vpop.eup %7336  ;;  %5965 = vst [vmem:[%s8917_s1 + $0x598] sm:$0xff] %v7335_v46  ;;  %7356 = vpow2.f32 %v3757_v14  ;;  %v3684_v48 = vadd.f32 %v9438_v11, %v6639_v55  ;;  %v6689_v62 = vpop.f32.mrb[98].mxu0 }
 0x632   : > { %v4279_v45 = vmul.f32 1.442695, %v4193_v59  ;;  %v3678_v63 = vpop.f32.mrb[101].mxu1  ;;  %v7339_v40 = vpop.eup %7338  ;;  %5900 = vst [vmem:[%s8917_s1 + $0x490] sm:$0xff] %v7337_v24  ;;  %7358 = vpow2.f32 %v4281_v52  ;;  %v4208_v51 = vadd.f32 %v9438_v11, %v6689_v62 }
 0x633   : > { %v3679_v9 = vadd.f32 %v9438_v11, %v3678_v63  ;;  %v4202_v19 = vpop.f32.mrb[99].mxu0  ;;  %v7341_v13 = vpop.eup %7340  ;;  %5964 = vst [vmem:[%s8917_s1 + $0x590] sm:$0xff] %v7339_v40  ;;  %7360 = vpow2.f32 %v3755_v37  ;;  %v3761_v39 = vmul.f32 1.442695, %v3684_v48 }
 0x634   : > { %v4203_v6 = vadd.f32 %v9438_v11, %v4202_v19  ;;  %v7343_v58 = vpop.eup %7342  ;;  %5903 = vst [vmem:[%s8917_s1 + $0x4a8] sm:$0xff] %v7341_v13  ;;  %7362 = vpow2.f32 %v4279_v45  ;;  %v4285_v56 = vmul.f32 1.442695, %v4208_v51  ;;  %v6642_v27 = vpop.f32.mrb[102].mxu1 }
 0x635   : > { %v3759_v10 = vmul.f32 1.442695, %v3679_v9  ;;  %v7345_v0 = vpop.eup %7344  ;;  %5967 = vst [vmem:[%s8917_s1 + $0x5a8] sm:$0xff] %v7343_v58  ;;  %7364 = vpow2.f32 %v3761_v39  ;;  %v3694_v29 = vadd.f32 %v9438_v11, %v6642_v27  ;;  %v6692_v54 = vpop.f32.mrb[100].mxu0  ;;  %v9613_v27 = vld [vmem:[#allocation13] ss:$0 sm:$0xff] }
 0x636   : > { %v4283_v25 = vmul.f32 1.442695, %v4203_v6  ;;  %v3688_v18 = vpop.f32.mrb[103].mxu1  ;;  %v7347_v36 = vpop.eup %7346  ;;  %5902 = vst [vmem:[%s8917_s1 + $0x4a0] sm:$0xff] %v7345_v0  ;;  %7366 = vpow2.f32 %v4285_v56  ;;  %v4218_v35 = vadd.f32 %v9438_v11, %v6692_v54 }
 0x637   : > { %v3689_v23 = vadd.f32 %v9438_v11, %v3688_v18  ;;  %v4212_v49 = vpop.f32.mrb[101].mxu0  ;;  %v7349_v28 = vpop.eup %7348  ;;  %5966 = vst [vmem:[%s8917_s1 + $0x5a0] sm:$0xff] %v7347_v36  ;;  %7368 = vpow2.f32 %v3759_v10  ;;  %v3765_v20 = vmul.f32 1.442695, %v3694_v29 }
 0x638   : > { %v4213_v31 = vadd.f32 %v9438_v11, %v4212_v49  ;;  %v7351_v3 = vpop.eup %7350  ;;  %5905 = vst [vmem:[%s8917_s1 + $0x4b8] sm:$0xff] %v7349_v28  ;;  %7370 = vpow2.f32 %v4283_v25  ;;  %v4289_v15 = vmul.f32 1.442695, %v4218_v35  ;;  %v6645_v21 = vpop.f32.mrb[104].mxu1 }
 0x639   : > { %v3763_v26 = vmul.f32 1.442695, %v3689_v23  ;;  %v7353_v32 = vpop.eup %7352  ;;  %5969 = vst [vmem:[%s8917_s1 + $0x5b8] sm:$0xff] %v7351_v3  ;;  %7372 = vpow2.f32 %v3765_v20  ;;  %v3704_v50 = vadd.f32 %v9438_v11, %v6645_v21  ;;  %v6695_v61 = vpop.f32.mrb[102].mxu0 }
 0x63a   : > { %v4287_v38 = vmul.f32 1.442695, %v4213_v31  ;;  %v3698_v22 = vpop.f32.mrb[105].mxu1  ;;  %v7355_v1 = vpop.eup %7354  ;;  %5904 = vst [vmem:[%s8917_s1 + $0x4b0] sm:$0xff] %v7353_v32  ;;  %7374 = vpow2.f32 %v4289_v15  ;;  %v4228_v4 = vadd.f32 %v9438_v11, %v6695_v61 }
 0x63b   : > { %v3699_v42 = vadd.f32 %v9438_v11, %v3698_v22  ;;  %v4222_v43 = vpop.f32.mrb[103].mxu0  ;;  %v7357_v8 = vpop.eup %7356  ;;  %5968 = vst [vmem:[%s8917_s1 + $0x5b0] sm:$0xff] %v7355_v1  ;;  %7376 = vpow2.f32 %v3763_v26  ;;  %v3769_v17 = vmul.f32 1.442695, %v3704_v50 }
 0x63c   : > { %v4223_v57 = vadd.f32 %v9438_v11, %v4222_v43  ;;  %v7359_v16 = vpop.eup %7358  ;;  %5907 = vst [vmem:[%s8917_s1 + $0x4c8] sm:$0xff] %v7357_v8  ;;  %7378 = vpow2.f32 %v4287_v38  ;;  %v4293_v41 = vmul.f32 1.442695, %v4228_v4  ;;  %v6700_v7 = vpop.f32.mrb[106].mxu1 }
 0x63d   : > { %v3767_v33 = vmul.f32 1.442695, %v3699_v42  ;;  %v7361_v44 = vpop.eup %7360  ;;  %5971 = vst [vmem:[%s8917_s1 + $0x5c8] sm:$0xff] %v7359_v16  ;;  %7380 = vpow2.f32 %v3769_v17  ;;  %v4602_v47 = vadd.f32 %v9438_v11, %v6700_v7  ;;  %v6750_v2 = vpop.f32.mrb[104].mxu0 }
 0x63e   : > { %v4291_v53 = vmul.f32 1.442695, %v4223_v57  ;;  %v7363_v30 = vpop.eup %7362  ;;  %5906 = vst [vmem:[%s8917_s1 + $0x4c0] sm:$0xff] %v7361_v44  ;;  %7382 = vpow2.f32 %v4293_v41  ;;  %v4596_v60 = vpop.f32.mrb[107].mxu1  ;;  %v5126_v59 = vadd.f32 %v9438_v11, %v6750_v2 }
 0x63f   : > { %v7365_v5 = vpop.eup %7364  ;;  %5970 = vst [vmem:[%s8917_s1 + $0x5c0] sm:$0xff] %v7363_v30  ;;  %7384 = vpow2.f32 %v3767_v33  ;;  %v4597_v46 = vadd.f32 %v9438_v11, %v4596_v60  ;;  %v5120_v52 = vpop.f32.mrb[105].mxu0  ;;  %v4757_v55 = vmul.f32 1.442695, %v4602_v47 }
 0x640   : > { %v7367_v12 = vpop.eup %7366  ;;  %5909 = vst [vmem:[%s8917_s1 + $0x4d8] sm:$0xff] %v7365_v5  ;;  %7386 = vpow2.f32 %v4291_v53  ;;  %v5121_v24 = vadd.f32 %v9438_v11, %v5120_v52  ;;  %v5281_v48 = vmul.f32 1.442695, %v5126_v59  ;;  %v6703_v13 = vpop.f32.mrb[108].mxu1 }
 0x641   : > { %v7369_v34 = vpop.eup %7368  ;;  %5973 = vst [vmem:[%s8917_s1 + $0x5d8] sm:$0xff] %v7367_v12  ;;  %v4755_v62 = vmul.f32 1.442695, %v4597_v46  ;;  %7388 = vpow2.f32 %v4757_v55  ;;  %v4612_v6 = vadd.f32 %v9438_v11, %v6703_v13  ;;  %v6753_v58 = vpop.f32.mrb[106].mxu0 }
 0x642   : > { %v7371_v14 = vpop.eup %7370  ;;  %5908 = vst [vmem:[%s8917_s1 + $0x4d0] sm:$0xff] %v7369_v34  ;;  %v5279_v40 = vmul.f32 1.442695, %v5121_v24  ;;  %7390 = vpow2.f32 %v5281_v48  ;;  %v4606_v56 = vpop.f32.mrb[109].mxu1  ;;  %v5136_v0 = vadd.f32 %v9613_v27, %v6753_v58 }
 0x643   : > { %v7373_v37 = vpop.eup %7372  ;;  %5972 = vst [vmem:[%s8917_s1 + $0x5d0] sm:$0xff] %v7371_v14  ;;  %7392 = vpow2.f32 %v4755_v62  ;;  %v4607_v25 = vadd.f32 %v9613_v27, %v4606_v56  ;;  %v5130_v29 = vpop.f32.mrb[107].mxu0  ;;  %v4761_v54 = vmul.f32 1.442695, %v4612_v6 }
 0x644   : > { %v7375_v45 = vpop.eup %7374  ;;  %5911 = vst [vmem:[%s8917_s1 + $0x4e8] sm:$0xff] %v7373_v37  ;;  %7394 = vpow2.f32 %v5279_v40  ;;  %v5131_v18 = vadd.f32 %v9613_v27, %v5130_v29  ;;  %v5285_v36 = vmul.f32 1.442695, %v5136_v0 }
 0x645   : > { %v7377_v63 = vpop.eup %7376  ;;  %5975 = vst [vmem:[%s8917_s1 + $0x5e8] sm:$0xff] %v7375_v45  ;;  %v4759_v35 = vmul.f32 1.442695, %v4607_v25  ;;  %7396 = vpow2.f32 %v4761_v54 }
 0x646   : > { %v7379_v51 = vpop.eup %7378  ;;  %5910 = vst [vmem:[%s8917_s1 + $0x4e0] sm:$0xff] %v7377_v63  ;;  %v5283_v11 = vmul.f32 1.442695, %v5131_v18  ;;  %7398 = vpow2.f32 %v5285_v36 }
 0x647   : > { %v7381_v9 = vpop.eup %7380  ;;  %5974 = vst [vmem:[%s8917_s1 + $0x5e0] sm:$0xff] %v7379_v51  ;;  %7400 = vpow2.f32 %v4759_v35  ;;  %v6706_v28 = vpop.f32.mrb[110].mxu1 }
 0x648   : > { %v7383_v19 = vpop.eup %7382  ;;  %5913 = vst [vmem:[%s8917_s1 + $0x4f8] sm:$0xff] %v7381_v9  ;;  %7402 = vpow2.f32 %v5283_v11  ;;  %v4622_v31 = vadd.f32 %v9613_v27, %v6706_v28  ;;  %v6756_v3 = vpop.f32.mrb[108].mxu0 }
 0x649   : > { %v7385_v39 = vpop.eup %7384  ;;  %5977 = vst [vmem:[%s8917_s1 + $0x5f8] sm:$0xff] %v7383_v19  ;;  %v4616_v15 = vpop.f32.mrb[111].mxu1  ;;  %v5146_v21 = vadd.f32 %v9613_v27, %v6756_v3 }
 0x64a   : > { %v7387_v10 = vpop.eup %7386  ;;  %5912 = vst [vmem:[%s8917_s1 + $0x4f0] sm:$0xff] %v7385_v39  ;;  %v4617_v32 = vadd.f32 %v9613_v27, %v4616_v15  ;;  %v5140_v38 = vpop.f32.mrb[109].mxu0  ;;  %v4765_v50 = vmul.f32 1.442695, %v4622_v31 }
 0x64b   : > { %5976 = vst [vmem:[%s8917_s1 + $0x5f0] sm:$0xff] %v7387_v10  ;;  %v7389_v23 = vpop.eup %7388  ;;  %v5141_v61 = vadd.f32 %v9613_v27, %v5140_v38  ;;  %v5289_v22 = vmul.f32 1.442695, %v5146_v21 }
 0x64c   : > { %v7391_v49 = vpop.eup %7390  ;;  %6011 = vst [vmem:[%s8917_s1 + $0x608] sm:$0xff] %v7389_v23  ;;  %v4763_v1 = vmul.f32 1.442695, %v4617_v32  ;;  %7404 = vpow2.f32 %v4765_v50 }
 0x64d   : > { %v7393_v20 = vpop.eup %7392  ;;  %6075 = vst [vmem:[%s8917_s1 + $0x708] sm:$0xff] %v7391_v49  ;;  %v5287_v4 = vmul.f32 1.442695, %v5141_v61  ;;  %7406 = vpow2.f32 %v5289_v22 }
 0x64e   : > { %v7395_v26 = vpop.eup %7394  ;;  %6010 = vst [vmem:[%s8917_s1 + $0x600] sm:$0xff] %v7393_v20  ;;  %7408 = vpow2.f32 %v4763_v1 }
 0x64f   : > { %6074 = vst [vmem:[%s8917_s1 + $0x700] sm:$0xff] %v7395_v26  ;;  %v7397_v42 = vpop.eup %7396  ;;  %7410 = vpow2.f32 %v5287_v4  ;;  %v6709_v8 = vpop.f32.mrb[112].mxu1 }
 0x650   : > { %v7399_v43 = vpop.eup %7398  ;;  %6013 = vst [vmem:[%s8917_s1 + $0x618] sm:$0xff] %v7397_v42  ;;  %v4632_v57 = vadd.f32 %v9613_v27, %v6709_v8  ;;  %v6759_v16 = vpop.f32.mrb[110].mxu0 }
 0x651   : > { %v7401_v17 = vpop.eup %7400  ;;  %6077 = vst [vmem:[%s8917_s1 + $0x718] sm:$0xff] %v7399_v43  ;;  %v4626_v41 = vpop.f32.mrb[113].mxu1  ;;  %v5156_v44 = vadd.f32 %v9613_v27, %v6759_v16 }
 0x652   : > { %v7403_v33 = vpop.eup %7402  ;;  %6012 = vst [vmem:[%s8917_s1 + $0x610] sm:$0xff] %v7401_v17  ;;  %v4627_v53 = vadd.f32 %v9613_v27, %v4626_v41  ;;  %v5150_v30 = vpop.f32.mrb[111].mxu0  ;;  %v4769_v5 = vmul.f32 1.442695, %v4632_v57 }
 0x653   : > { %6076 = vst [vmem:[%s8917_s1 + $0x710] sm:$0xff] %v7403_v33  ;;  %v5151_v12 = vadd.f32 %v9613_v27, %v5150_v30  ;;  %v5293_v7 = vmul.f32 1.442695, %v5156_v44 }
 0x654   : > { %v4767_v34 = vmul.f32 1.442695, %v4627_v53  ;;  %7412 = vpow2.f32 %v4769_v5 }
 0x655   : > { %v5291_v47 = vmul.f32 1.442695, %v5151_v12  ;;  %7414 = vpow2.f32 %v5293_v7 }
 0x656   : > { %v7405_v2 = vpop.eup %7404  ;;  %7416 = vpow2.f32 %v4767_v34 }
 0x657   : > { %v7407_v60 = vpop.eup %7406  ;;  %6015 = vst [vmem:[%s8917_s1 + $0x628] sm:$0xff] %v7405_v2  ;;  %7418 = vpow2.f32 %v5291_v47  ;;  %v6712_v14 = vpop.f32.mrb[114].mxu1 }
 0x658   : > { %v7409_v59 = vpop.eup %7408  ;;  %6079 = vst [vmem:[%s8917_s1 + $0x728] sm:$0xff] %v7407_v60  ;;  %v4642_v46 = vadd.f32 %v9613_v27, %v6712_v14  ;;  %v6762_v52 = vpop.f32.mrb[112].mxu0 }
 0x659   : > { %v4636_v37 = vpop.f32.mrb[115].mxu1  ;;  %v7411_v55 = vpop.eup %7410  ;;  %6014 = vst [vmem:[%s8917_s1 + $0x620] sm:$0xff] %v7409_v59  ;;  %v5166_v24 = vadd.f32 %v9613_v27, %v6762_v52 }
 0x65a   : > { %v4637_v45 = vadd.f32 %v9613_v27, %v4636_v37  ;;  %v5160_v48 = vpop.f32.mrb[113].mxu0  ;;  %6078 = vst [vmem:[%s8917_s1 + $0x720] sm:$0xff] %v7411_v55  ;;  %v4773_v62 = vmul.f32 1.442695, %v4642_v46 }
 0x65b   : > { %v5161_v63 = vadd.f32 %v9613_v27, %v5160_v48  ;;  %v5297_v40 = vmul.f32 1.442695, %v5166_v24 }
 0x65c   : > { %v4771_v51 = vmul.f32 1.442695, %v4637_v45  ;;  %7420 = vpow2.f32 %v4773_v62 }
 0x65d   : > { %v5295_v9 = vmul.f32 1.442695, %v5161_v63  ;;  %7422 = vpow2.f32 %v5297_v40 }
 0x65e   : > { %v7413_v19 = vpop.eup %7412  ;;  %7424 = vpow2.f32 %v4771_v51 }
 0x65f   : > { %v7415_v13 = vpop.eup %7414  ;;  %6017 = vst [vmem:[%s8917_s1 + $0x638] sm:$0xff] %v7413_v19  ;;  %7426 = vpow2.f32 %v5295_v9  ;;  %v6715_v39 = vpop.f32.mrb[116].mxu1 }
 0x660   : > { %v7417_v6 = vpop.eup %7416  ;;  %6081 = vst [vmem:[%s8917_s1 + $0x738] sm:$0xff] %v7415_v13  ;;  %v4652_v58 = vadd.f32 %v9613_v27, %v6715_v39  ;;  %v6765_v56 = vpop.f32.mrb[114].mxu0 }
 0x661   : > { %v4646_v10 = vpop.f32.mrb[117].mxu1  ;;  %v7419_v0 = vpop.eup %7418  ;;  %6016 = vst [vmem:[%s8917_s1 + $0x630] sm:$0xff] %v7417_v6  ;;  %v5176_v25 = vadd.f32 %v9613_v27, %v6765_v56 }
 0x662   : > { %v4647_v29 = vadd.f32 %v9613_v27, %v4646_v10  ;;  %v5170_v54 = vpop.f32.mrb[115].mxu0  ;;  %6080 = vst [vmem:[%s8917_s1 + $0x730] sm:$0xff] %v7419_v0  ;;  %v4777_v18 = vmul.f32 1.442695, %v4652_v58 }
 0x663   : > { %v5171_v36 = vadd.f32 %v9613_v27, %v5170_v54  ;;  %v5301_v35 = vmul.f32 1.442695, %v5176_v25 }
 0x664   : > { %v4775_v11 = vmul.f32 1.442695, %v4647_v29  ;;  %7428 = vpow2.f32 %v4777_v18 }
 0x665   : > { %v5299_v23 = vmul.f32 1.442695, %v5171_v36  ;;  %7430 = vpow2.f32 %v5301_v35 }
 0x666   : > { %v7421_v49 = vpop.eup %7420  ;;  %7432 = vpow2.f32 %v4775_v11 }
 0x667   : > { %v7423_v28 = vpop.eup %7422  ;;  %6019 = vst [vmem:[%s8917_s1 + $0x648] sm:$0xff] %v7421_v49  ;;  %7434 = vpow2.f32 %v5299_v23  ;;  %v6718_v20 = vpop.f32.mrb[118].mxu1 }
 0x668   : > { %v7425_v31 = vpop.eup %7424  ;;  %6083 = vst [vmem:[%s8917_s1 + $0x748] sm:$0xff] %v7423_v28  ;;  %v4662_v3 = vadd.f32 %v9613_v27, %v6718_v20  ;;  %v6768_v15 = vpop.f32.mrb[116].mxu0 }
 0x669   : > { %v4656_v26 = vpop.f32.mrb[119].mxu1  ;;  %v7427_v21 = vpop.eup %7426  ;;  %6018 = vst [vmem:[%s8917_s1 + $0x640] sm:$0xff] %v7425_v31  ;;  %v5186_v32 = vadd.f32 %v9613_v27, %v6768_v15 }
 0x66a   : > { %v4657_v38 = vadd.f32 %v9613_v27, %v4656_v26  ;;  %v5180_v50 = vpop.f32.mrb[117].mxu0  ;;  %6082 = vst [vmem:[%s8917_s1 + $0x740] sm:$0xff] %v7427_v21  ;;  %v4781_v61 = vmul.f32 1.442695, %v4662_v3 }
 0x66b   : > { %v5181_v22 = vadd.f32 %v9613_v27, %v5180_v50  ;;  %v5305_v1 = vmul.f32 1.442695, %v5186_v32 }
 0x66c   : > { %v4779_v4 = vmul.f32 1.442695, %v4657_v38  ;;  %7436 = vpow2.f32 %v4781_v61 }
 0x66d   : > { %v5303_v42 = vmul.f32 1.442695, %v5181_v22  ;;  %7438 = vpow2.f32 %v5305_v1 }
 0x66e   : > { %v7429_v43 = vpop.eup %7428  ;;  %7440 = vpow2.f32 %v4779_v4 }
 0x66f   : > { %v7431_v8 = vpop.eup %7430  ;;  %6021 = vst [vmem:[%s8917_s1 + $0x658] sm:$0xff] %v7429_v43  ;;  %7442 = vpow2.f32 %v5303_v42  ;;  %v6721_v17 = vpop.f32.mrb[120].mxu1 }
 0x670   : > { %v7433_v57 = vpop.eup %7432  ;;  %6085 = vst [vmem:[%s8917_s1 + $0x758] sm:$0xff] %v7431_v8  ;;  %v4672_v16 = vadd.f32 %v9613_v27, %v6721_v17  ;;  %v4666_v33 = vpop.f32.mrb[121].mxu1 }
 0x671   : > { %v6771_v41 = vpop.f32.mrb[118].mxu0  ;;  %v7435_v44 = vpop.eup %7434  ;;  %6020 = vst [vmem:[%s8917_s1 + $0x650] sm:$0xff] %v7433_v57  ;;  %v4667_v30 = vadd.f32 %v9613_v27, %v4666_v33 }
 0x672   : > { %v5196_v53 = vadd.f32 %v9613_v27, %v6771_v41  ;;  %v5190_v5 = vpop.f32.mrb[119].mxu0  ;;  %6084 = vst [vmem:[%s8917_s1 + $0x750] sm:$0xff] %v7435_v44  ;;  %v4785_v12 = vmul.f32 1.442695, %v4672_v16 }
 0x673   : > { %v5191_v7 = vadd.f32 %v9613_v27, %v5190_v5  ;;  %v4783_v47 = vmul.f32 1.442695, %v4667_v30 }
 0x674   : > { %v5309_v34 = vmul.f32 1.442695, %v5196_v53  ;;  %7444 = vpow2.f32 %v4785_v12 }
 0x675   : > { %v5307_v2 = vmul.f32 1.442695, %v5191_v7 }
 0x676   : > { %7446 = vpow2.f32 %v5309_v34  ;;  %v7437_v60 = vpop.eup %7436 }
 0x677   : > { %7448 = vpow2.f32 %v4783_v47  ;;  %v7439_v14 = vpop.eup %7438  ;;  %6023 = vst [vmem:[%s8917_s1 + $0x668] sm:$0xff] %v7437_v60  ;;  %v6724_v59 = vpop.f32.mrb[122].mxu1 }
 0x678   : > { %7450 = vpow2.f32 %v5307_v2  ;;  %v7441_v46 = vpop.eup %7440  ;;  %6087 = vst [vmem:[%s8917_s1 + $0x768] sm:$0xff] %v7439_v14  ;;  %v4682_v52 = vadd.f32 %v9613_v27, %v6724_v59  ;;  %v4676_v55 = vpop.f32.mrb[123].mxu1 }
 0x679   : > { %v6774_v37 = vpop.f32.mrb[120].mxu0  ;;  %v7443_v24 = vpop.eup %7442  ;;  %6022 = vst [vmem:[%s8917_s1 + $0x660] sm:$0xff] %v7441_v46  ;;  %v4677_v48 = vadd.f32 %v9613_v27, %v4676_v55 }
 0x67a   : > { %v5206_v45 = vadd.f32 %v9613_v27, %v6774_v37  ;;  %v5200_v62 = vpop.f32.mrb[121].mxu0  ;;  %6086 = vst [vmem:[%s8917_s1 + $0x760] sm:$0xff] %v7443_v24  ;;  %v4789_v63 = vmul.f32 1.442695, %v4682_v52 }
 0x67b   : > { %v5201_v40 = vadd.f32 %v9613_v27, %v5200_v62  ;;  %v4787_v9 = vmul.f32 1.442695, %v4677_v48 }
 0x67c   : > { %v5313_v51 = vmul.f32 1.442695, %v5206_v45  ;;  %7452 = vpow2.f32 %v4789_v63 }
 0x67d   : > { %v5311_v19 = vmul.f32 1.442695, %v5201_v40 }
 0x67e   : > { %7454 = vpow2.f32 %v5313_v51  ;;  %v7445_v13 = vpop.eup %7444 }
 0x67f   : > { %7456 = vpow2.f32 %v4787_v9  ;;  %6025 = vst [vmem:[%s8917_s1 + $0x678] sm:$0xff] %v7445_v13  ;;  %v6727_v6 = vpop.f32.mrb[124].mxu1 }
 0x680   : > { %v7447_v39 = vpop.eup %7446  ;;  %7458 = vpow2.f32 %v5311_v19  ;;  %v4692_v56 = vadd.f32 %v9613_v27, %v6727_v6  ;;  %v4686_v0 = vpop.f32.mrb[125].mxu1 }
 0x681   : > { %v7449_v58 = vpop.eup %7448  ;;  %6089 = vst [vmem:[%s8917_s1 + $0x778] sm:$0xff] %v7447_v39  ;;  %v6777_v10 = vpop.f32.mrb[122].mxu0  ;;  %v4687_v54 = vadd.f32 %v9613_v27, %v4686_v0 }
 0x682   : > { %v7451_v25 = vpop.eup %7450  ;;  %6024 = vst [vmem:[%s8917_s1 + $0x670] sm:$0xff] %v7449_v58  ;;  %v5216_v29 = vadd.f32 %v9613_v27, %v6777_v10  ;;  %v5210_v18 = vpop.f32.mrb[123].mxu0  ;;  %v4793_v36 = vmul.f32 1.442695, %v4692_v56 }
 0x683   : > { %6088 = vst [vmem:[%s8917_s1 + $0x770] sm:$0xff] %v7451_v25  ;;  %v5211_v35 = vadd.f32 %v9613_v27, %v5210_v18  ;;  %v4791_v23 = vmul.f32 1.442695, %v4687_v54 }
 0x684   : > { %v5317_v11 = vmul.f32 1.442695, %v5216_v29  ;;  %7460 = vpow2.f32 %v4793_v36 }
 0x685   : > { %v5315_v49 = vmul.f32 1.442695, %v5211_v35 }
 0x686   : > { %7462 = vpow2.f32 %v5317_v11  ;;  %v7453_v28 = vpop.eup %7452 }
 0x687   : > { %7464 = vpow2.f32 %v4791_v23  ;;  %6027 = vst [vmem:[%s8917_s1 + $0x688] sm:$0xff] %v7453_v28 }
 0x688   : > { %v7455_v20 = vpop.eup %7454  ;;  %7466 = vpow2.f32 %v5315_v49  ;;  %v6730_v31 = vpop.f32.mrb[126].mxu1 }
 0x689   : > { %v7457_v3 = vpop.eup %7456  ;;  %6091 = vst [vmem:[%s8917_s1 + $0x788] sm:$0xff] %v7455_v20  ;;  %v4702_v15 = vadd.f32 %v9613_v27, %v6730_v31  ;;  %v4696_v21 = vpop.f32.mrb[127].mxu1 }
 0x68a   : > { %v6780_v26 = vpop.f32.mrb[124].mxu0  ;;  %v7459_v32 = vpop.eup %7458  ;;  %6026 = vst [vmem:[%s8917_s1 + $0x680] sm:$0xff] %v7457_v3  ;;  %v4697_v50 = vadd.f32 %v9613_v27, %v4696_v21 }
 0x68b   : > { %v5226_v38 = vadd.f32 %v9613_v27, %v6780_v26  ;;  %v5220_v61 = vpop.f32.mrb[125].mxu0  ;;  %6090 = vst [vmem:[%s8917_s1 + $0x780] sm:$0xff] %v7459_v32  ;;  %v4797_v22 = vmul.f32 1.442695, %v4702_v15 }
 0x68c   : > { %v5221_v1 = vadd.f32 %v9613_v27, %v5220_v61  ;;  %v4795_v42 = vmul.f32 1.442695, %v4697_v50 }
 0x68d   : > { %v5321_v4 = vmul.f32 1.442695, %v5226_v38  ;;  %7468 = vpow2.f32 %v4797_v22 }
 0x68e   : > { %v5319_v43 = vmul.f32 1.442695, %v5221_v1  ;;  %v7461_v8 = vpop.eup %7460 }
 0x68f   : > { %7470 = vpow2.f32 %v5321_v4  ;;  %6029 = vst [vmem:[%s8917_s1 + $0x698] sm:$0xff] %v7461_v8 }
 0x690   : > { %7472 = vpow2.f32 %v4795_v42  ;;  %v7463_v17 = vpop.eup %7462  ;;  %v6733_v57 = vpop.f32.mrb[128].mxu1 }
 0x691   : > { %7474 = vpow2.f32 %v5319_v43  ;;  %v7465_v16 = vpop.eup %7464  ;;  %6093 = vst [vmem:[%s8917_s1 + $0x798] sm:$0xff] %v7463_v17  ;;  %v4712_v41 = vadd.f32 %v9613_v27, %v6733_v57  ;;  %v4706_v44 = vpop.f32.mrb[129].mxu1 }
 0x692   : > { %v6783_v33 = vpop.f32.mrb[126].mxu0  ;;  %v7467_v53 = vpop.eup %7466  ;;  %6028 = vst [vmem:[%s8917_s1 + $0x690] sm:$0xff] %v7465_v16  ;;  %v4707_v5 = vadd.f32 %v9613_v27, %v4706_v44 }
 0x693   : > { %v5236_v30 = vadd.f32 %v9613_v27, %v6783_v33  ;;  %v5230_v12 = vpop.f32.mrb[127].mxu0  ;;  %6092 = vst [vmem:[%s8917_s1 + $0x790] sm:$0xff] %v7467_v53  ;;  %v4801_v7 = vmul.f32 1.442695, %v4712_v41 }
 0x694   : > { %v5231_v34 = vadd.f32 %v9613_v27, %v5230_v12  ;;  %v4799_v2 = vmul.f32 1.442695, %v4707_v5 }
 0x695   : > { %v5325_v47 = vmul.f32 1.442695, %v5236_v30  ;;  %7476 = vpow2.f32 %v4801_v7 }
 0x696   : > { %v5323_v60 = vmul.f32 1.442695, %v5231_v34 }
 0x697   : > { %7478 = vpow2.f32 %v5325_v47  ;;  %v7469_v14 = vpop.eup %7468 }
 0x698   : > { %7480 = vpow2.f32 %v4799_v2  ;;  %6031 = vst [vmem:[%s8917_s1 + $0x6a8] sm:$0xff] %v7469_v14 }
 0x699   : > { %v7471_v59 = vpop.eup %7470  ;;  %7482 = vpow2.f32 %v5323_v60  ;;  %v6736_v46 = vpop.f32.mrb[130].mxu1 }
 0x69a   : > { %v7473_v52 = vpop.eup %7472  ;;  %6095 = vst [vmem:[%s8917_s1 + $0x7a8] sm:$0xff] %v7471_v59  ;;  %v4722_v37 = vadd.f32 %v9613_v27, %v6736_v46  ;;  %v4716_v24 = vpop.f32.mrb[131].mxu1 }
 0x69b   : > { %v6786_v55 = vpop.f32.mrb[128].mxu0  ;;  %v7475_v45 = vpop.eup %7474  ;;  %6030 = vst [vmem:[%s8917_s1 + $0x6a0] sm:$0xff] %v7473_v52  ;;  %v4717_v62 = vadd.f32 %v9613_v27, %v4716_v24 }
 0x69c   : > { %v5246_v48 = vadd.f32 %v9613_v27, %v6786_v55  ;;  %v5240_v63 = vpop.f32.mrb[129].mxu0  ;;  %6094 = vst [vmem:[%s8917_s1 + $0x7a0] sm:$0xff] %v7475_v45  ;;  %v4805_v40 = vmul.f32 1.442695, %v4722_v37 }
 0x69d   : > { %v5241_v51 = vadd.f32 %v9613_v27, %v5240_v63  ;;  %v4803_v19 = vmul.f32 1.442695, %v4717_v62 }
 0x69e   : > { %v5329_v9 = vmul.f32 1.442695, %v5246_v48  ;;  %7484 = vpow2.f32 %v4805_v40 }
 0x69f   : > { %v5327_v13 = vmul.f32 1.442695, %v5241_v51  ;;  %v7477_v39 = vpop.eup %7476 }
 0x6a0   : > { %7486 = vpow2.f32 %v5329_v9  ;;  %6033 = vst [vmem:[%s8917_s1 + $0x6b8] sm:$0xff] %v7477_v39 }
 0x6a1   : > { %7488 = vpow2.f32 %v4803_v19  ;;  %v7479_v6 = vpop.eup %7478 }
 0x6a2   : > { %7490 = vpow2.f32 %v5327_v13  ;;  %v7481_v56 = vpop.eup %7480  ;;  %6097 = vst [vmem:[%s8917_s1 + $0x7b8] sm:$0xff] %v7479_v6 }
 0x6a3   : > { %v6739_v58 = vpop.f32.mrb[132].mxu1  ;;  %v7483_v29 = vpop.eup %7482  ;;  %6032 = vst [vmem:[%s8917_s1 + $0x6b0] sm:$0xff] %v7481_v56 }
 0x6a4   : > { %v4732_v10 = vadd.f32 %v9613_v27, %v6739_v58  ;;  %v4726_v25 = vpop.f32.mrb[133].mxu1  ;;  %6096 = vst [vmem:[%s8917_s1 + $0x7b0] sm:$0xff] %v7483_v29 }
 0x6a5   : > { %v6789_v0 = vpop.f32.mrb[130].mxu0  ;;  %v4727_v18 = vadd.f32 %v9613_v27, %v4726_v25 }
 0x6a6   : > { %v5256_v54 = vadd.f32 %v9613_v27, %v6789_v0  ;;  %v5250_v36 = vpop.f32.mrb[131].mxu0  ;;  %v4809_v35 = vmul.f32 1.442695, %v4732_v10 }
 0x6a7   : > { %v5251_v11 = vadd.f32 %v9613_v27, %v5250_v36  ;;  %v4807_v49 = vmul.f32 1.442695, %v4727_v18 }
 0x6a8   : > { %v5333_v23 = vmul.f32 1.442695, %v5256_v54  ;;  %7492 = vpow2.f32 %v4809_v35  ;;  %v7485_v20 = vpop.eup %7484 }
 0x6a9   : > { %v5331_v28 = vmul.f32 1.442695, %v5251_v11  ;;  %6035 = vst [vmem:[%s8917_s1 + $0x6c8] sm:$0xff] %v7485_v20 }
 0x6aa   : > { %7494 = vpow2.f32 %v5333_v23  ;;  %v7487_v31 = vpop.eup %7486 }
 0x6ab   : > { %7496 = vpow2.f32 %v4807_v49  ;;  %v7489_v15 = vpop.eup %7488  ;;  %6099 = vst [vmem:[%s8917_s1 + $0x7c8] sm:$0xff] %v7487_v31 }
 0x6ac   : > { %7498 = vpow2.f32 %v5331_v28  ;;  %v7491_v38 = vpop.eup %7490  ;;  %6034 = vst [vmem:[%s8917_s1 + $0x6c0] sm:$0xff] %v7489_v15 }
 0x6ad   : > { %v6742_v3 = vpop.f32.mrb[134].mxu1  ;;  %6098 = vst [vmem:[%s8917_s1 + $0x7c0] sm:$0xff] %v7491_v38 }
 0x6ae   : > { %v4742_v26 = vadd.f32 %v9613_v27, %v6742_v3  ;;  %v4736_v32 = vpop.f32.mrb[135].mxu1 }
 0x6af   : > { %v6792_v21 = vpop.f32.mrb[132].mxu0  ;;  %v4737_v61 = vadd.f32 %v9613_v27, %v4736_v32 }
 0x6b0   : > { %v5266_v50 = vadd.f32 %v9613_v27, %v6792_v21  ;;  %v5260_v22 = vpop.f32.mrb[133].mxu0  ;;  %v4813_v1 = vmul.f32 1.442695, %v4742_v26 }
 0x6b1   : > { %v5261_v4 = vadd.f32 %v9613_v27, %v5260_v22  ;;  %v4811_v43 = vmul.f32 1.442695, %v4737_v61 }
 0x6b2   : > { %v5337_v42 = vmul.f32 1.442695, %v5266_v50  ;;  %7500 = vpow2.f32 %v4813_v1  ;;  %v7493_v17 = vpop.eup %7492 }
 0x6b3   : > { %v5335_v8 = vmul.f32 1.442695, %v5261_v4  ;;  %6037 = vst [vmem:[%s8917_s1 + $0x6d8] sm:$0xff] %v7493_v17 }
 0x6b4   : > { %7502 = vpow2.f32 %v5337_v42  ;;  %v7495_v57 = vpop.eup %7494 }
 0x6b5   : > { %7504 = vpow2.f32 %v4811_v43  ;;  %v7497_v41 = vpop.eup %7496  ;;  %6101 = vst [vmem:[%s8917_s1 + $0x7d8] sm:$0xff] %v7495_v57 }
 0x6b6   : > { %7506 = vpow2.f32 %v5335_v8  ;;  %v7499_v30 = vpop.eup %7498  ;;  %6036 = vst [vmem:[%s8917_s1 + $0x6d0] sm:$0xff] %v7497_v41 }
 0x6b7   : > { %v6745_v16 = vpop.f32.mrb[136].mxu1  ;;  %6100 = vst [vmem:[%s8917_s1 + $0x7d0] sm:$0xff] %v7499_v30 }
 0x6b8   : > { %v4752_v33 = vadd.f32 %v9613_v27, %v6745_v16  ;;  %v4746_v53 = vpop.f32.mrb[137].mxu1 }
 0x6b9   : > { %v6795_v44 = vpop.f32.mrb[134].mxu0  ;;  %v4747_v12 = vadd.f32 %v9613_v27, %v4746_v53 }
 0x6ba   : > { %v5276_v5 = vadd.f32 %v9613_v27, %v6795_v44  ;;  %v5270_v7 = vpop.f32.mrb[135].mxu0  ;;  %v4817_v34 = vmul.f32 1.442695, %v4752_v33 }
 0x6bb   : > { %v5271_v47 = vadd.f32 %v9613_v27, %v5270_v7  ;;  %v4815_v60 = vmul.f32 1.442695, %v4747_v12 }
 0x6bc   : > { %v5341_v2 = vmul.f32 1.442695, %v5276_v5  ;;  %7508 = vpow2.f32 %v4817_v34  ;;  %v7501_v59 = vpop.eup %7500 }
 0x6bd   : > { %v5339_v14 = vmul.f32 1.442695, %v5271_v47  ;;  %6039 = vst [vmem:[%s8917_s1 + $0x6e8] sm:$0xff] %v7501_v59 }
 0x6be   : > { %7510 = vpow2.f32 %v5341_v2  ;;  %v7503_v46 = vpop.eup %7502 }
 0x6bf   : > { %7512 = vpow2.f32 %v4815_v60  ;;  %v7505_v52 = vpop.eup %7504  ;;  %6103 = vst [vmem:[%s8917_s1 + $0x7e8] sm:$0xff] %v7503_v46 }
 0x6c0   : > { %7514 = vpow2.f32 %v5339_v14  ;;  %v7507_v37 = vpop.eup %7506  ;;  %6038 = vst [vmem:[%s8917_s1 + $0x6e0] sm:$0xff] %v7505_v52 }
 0x6c1   : > { %6102 = vst [vmem:[%s8917_s1 + $0x7e0] sm:$0xff] %v7507_v37 }
 0x6c6   : > { %v7509_v27 = vpop.eup %7508 }
 0x6c7   : > { %6041 = vst [vmem:[%s8917_s1 + $0x6f8] sm:$0xff] %v7509_v27 }
 0x6c8   : > { %v7511_v55 = vpop.eup %7510 }
 0x6c9   : > { %v7513_v24 = vpop.eup %7512  ;;  %6105 = vst [vmem:[%s8917_s1 + $0x7f8] sm:$0xff] %v7511_v55 }
 0x6ca   : > { %v7515_v45 = vpop.eup %7514  ;;  %6040 = vst [vmem:[%s8917_s1 + $0x6f0] sm:$0xff] %v7513_v24 }
 0x6cb   : > { %6104 = vst [vmem:[%s8917_s1 + $0x7f0] sm:$0xff] %v7515_v45 }
 0x6cc   : > { %s9949_s9 = sld [smem:[#allocation26_spill]]  ;;  %s9950_s18 = sld [smem:[#allocation27_spill]] }
 0x6cd   : > { %s5409_s3 = sshll.u32 %s8917_s1, 4  ;;  %s9951_s17 = sld [smem:[#allocation63_spill]]  ;;  %s5410_s3 = int_to_ptr.vmem [resolvable:$true] %s5409_s3 }
 0x6ce   : > { %s7873_s16 = smov 4096   ;;  %p9952_p2 = scmp.ne.s32.totalorder %s9887_s29, 0 }
 0x6cf   : > { %s7874_s21 = smov 8192   ;;  %s7875_s19 = smov 32  }
 0x6d0   : > { %6824 = sst [smem:[#allocation16]] (%p9952_p2), %s7873_s16  ;;  %s7876_s11 = smov 128  }
 0x6d1   : > { %6825 = sst [smem:[#allocation16 + $0x1]] (%p9952_p2), %s7874_s21  ;;  %s7877_s7 = smov 8  }
 0x6d2   : > { %s6108_s12 = sshll.u32 %s9949_s9, 5  ;;  %s6115_s10 = sshll.u32 %s9950_s18, 9 }
 0x6d3   : > { %s5390_s4 = sadd.s32 %s6115_s10, %s6108_s12  ;;  %6826 = sst [smem:[#allocation16 + $0x2]] (%p9952_p2), %s7875_s19 }
 0x6d4   : > { %s6110_s30 = sshll.u32 %s5390_s4, 7  ;;  %6827 = sst [smem:[#allocation16 + $0x3]] (%p9952_p2), %s7876_s11 }
 0x6d5   : > { %s5392_s15 = scalar_lea.hbm %s9951_s17, %s6110_s30  ;;  %6828 = sst [smem:[#allocation16 + $0x4]] (%p9952_p2), %s7876_s11 }
 0x6d6   : > { %6829 = sst [smem:[#allocation16 + $0x5]] (%p9952_p2), %s7877_s7  ;;  %s7878_s6 = smov [#allocation15]  }
 0x6d7   : > { %s7879_s13 = smov 0  }
 0x6d8   : > { %6830 = dma.general (%p9952_p2), %s5410_s3, 32768, %s5392_s15, %s5377_s27, %s7878_s6, [#allocation16], %s7879_s13, 0  }
 0x6d9 PF: > { %s9953_s22 = sld [smem:[#allocation22_spill]]  ;;  %p6868_p9 = scmp.ge.s32.totalorder %s7852_s14, 2 }
 0x6da   : > { %p9954_p1 = scmp.ne.s32.totalorder %s9889_s20, 0 }
 0x6dc   : > { %p6856_p11 = pnand %p6868_p9, %p9954_p1 }
 0x6df   : > { %s5437_s24 = sand.u32 1, %s9953_s22  }
 0x6e0   : > { %s5438_s1 = scalar_lea.sflag [#allocation4], %s5437_s24 }
 0x6e1   : > { %7795 = dma.done.wait (!%p6856_p11), %s5438_s1, 32768  }
 0x6e2   : > { %7797 = vsyncadd (!%p6856_p11), %s5438_s1, 4294934528  ;;  %s28_s14 = sadd.s32 1, %s7852_s14   ;;  %s9956_s24 = sld [smem:[#allocation23_spill]] }
 0x6e3   : > { %p9766_p8 = scmp.ge.s32.totalorder %s28_s14, 6   ;;  %s9957_s29 = sld [smem:[#allocation24_spill]] }
 0x6e4   : > { %s9958_s18 = sld [smem:[#allocation32_spill]]  ;;  %s9959_s12 = sld [smem:[#allocation25_spill]] }
 0x6e5   : > { %s9960_s10 = sld [smem:[#allocation34_spill]]  ;;  %s9961_s20 = sld [smem:[#allocation28_spill]] }
 0x6e6   : > { %s9962_s11 = sld [smem:[#allocation29_spill]]  ;;  %s9963_s4 = sld [smem:[#allocation31_spill]] }
 0x6e7   : > { %s9964_s13 = sld [smem:[#allocation33_spill]]  ;;  %s9966_s25 = smov %s7808_s26 }
 0x6e8   : > { %s9967_s26 = smov %s8223_s0  ;;  %s9968_s27 = smov %s7816_s28 }
 0x6e9   : > { %s9969_s28 = smov %s9957_s29  ;;  %s9971_s30 = smov %s7828_s8 }
 0x6ea   : > { %s9970_s29 = smov %s9958_s18  ;;  %s9972_s8 = smov %s9959_s12 }
 0x6eb   : > { %s9973_s9 = smov %s9960_s10  ;;  %s9974_s10 = smov %s9961_s20 }
 0x6ec   : > { %s9975_s12 = smov %s9963_s4  ;;  %27 = sbr.rel (!%p9766_p8) target bundleno = 23 (0x17), region = 145 }
 0x6f3   :  { %5443 = vsyncpa [#allocation3], 1 }
 0x6f4   :  { %5445 = vsyncpa [#allocation3 + $0x1], 1 }
 0x6f5   :  { %5446 = vsyncpa [#allocation6], 1 }
 0x6f6   :  { %5447 = vsyncpa [#allocation9], 1 }
 0x6f7   :  { %5449 = vsyncpa [#allocation9 + $0x1], 1 }
 0x6f8   :  { %5450 = vsyncpa [#allocation12], 1 }
 0x6f9   :  { %5451 = vsyncpa [#allocation4], 1 }
 0x6fa   :  { %5453 = vsyncpa [#allocation4 + $0x1], 1 }

</bundles_post_ra>
